<compile_context>
chip_gen: v7x
topology: tpu7x:2x2x1
jax: 0.10.0
libtpu: 0.0.40
codegen_flags: <defaults>
</compile_context>

<pallas_src>
import math
import functools

import jax
import jax.numpy as jnp
from jax.experimental import pallas as pl
from jax.experimental.pallas import tpu as pltpu

# ---------------- small test configuration ----------------
B        = 2     # batch
N_IN     = 3     # input channels (n_in)
N_HIDDEN = 8     # n_hidden (C)
N_CHAN   = 4     # n_channel (graph nodes N)
N_TIME   = 16    # time steps T
L_WINDOW = 4     # l_window
CHEB_K   = 4     # Chebyshev order k
N_HEAD   = 2     # attention heads  # TODO(synk): reference TranAD uses nhead=feats
D_MODEL  = 2 * N_HIDDEN
HEAD_DIM = D_MODEL // N_HEAD
DIM_FF   = 16    # n_forward
KT       = 4     # out_conv time kernel / stride (50 in the full-size model)


def _lane_tile(s):
    """Widest lane tile that divides s (v6e/v7x MXU prefers >=256 wide tiles);
    otherwise fall back to a full-dim block (allowed by the (8,128) rule).
    At production scale this also gives >=2 parallel grid steps for v7x's
    two TensorCores; at these test sizes most calls compile to a 1-step grid."""
    for t in (512, 256, 128):
        if s % t == 0:
            return t
    return s


# ====================== Pallas matmul kernel (feature-major) ======================

def _fm_matmul_kernel(w_ref, x_ref, scale_ref, shift_ref, o_ref, *, act):
    # w: (Co, Ci) bf16 ; x: (1, Ci, tn) ; scale/shift: (1, R, 1) f32 (broadcast)
    acc = jnp.dot(w_ref[...], x_ref[0].astype(jnp.bfloat16),
                  preferred_element_type=jnp.float32)            # (Co, tn) f32
    y = acc * scale_ref[0] + shift_ref[0]                        # fused epilogue
    if act == "elu":
        y = jnp.where(y > 0, y, jnp.exp(jnp.minimum(y, 0.0)) - 1.0)
    elif act == "relu":
        y = jnp.maximum(y, 0.0)
    elif act == "sigmoid":
        y = 1.0 / (1.0 + jnp.exp(-y))
    o_ref[0] = y


def fm_linear(w, x, scale=None, shift=None, act="none"):
    """out[l] = act((w @ x[l]) * scale + shift)   (batched over the leading axis)

    w:     (Co, Ci)             weight (static weights are pre-cast to bf16)
    x:     (L, Ci, S)  f32      feature-major activations, S on the lane axis
    scale: (1|L, Co|1, 1) f32   per-row (or per-batch) folded-BN scale
    shift: (1|L, Co|1, 1) f32   per-row (or per-batch) bias / folded-BN shift
    """
    L, Ci, S = x.shape
    Co = w.shape[0]
    if scale is None:
        scale = jnp.ones((1, 1, 1), jnp.float32)
    if shift is None:
        shift = jnp.zeros((1, 1, 1), jnp.float32)
    assert scale.shape[0] in (1, L) and shift.shape[0] in (1, L)
    w = w.astype(jnp.bfloat16)
    scale = scale.astype(jnp.float32)
    shift = shift.astype(jnp.float32)

    tn = _lane_tile(S)
    s_map = (lambda l, j: (l, 0, 0)) if scale.shape[0] > 1 else (lambda l, j: (0, 0, 0))
    t_map = (lambda l, j: (l, 0, 0)) if shift.shape[0] > 1 else (lambda l, j: (0, 0, 0))

    return pl.pallas_call(
        functools.partial(_fm_matmul_kernel, act=act),
        out_shape=jax.ShapeDtypeStruct((L, Co, S), jnp.float32),
        grid=(L, S // tn),
        in_specs=[
            pl.BlockSpec((Co, Ci), lambda l, j: (0, 0)),
            pl.BlockSpec((1, Ci, tn), lambda l, j: (l, 0, j)),
            pl.BlockSpec((1, scale.shape[1], 1), s_map),
            pl.BlockSpec((1, shift.shape[1], 1), t_map),
        ],
        out_specs=pl.BlockSpec((1, Co, tn), lambda l, j: (l, 0, j)),
        compiler_params=pltpu.CompilerParams(
            dimension_semantics=("parallel", "parallel")),
    )(w, x, scale, shift)


# ====================== Pallas attention kernels ======================

def _attend(q, kv, o_ref, n_head, scale):
    # q: (Lq, E, bt); kv: (Lk, 2E, bt); softmax over Lk.  All math in f32
    # (v5e has no bf16 VPU/EUP).  Heads are static sublane slices.
    Lq, E, bt = q.shape
    Lk = kv.shape[0]
    dh = E // n_head
    q = q * scale                                   # fold the scale in once
    for h in range(n_head):
        q_h = q[:, h * dh:(h + 1) * dh, :]
        k_h = kv[:, h * dh:(h + 1) * dh, :]
        v_h = kv[:, E + h * dh:E + (h + 1) * dh, :]
        s = jnp.zeros((Lq, Lk, bt), jnp.float32)
        for d in range(dh):
            s = s + q_h[:, None, d, :] * k_h[None, :, d, :]
        m = jnp.max(s, axis=1, keepdims=True)
        p = jnp.exp(s - m)
        p = p * pl.reciprocal(jnp.sum(p, axis=1, keepdims=True), approx=True)
        o = jnp.zeros((Lq, dh, bt), jnp.float32)
        for kk in range(Lk):
            o = o + p[:, kk, None, :] * v_h[kk][None, :, :]
        o_ref[:, h * dh:(h + 1) * dh, :] = o


def _attn_self_kernel(qkv_ref, o_ref, *, n_head, scale):
    E = o_ref.shape[1]
    qkv = qkv_ref[...]
    _attend(qkv[:, :E, :], qkv[:, E:, :], o_ref, n_head, scale)


def _attn_cross_kernel(q_ref, kv_ref, o_ref, *, n_head, scale):
    _attend(q_ref[...], kv_ref[...], o_ref, n_head, scale)


def attention_self(qkv, n_head, scale):
    """qkv: (L, 3E, S) fused projection; returns (L, E, S)."""
    L, E3, S = qkv.shape
    E = E3 // 3
    tn = _lane_tile(S)
    return pl.pallas_call(
        functools.partial(_attn_self_kernel, n_head=n_head, scale=scale),
        out_shape=jax.ShapeDtypeStruct((L, E, S), jnp.float32),
        grid=(S // tn,),
        in_specs=[pl.BlockSpec((L, E3, tn), lambda j: (0, 0, j))],
        out_specs=pl.BlockSpec((L, E, tn), lambda j: (0, 0, j)),
        compiler_params=pltpu.CompilerParams(dimension_semantics=("parallel",)),
    )(qkv)


def attention_cross(q, kv, n_head, scale):
    """q: (Lq, E, S); kv: (Lk, 2E, S); returns (Lq, E, S)."""
    Lq, E, S = q.shape
    Lk, E2, _ = kv.shape
    tn = _lane_tile(S)
    return pl.pallas_call(
        functools.partial(_attn_cross_kernel, n_head=n_head, scale=scale),
        out_shape=jax.ShapeDtypeStruct((Lq, E, S), jnp.float32),
        grid=(S // tn,),
        in_specs=[pl.BlockSpec((Lq, E, tn), lambda j: (0, 0, j)),
                  pl.BlockSpec((Lk, E2, tn), lambda j: (0, 0, j))],
        out_specs=pl.BlockSpec((Lq, E, tn), lambda j: (0, 0, j)),
        compiler_params=pltpu.CompilerParams(dimension_semantics=("parallel",)),
    )(q, kv)


# ====================== Transformer (TranAD) in feature-major layout ======================

def layer_norm_fm(x, gamma, beta, eps=1e-5):
    # x: (L, E, S); normalize over the feature (sublane) axis.
    mu = jnp.mean(x, axis=1, keepdims=True)
    var = jnp.mean(jnp.square(x - mu), axis=1, keepdims=True)
    return ((x - mu) * jax.lax.rsqrt(var + eps)
            * gamma[None, :, None] + beta[None, :, None])


def mha_self(p, x):
    qkv = fm_linear(p["wqkv"], x, shift=p["bqkv"])             # fused QKV (L,3E,S)
    o = attention_self(qkv, N_HEAD, 1.0 / math.sqrt(HEAD_DIM))
    return fm_linear(p["wo"], o, shift=p["bo"])


def mha_cross(p, x, mem):
    q = fm_linear(p["wq"], x, shift=p["bq"])                   # (Lq, E, S)
    kv = fm_linear(p["wkv"], mem, shift=p["bkv"])              # fused KV (Lk,2E,S)
    o = attention_cross(q, kv, N_HEAD, 1.0 / math.sqrt(HEAD_DIM))
    return fm_linear(p["wo"], o, shift=p["bo"])


def feed_forward(p, x):
    h = fm_linear(p["ff1_w"], x, shift=p["ff1_b"], act="relu")   # ReLU fused
    return fm_linear(p["ff2_w"], h, shift=p["ff2_b"])


def encoder_layer(p, x):
    a = mha_self(p["self"], x)
    x = layer_norm_fm(x + a, p["ln1_g"], p["ln1_b"])
    f = feed_forward(p, x)
    return layer_norm_fm(x + f, p["ln2_g"], p["ln2_b"])


def decoder_layer(p, t, mem):
    a = mha_self(p["self"], t)
    t = layer_norm_fm(t + a, p["ln1_g"], p["ln1_b"])
    a = mha_cross(p["cross"], t, mem)
    t = layer_norm_fm(t + a, p["ln2_g"], p["ln2_b"])
    f = feed_forward(p, t)
    return layer_norm_fm(t + f, p["ln3_g"], p["ln3_b"])


def tranad_forward(p, src, tgt):
    # TODO(synk): TranAD class body is not in the reference file; this follows
    # the published TranAD (encoder + two decoders, two-phase reconstruction).
    L, C, S = src.shape
    sqrt_c = math.sqrt(C)

    def encode(c_fb):
        s_in = jnp.concatenate([src, c_fb], axis=1) * sqrt_c + p["pe"][:L]
        mem = encoder_layer(p["enc"], s_in)
        t_in = jnp.concatenate([tgt, tgt], axis=1)      # tgt.repeat(1, 1, 2)
        return t_in, mem

    t, mem = encode(jnp.zeros_like(src))
    d1 = decoder_layer(p["dec1"], t, mem)
    x1 = fm_linear(p["fcn_w"], d1, shift=p["fcn_b"], act="sigmoid")   # (1, C, S)
    t, mem = encode(jnp.square(x1 - src))
    d2 = decoder_layer(p["dec2"], t, mem)
    x2 = fm_linear(p["fcn_w"], d2, shift=p["fcn_b"], act="sigmoid")   # (1, C, S)
    return x1, x2


# ====================== Chebyshev GCN ======================

def cheb_basis(adj, k):
    # T_0 = I, T_1 = adj, T_j = 2*adj*T_{j-1} - T_{j-2}; stacked once along
    # columns as A[n, j*N + m] = T_j[n, m].  (4x4 recurrence -> plain jnp.)
    # TODO(synk): ChebNetGCN is not in the reference file; standard ChebNet
    # would use the scaled Laplacian here.
    n = adj.shape[0]
    terms = [jnp.eye(n, dtype=jnp.float32), adj.astype(jnp.float32)]
    for _ in range(2, k):
        terms.append(2.0 * adj @ terms[-1] - terms[-2])
    return jnp.concatenate(terms[:k], axis=1)              # (N, k*N)


def cheb_layer(p, y, basis, n_nodes, act):
    """sum_k T_k(adj) Y W_k + b as two fused Pallas matmuls (zero relayouts).

    y:      (Cin, S) with S ordered (node, batch, time)
    p["w"]: (Cout*K, Cin)   rows ordered (c_out, k)
    basis:  (N, K*N)        columns ordered (k, node)
    """
    cin, S = y.shape
    cout = p["b"].shape[0]
    bt = S // n_nodes
    h = fm_linear(p["w"], y[None])[0]                       # (Cout*K, S)
    h = h.reshape(cout, CHEB_K * n_nodes, bt)               # per co: rows (k, node)
    z = fm_linear(basis, h, shift=p["b"], act=act)          # (Cout, N, BT) + bias/ELU fused
    return z.reshape(cout, S)


# ====================== CPEDNet forward ======================

def cpednet_forward(params, x, adj):
    bsz, n_in, n_nodes, n_time = x.shape
    C = N_HIDDEN
    S = n_nodes * bsz * n_time          # lane order: (node, batch, time)

    # ---- in_conv: 1x1 Conv2d + BN(eval) + ELU fused; Dropout(eval) no-op ----
    x_fm = jnp.transpose(x, (1, 2, 0, 3)).reshape(n_in, S)
    h = fm_linear(params["in_w"], x_fm[None], scale=params["in_scale"],
                  shift=params["in_shift"], act="elu")[0]            # (C, S)

    # ---- Chebyshev GCN (2 layers, 2 fused matmuls each) ----
    basis = cheb_basis(adj, CHEB_K)
    g = cheb_layer(params["gcn1"], h, basis, n_nodes, act="elu")
    g = cheb_layer(params["gcn2"], g, basis, n_nodes, act="none")    # (C, S)

    # ---- sliding windows for the transformer ----
    pad = L_WINDOW - 1
    g3 = g.reshape(C, n_nodes * bsz, n_time)
    gp = jnp.pad(g3, ((0, 0), (0, 0), (pad, 0)), mode="reflect")
    x0 = jnp.stack([gp[:, :, j:j + n_time].reshape(C, S)
                    for j in range(L_WINDOW)], axis=0)               # (L, C, S)
    tgt = x0[-1:]                                                    # x0[[-1]]

    x1f, x2f = tranad_forward(params["tranad"], x0, tgt)             # (1, C, S) each

    def to_bntc(v):     # (C, S=(n,b,t)) -> (B, N, T, C)
        return jnp.transpose(v.reshape(C, n_nodes, bsz, n_time), (2, 1, 3, 0))

    x1 = to_bntc(x1f[0])
    x2 = to_bntc(x2f[0])

    # ---- out_conv: Conv2d(3C,3C,(1,KT),stride (1,KT)) + BN + ELU fused, max pool ----
    C3 = 3 * C
    tp = n_time // KT
    cat = jnp.concatenate([g, x1f[0], x2f[0]], axis=0)               # (3C, S)
    xc = (cat.reshape(C3, n_nodes * bsz * tp, KT)
             .transpose(0, 2, 1).reshape(C3 * KT, n_nodes * bsz * tp))
    y = fm_linear(params["oc_w"], xc[None], scale=params["oc_scale"],
                  shift=params["oc_shift"], act="elu")[0]            # (3C, N*B*Tp)
    pooled = jnp.max(y.reshape(C3, n_nodes, bsz, tp), axis=(1, 3))   # (3C, B)

    # ---- out_ffn (ELU fused into the first linear) ----
    f = fm_linear(params["ffn_w1"], pooled[None],
                  shift=params["ffn_b1"], act="elu")
    logits = fm_linear(params["ffn_w2"], f, shift=params["ffn_b2"])[0]   # (2, B)
    return x1, x2, logits.T


# ====================== deterministic parameter init ======================

def init_params(key):
    keys = iter(jax.random.split(key, 256))

    def nrm(shape, scale=0.1):
        return scale * jax.random.normal(next(keys), shape, dtype=jnp.float32)

    def wbf(shape, scale=0.1):                 # matmul weights pre-cast to bf16
        return nrm(shape, scale).astype(jnp.bfloat16)

    def col(v):                                # per-row epilogue vector (1, n, 1)
        return v.reshape(1, -1, 1)

    C, C3, E = N_HIDDEN, 3 * N_HIDDEN, D_MODEL
    eps = 1e-5

    def bn_fold(c, conv_bias):
        # eval-mode BatchNorm folded (together with the conv bias) into scale/shift
        gamma = 1.0 + nrm((c,), 0.05)
        beta = nrm((c,), 0.05)
        mean = nrm((c,), 0.05)
        var = 1.0 + jnp.abs(nrm((c,), 0.05))
        s = gamma / jnp.sqrt(var + eps)
        return col(s), col(beta - mean * s + conv_bias * s)

    def mha_self_p():
        return {"wqkv": wbf((3 * E, E)), "bqkv": col(nrm((3 * E,))),
                "wo": wbf((E, E)), "bo": col(nrm((E,)))}

    def mha_cross_p():
        return {"wq": wbf((E, E)), "bq": col(nrm((E,))),
                "wkv": wbf((2 * E, E)), "bkv": col(nrm((2 * E,))),
                "wo": wbf((E, E)), "bo": col(nrm((E,)))}

    def ln():
        return 1.0 + nrm((E,), 0.05), nrm((E,), 0.05)

    def ff_p():
        return {"ff1_w": wbf((DIM_FF, E)), "ff1_b": col(nrm((DIM_FF,))),
                "ff2_w": wbf((E, DIM_FF)), "ff2_b": col(nrm((E,)))}

    def enc_p():
        g1, b1 = ln(); g2, b2 = ln()
        return {"self": mha_self_p(), **ff_p(),
                "ln1_g": g1, "ln1_b": b1, "ln2_g": g2, "ln2_b": b2}

    def dec_p():
        g1, b1 = ln(); g2, b2 = ln(); g3, b3 = ln()
        return {"self": mha_self_p(), "cross": mha_cross_p(), **ff_p(),
                "ln1_g": g1, "ln1_b": b1, "ln2_g": g2, "ln2_b": b2,
                "ln3_g": g3, "ln3_b": b3}

    pos = jnp.arange(L_WINDOW, dtype=jnp.float32)[:, None]
    div = jnp.exp(jnp.arange(0, E, 2, dtype=jnp.float32)
                  * (-math.log(10000.0) / E))
    pe = jnp.zeros((L_WINDOW, E), jnp.float32)
    pe = pe.at[:, 0::2].set(jnp.sin(pos * div)).at[:, 1::2].set(jnp.cos(pos * div))

    in_scale, in_shift = bn_fold(C, nrm((C,)))
    oc_scale, oc_shift = bn_fold(C3, nrm((C3,)))

    return {
        "in_w": wbf((C, N_IN)), "in_scale": in_scale, "in_shift": in_shift,
        # Chebyshev weights pre-stacked: rows ordered (c_out, k); bias per-batch
        "gcn1": {"w": wbf((C * CHEB_K, C)), "b": nrm((C,)).reshape(C, 1, 1)},
        "gcn2": {"w": wbf((C * CHEB_K, C)), "b": nrm((C,)).reshape(C, 1, 1)},
        "tranad": {"pe": pe[:, :, None], "enc": enc_p(),
                   "dec1": dec_p(), "dec2": dec_p(),
                   "fcn_w": wbf((C, E)), "fcn_b": col(nrm((C,)))},
        # out_conv weight pre-flattened once: (c_out, c_in*KT), cols (c_in, dt)
        "oc_w": nrm((C3, C3, KT)).reshape(C3, C3 * KT).astype(jnp.bfloat16),
        "oc_scale": oc_scale, "oc_shift": oc_shift,
        "ffn_w1": wbf((C, C3)), "ffn_b1": col(nrm((C,))),
        "ffn_w2": wbf((2, C)), "ffn_b2": col(nrm((2,))),
    }


def build_adj(n):
    a = jnp.eye(n, dtype=jnp.float32)
    idx = jnp.arange(n)
    a = a.at[idx, (idx + 1) % n].set(1.0)
    a = a.at[(idx + 1) % n, idx].set(1.0)
    d = jnp.sum(a, axis=1)
    dinv = 1.0 / jnp.sqrt(d)
    return a * dinv[:, None] * dinv[None, :]


if __name__ == "__main__":
    key = jax.random.PRNGKey(0)
    pkey, xkey = jax.random.split(key)
    params = init_params(pkey)
    x = jax.random.normal(xkey, (B, N_IN, N_CHAN, N_TIME), dtype=jnp.float32)
    adj = build_adj(N_CHAN)

    fwd = jax.jit(cpednet_forward)
    x1, x2, out = fwd(params, x, adj)
    jax.block_until_ready((x1, x2, out))

    assert x1.shape == (B, N_CHAN, N_TIME, N_HIDDEN)
    assert x2.shape == (B, N_CHAN, N_TIME, N_HIDDEN)
    assert out.shape == (B, 2)
    assert bool(jnp.all(jnp.isfinite(out)))
    assert bool(jnp.all(jnp.isfinite(x1))) and bool(jnp.all(jnp.isfinite(x2)))
    print("KERNEL_OK")
</pallas_src>

<mosaic_0001>
module attributes {stable_mosaic.version = 11 : i64} {
  func.func @_fm_matmul_kernel(%arg0: i32, %arg1: i32, %arg2: memref<4x16xbf16, #tpu.memory_space<vmem>>, %arg3: memref<1x16x32xf32, #tpu.memory_space<vmem>>, %arg4: memref<1x1x1xf32, #tpu.memory_space<vmem>>, %arg5: memref<1x1x1xf32, #tpu.memory_space<vmem>>, %arg6: memref<1x4x32xf32, #tpu.memory_space<vmem>>) attributes {dimension_semantics = [#tpu.dimension_semantics<parallel>, #tpu.dimension_semantics<parallel>], iteration_bounds = array<i64: 8, 1>, scalar_prefetch = 0 : i64, scratch_operands = 0 : i64, tpu.core_type = #tpu.core_type<tc>, window_params = [{pipeline_mode = #tpu.pipeline_mode<synchronous>, transform_indices = @transform_0, window_bounds = array<i64: 4, 16>}, {transform_indices = @transform_1, window_bounds = array<i64: 1, 16, 32>}, {pipeline_mode = #tpu.pipeline_mode<synchronous>, transform_indices = @transform_2, window_bounds = array<i64: 1, 1, 1>}, {transform_indices = @transform_3, window_bounds = array<i64: 1, 1, 1>}, {transform_indices = @transform_4, window_bounds = array<i64: 1, 4, 32>}]} {
    %c0 = arith.constant 0 : index
    %c0_0 = arith.constant 0 : index
    %0 = vector.load %arg2[%c0, %c0_0] : memref<4x16xbf16, #tpu.memory_space<vmem>>, vector<4x16xbf16>
    %c0_1 = arith.constant 0 : index
    %c0_2 = arith.constant 0 : index
    %c0_3 = arith.constant 0 : index
    %1 = vector.load %arg3[%c0_1, %c0_2, %c0_3] : memref<1x16x32xf32, #tpu.memory_space<vmem>>, vector<1x16x32xf32>
    %2 = vector.shape_cast %1 : vector<1x16x32xf32> to vector<16x32xf32>
    %3 = arith.truncf %2 : vector<16x32xf32> to vector<16x32xbf16>
    %cst = arith.constant dense<0.000000e+00> : vector<4x32xf32>
    %4 = tpu.matmul %0, %3, %cst {dimension_numbers = #tpu.dot_dimension_numbers<[1], [0], [0], [1], [0, 0, 1, 1], [], []>} : vector<4x16xbf16>, vector<16x32xbf16>, vector<4x32xf32> -> vector<4x32xf32>
    %c0_4 = arith.constant 0 : index
    %c0_5 = arith.constant 0 : index
    %c0_6 = arith.constant 0 : index
    %5 = vector.load %arg4[%c0_4, %c0_5, %c0_6] : memref<1x1x1xf32, #tpu.memory_space<vmem>>, vector<1x1x1xf32>
    %6 = vector.shape_cast %5 : vector<1x1x1xf32> to vector<1x1xf32>
    %7 = vector.broadcast %6 : vector<1x1xf32> to vector<4x32xf32>
    %8 = arith.mulf %4, %7 : vector<4x32xf32>
    %c0_7 = arith.constant 0 : index
    %c0_8 = arith.constant 0 : index
    %c0_9 = arith.constant 0 : index
    %9 = vector.load %arg5[%c0_7, %c0_8, %c0_9] : memref<1x1x1xf32, #tpu.memory_space<vmem>>, vector<1x1x1xf32>
    %10 = vector.shape_cast %9 : vector<1x1x1xf32> to vector<1x1xf32>
    %11 = vector.broadcast %10 : vector<1x1xf32> to vector<4x32xf32>
    %12 = arith.addf %8, %11 : vector<4x32xf32>
    %c0_10 = arith.constant 0 : index
    %c0_11 = arith.constant 0 : index
    %c0_12 = arith.constant 0 : index
    %13 = vector.load %arg6[%c0_10, %c0_11, %c0_12] : memref<1x4x32xf32, #tpu.memory_space<vmem>>, vector<1x4x32xf32>
    %14 = vector.shape_cast %13 : vector<1x4x32xf32> to vector<4x32xf32>
    %15 = vector.shape_cast %12 : vector<4x32xf32> to vector<1x4x32xf32>
    tpu.vector_store %arg6[%c0_10, %c0_11, %c0_12], %15 {strides = array<i32>} : memref<1x4x32xf32, #tpu.memory_space<vmem>>, vector<1x4x32xf32>,
    return
  }
  func.func @transform_0(%arg0: i32, %arg1: i32) -> (i32, i32) {
    %c0_i32 = arith.constant 0 : i32
    %c0_i32_0 = arith.constant 0 : i32
    %c0_i32_1 = arith.constant 0 : i32
    return %c0_i32, %c0_i32_0 : i32, i32
  }
  func.func @transform_1(%arg0: i32, %arg1: i32) -> (i32, i32, i32) {
    %c0_i32 = arith.constant 0 : i32
    %c0_i32_0 = arith.constant 0 : i32
    return %arg0, %c0_i32, %arg1 : i32, i32, i32
  }
  func.func @transform_2(%arg0: i32, %arg1: i32) -> (i32, i32, i32) {
    %c0_i32 = arith.constant 0 : i32
    %c0_i32_0 = arith.constant 0 : i32
    %c0_i32_1 = arith.constant 0 : i32
    %c0_i32_2 = arith.constant 0 : i32
    return %c0_i32, %c0_i32_0, %c0_i32_1 : i32, i32, i32
  }
  func.func @transform_3(%arg0: i32, %arg1: i32) -> (i32, i32, i32) {
    %c0_i32 = arith.constant 0 : i32
    %c0_i32_0 = arith.constant 0 : i32
    %c0_i32_1 = arith.constant 0 : i32
    return %arg0, %c0_i32, %c0_i32_0 : i32, i32, i32
  }
  func.func @transform_4(%arg0: i32, %arg1: i32) -> (i32, i32, i32) {
    %c0_i32 = arith.constant 0 : i32
    %c0_i32_0 = arith.constant 0 : i32
    return %arg0, %c0_i32, %arg1 : i32, i32, i32
  }
}

module attributes {stable_mosaic.version = 11 : i64} {
  func.func @_fm_matmul_kernel(%arg0: i32, %arg1: i32, %arg2: memref<8x3xbf16, #tpu.memory_space<vmem>>, %arg3: memref<1x3x128xf32, #tpu.memory_space<vmem>>, %arg4: memref<1x8x1xf32, #tpu.memory_space<vmem>>, %arg5: memref<1x8x1xf32, #tpu.memory_space<vmem>>, %arg6: memref<1x8x128xf32, #tpu.memory_space<vmem>>) attributes {dimension_semantics = [#tpu.dimension_semantics<parallel>, #tpu.dimension_semantics<parallel>], iteration_bounds = array<i64: 1, 1>, scalar_prefetch = 0 : i64, scratch_operands = 0 : i64, tpu.core_type = #tpu.core_type<tc>, window_params = [{pipeline_mode = #tpu.pipeline_mode<synchronous>, transform_indices = @transform_0, window_bounds = array<i64: 8, 3>}, {transform_indices = @transform_1, window_bounds = array<i64: 1, 3, 128>}, {pipeline_mode = #tpu.pipeline_mode<synchronous>, transform_indices = @transform_2, window_bounds = array<i64: 1, 8, 1>}, {pipeline_mode = #tpu.pipeline_mode<synchronous>, transform_indices = @transform_3, window_bounds = array<i64: 1, 8, 1>}, {transform_indices = @transform_4, window_bounds = array<i64: 1, 8, 128>}]} {
    %c0 = arith.constant 0 : index
    %c0_0 = arith.constant 0 : index
    %0 = vector.load %arg2[%c0, %c0_0] : memref<8x3xbf16, #tpu.memory_space<vmem>>, vector<8x3xbf16>
    %c0_1 = arith.constant 0 : index
    %c0_2 = arith.constant 0 : index
    %c0_3 = arith.constant 0 : index
    %1 = vector.load %arg3[%c0_1, %c0_2, %c0_3] : memref<1x3x128xf32, #tpu.memory_space<vmem>>, vector<1x3x128xf32>
    %2 = vector.shape_cast %1 : vector<1x3x128xf32> to vector<3x128xf32>
    %3 = arith.truncf %2 : vector<3x128xf32> to vector<3x128xbf16>
    %cst = arith.constant dense<0.000000e+00> : vector<8x128xf32>
    %4 = tpu.matmul %0, %3, %cst {dimension_numbers = #tpu.dot_dimension_numbers<[1], [0], [0], [1], [0, 0, 1, 1], [], []>} : vector<8x3xbf16>, vector<3x128xbf16>, vector<8x128xf32> -> vector<8x128xf32>
    %c0_4 = arith.constant 0 : index
    %c0_5 = arith.constant 0 : index
    %c0_6 = arith.constant 0 : index
    %5 = vector.load %arg4[%c0_4, %c0_5, %c0_6] : memref<1x8x1xf32, #tpu.memory_space<vmem>>, vector<1x8x1xf32>
    %6 = vector.shape_cast %5 : vector<1x8x1xf32> to vector<8x1xf32>
    %7 = vector.broadcast %6 : vector<8x1xf32> to vector<8x128xf32>
    %8 = arith.mulf %4, %7 : vector<8x128xf32>
    %c0_7 = arith.constant 0 : index
    %c0_8 = arith.constant 0 : index
    %c0_9 = arith.constant 0 : index
    %9 = vector.load %arg5[%c0_7, %c0_8, %c0_9] : memref<1x8x1xf32, #tpu.memory_space<vmem>>, vector<1x8x1xf32>
    %10 = vector.shape_cast %9 : vector<1x8x1xf32> to vector<8x1xf32>
    %11 = vector.broadcast %10 : vector<8x1xf32> to vector<8x128xf32>
    %12 = arith.addf %8, %11 : vector<8x128xf32>
    %cst_10 = arith.constant 0.000000e+00 : f32
    %13 = vector.broadcast %cst_10 : f32 to vector<8x128xf32>
    %14 = arith.cmpf ogt, %12, %13 : vector<8x128xf32>
    %cst_11 = arith.constant 0.000000e+00 : f32
    %15 = vector.broadcast %cst_11 : f32 to vector<8x128xf32>
    %16 = arith.minimumf %12, %15 : vector<8x128xf32>
    %17 = math.exp %16 : vector<8x128xf32>
    %cst_12 = arith.constant 1.000000e+00 : f32
    %18 = vector.broadcast %cst_12 : f32 to vector<8x128xf32>
    %19 = arith.subf %17, %18 : vector<8x128xf32>
    %20 = arith.select %14, %12, %19 : vector<8x128xi1>, vector<8x128xf32>
    %c0_13 = arith.constant 0 : index
    %c0_14 = arith.constant 0 : index
    %c0_15 = arith.constant 0 : index
    %21 = vector.load %arg6[%c0_13, %c0_14, %c0_15] : memref<1x8x128xf32, #tpu.memory_space<vmem>>, vector<1x8x128xf32>
    %22 = vector.shape_cast %21 : vector<1x8x128xf32> to vector<8x128xf32>
    %23 = vector.shape_cast %20 : vector<8x128xf32> to vector<1x8x128xf32>
    tpu.vector_store %arg6[%c0_13, %c0_14, %c0_15], %23 {strides = array<i32>} : memref<1x8x128xf32, #tpu.memory_space<vmem>>, vector<1x8x128xf32>,
    return
  }
  func.func @transform_0(%arg0: i32, %arg1: i32) -> (i32, i32) {
    %c0_i32 = arith.constant 0 : i32
    %c0_i32_0 = arith.constant 0 : i32
    %c0_i32_1 = arith.constant 0 : i32
    return %c0_i32, %c0_i32_0 : i32, i32
  }
  func.func @transform_1(%arg0: i32, %arg1: i32) -> (i32, i32, i32) {
    %c0_i32 = arith.constant 0 : i32
    %c0_i32_0 = arith.constant 0 : i32
    return %arg0, %c0_i32, %arg1 : i32, i32, i32
  }
  func.func @transform_2(%arg0: i32, %arg1: i32) -> (i32, i32, i32) {
    %c0_i32 = arith.constant 0 : i32
    %c0_i32_0 = arith.constant 0 : i32
    %c0_i32_1 = arith.constant 0 : i32
    %c0_i32_2 = arith.constant 0 : i32
    return %c0_i32, %c0_i32_0, %c0_i32_1 : i32, i32, i32
  }
  func.func @transform_3(%arg0: i32, %arg1: i32) -> (i32, i32, i32) {
    %c0_i32 = arith.constant 0 : i32
    %c0_i32_0 = arith.constant 0 : i32
    %c0_i32_1 = arith.constant 0 : i32
    %c0_i32_2 = arith.constant 0 : i32
    return %c0_i32, %c0_i32_0, %c0_i32_1 : i32, i32, i32
  }
  func.func @transform_4(%arg0: i32, %arg1: i32) -> (i32, i32, i32) {
    %c0_i32 = arith.constant 0 : i32
    %c0_i32_0 = arith.constant 0 : i32
    return %arg0, %c0_i32, %arg1 : i32, i32, i32
  }
}

module attributes {stable_mosaic.version = 11 : i64} {
  func.func @_fm_matmul_kernel(%arg0: i32, %arg1: i32, %arg2: memref<4x16xbf16, #tpu.memory_space<vmem>>, %arg3: memref<1x16x32xf32, #tpu.memory_space<vmem>>, %arg4: memref<1x1x1xf32, #tpu.memory_space<vmem>>, %arg5: memref<1x1x1xf32, #tpu.memory_space<vmem>>, %arg6: memref<1x4x32xf32, #tpu.memory_space<vmem>>) attributes {dimension_semantics = [#tpu.dimension_semantics<parallel>, #tpu.dimension_semantics<parallel>], iteration_bounds = array<i64: 8, 1>, scalar_prefetch = 0 : i64, scratch_operands = 0 : i64, tpu.core_type = #tpu.core_type<tc>, window_params = [{pipeline_mode = #tpu.pipeline_mode<synchronous>, transform_indices = @transform_0, window_bounds = array<i64: 4, 16>}, {transform_indices = @transform_1, window_bounds = array<i64: 1, 16, 32>}, {pipeline_mode = #tpu.pipeline_mode<synchronous>, transform_indices = @transform_2, window_bounds = array<i64: 1, 1, 1>}, {transform_indices = @transform_3, window_bounds = array<i64: 1, 1, 1>}, {transform_indices = @transform_4, window_bounds = array<i64: 1, 4, 32>}]} {
    %c0 = arith.constant 0 : index
    %c0_0 = arith.constant 0 : index
    %0 = vector.load %arg2[%c0, %c0_0] : memref<4x16xbf16, #tpu.memory_space<vmem>>, vector<4x16xbf16>
    %c0_1 = arith.constant 0 : index
    %c0_2 = arith.constant 0 : index
    %c0_3 = arith.constant 0 : index
    %1 = vector.load %arg3[%c0_1, %c0_2, %c0_3] : memref<1x16x32xf32, #tpu.memory_space<vmem>>, vector<1x16x32xf32>
    %2 = vector.shape_cast %1 : vector<1x16x32xf32> to vector<16x32xf32>
    %3 = arith.truncf %2 : vector<16x32xf32> to vector<16x32xbf16>
    %cst = arith.constant dense<0.000000e+00> : vector<4x32xf32>
    %4 = tpu.matmul %0, %3, %cst {dimension_numbers = #tpu.dot_dimension_numbers<[1], [0], [0], [1], [0, 0, 1, 1], [], []>} : vector<4x16xbf16>, vector<16x32xbf16>, vector<4x32xf32> -> vector<4x32xf32>
    %c0_4 = arith.constant 0 : index
    %c0_5 = arith.constant 0 : index
    %c0_6 = arith.constant 0 : index
    %5 = vector.load %arg4[%c0_4, %c0_5, %c0_6] : memref<1x1x1xf32, #tpu.memory_space<vmem>>, vector<1x1x1xf32>
    %6 = vector.shape_cast %5 : vector<1x1x1xf32> to vector<1x1xf32>
    %7 = vector.broadcast %6 : vector<1x1xf32> to vector<4x32xf32>
    %8 = arith.mulf %4, %7 : vector<4x32xf32>
    %c0_7 = arith.constant 0 : index
    %c0_8 = arith.constant 0 : index
    %c0_9 = arith.constant 0 : index
    %9 = vector.load %arg5[%c0_7, %c0_8, %c0_9] : memref<1x1x1xf32, #tpu.memory_space<vmem>>, vector<1x1x1xf32>
    %10 = vector.shape_cast %9 : vector<1x1x1xf32> to vector<1x1xf32>
    %11 = vector.broadcast %10 : vector<1x1xf32> to vector<4x32xf32>
    %12 = arith.addf %8, %11 : vector<4x32xf32>
    %cst_10 = arith.constant 0.000000e+00 : f32
    %13 = vector.broadcast %cst_10 : f32 to vector<4x32xf32>
    %14 = arith.cmpf ogt, %12, %13 : vector<4x32xf32>
    %cst_11 = arith.constant 0.000000e+00 : f32
    %15 = vector.broadcast %cst_11 : f32 to vector<4x32xf32>
    %16 = arith.minimumf %12, %15 : vector<4x32xf32>
    %17 = math.exp %16 : vector<4x32xf32>
    %cst_12 = arith.constant 1.000000e+00 : f32
    %18 = vector.broadcast %cst_12 : f32 to vector<4x32xf32>
    %19 = arith.subf %17, %18 : vector<4x32xf32>
    %20 = arith.select %14, %12, %19 : vector<4x32xi1>, vector<4x32xf32>
    %c0_13 = arith.constant 0 : index
    %c0_14 = arith.constant 0 : index
    %c0_15 = arith.constant 0 : index
    %21 = vector.load %arg6[%c0_13, %c0_14, %c0_15] : memref<1x4x32xf32, #tpu.memory_space<vmem>>, vector<1x4x32xf32>
    %22 = vector.shape_cast %21 : vector<1x4x32xf32> to vector<4x32xf32>
    %23 = vector.shape_cast %20 : vector<4x32xf32> to vector<1x4x32xf32>
    tpu.vector_store %arg6[%c0_13, %c0_14, %c0_15], %23 {strides = array<i32>} : memref<1x4x32xf32, #tpu.memory_space<vmem>>, vector<1x4x32xf32>,
    return
  }
  func.func @transform_0(%arg0: i32, %arg1: i32) -> (i32, i32) {
    %c0_i32 = arith.constant 0 : i32
    %c0_i32_0 = arith.constant 0 : i32
    %c0_i32_1 = arith.constant 0 : i32
    return %c0_i32, %c0_i32_0 : i32, i32
  }
  func.func @transform_1(%arg0: i32, %arg1: i32) -> (i32, i32, i32) {
    %c0_i32 = arith.constant 0 : i32
    %c0_i32_0 = arith.constant 0 : i32
    return %arg0, %c0_i32, %arg1 : i32, i32, i32
  }
  func.func @transform_2(%arg0: i32, %arg1: i32) -> (i32, i32, i32) {
    %c0_i32 = arith.constant 0 : i32
    %c0_i32_0 = arith.constant 0 : i32
    %c0_i32_1 = arith.constant 0 : i32
    %c0_i32_2 = arith.constant 0 : i32
    return %c0_i32, %c0_i32_0, %c0_i32_1 : i32, i32, i32
  }
  func.func @transform_3(%arg0: i32, %arg1: i32) -> (i32, i32, i32) {
    %c0_i32 = arith.constant 0 : i32
    %c0_i32_0 = arith.constant 0 : i32
    %c0_i32_1 = arith.constant 0 : i32
    return %arg0, %c0_i32, %c0_i32_0 : i32, i32, i32
  }
  func.func @transform_4(%arg0: i32, %arg1: i32) -> (i32, i32, i32) {
    %c0_i32 = arith.constant 0 : i32
    %c0_i32_0 = arith.constant 0 : i32
    return %arg0, %c0_i32, %arg1 : i32, i32, i32
  }
}

module attributes {stable_mosaic.version = 11 : i64} {
  func.func @_fm_matmul_kernel(%arg0: i32, %arg1: i32, %arg2: memref<32x8xbf16, #tpu.memory_space<vmem>>, %arg3: memref<1x8x128xf32, #tpu.memory_space<vmem>>, %arg4: memref<1x1x1xf32, #tpu.memory_space<vmem>>, %arg5: memref<1x1x1xf32, #tpu.memory_space<vmem>>, %arg6: memref<1x32x128xf32, #tpu.memory_space<vmem>>) attributes {dimension_semantics = [#tpu.dimension_semantics<parallel>, #tpu.dimension_semantics<parallel>], iteration_bounds = array<i64: 1, 1>, scalar_prefetch = 0 : i64, scratch_operands = 0 : i64, tpu.core_type = #tpu.core_type<tc>, window_params = [{pipeline_mode = #tpu.pipeline_mode<synchronous>, transform_indices = @transform_0, window_bounds = array<i64: 32, 8>}, {transform_indices = @transform_1, window_bounds = array<i64: 1, 8, 128>}, {pipeline_mode = #tpu.pipeline_mode<synchronous>, transform_indices = @transform_2, window_bounds = array<i64: 1, 1, 1>}, {pipeline_mode = #tpu.pipeline_mode<synchronous>, transform_indices = @transform_3, window_bounds = array<i64: 1, 1, 1>}, {transform_indices = @transform_4, window_bounds = array<i64: 1, 32, 128>}]} {
    %c0 = arith.constant 0 : index
    %c0_0 = arith.constant 0 : index
    %0 = vector.load %arg2[%c0, %c0_0] : memref<32x8xbf16, #tpu.memory_space<vmem>>, vector<32x8xbf16>
    %c0_1 = arith.constant 0 : index
    %c0_2 = arith.constant 0 : index
    %c0_3 = arith.constant 0 : index
    %1 = vector.load %arg3[%c0_1, %c0_2, %c0_3] : memref<1x8x128xf32, #tpu.memory_space<vmem>>, vector<1x8x128xf32>
    %2 = vector.shape_cast %1 : vector<1x8x128xf32> to vector<8x128xf32>
    %3 = arith.truncf %2 : vector<8x128xf32> to vector<8x128xbf16>
    %cst = arith.constant dense<0.000000e+00> : vector<32x128xf32>
    %4 = tpu.matmul %0, %3, %cst {dimension_numbers = #tpu.dot_dimension_numbers<[1], [0], [0], [1], [0, 0, 1, 1], [], []>} : vector<32x8xbf16>, vector<8x128xbf16>, vector<32x128xf32> -> vector<32x128xf32>
    %c0_4 = arith.constant 0 : index
    %c0_5 = arith.constant 0 : index
    %c0_6 = arith.constant 0 : index
    %5 = vector.load %arg4[%c0_4, %c0_5, %c0_6] : memref<1x1x1xf32, #tpu.memory_space<vmem>>, vector<1x1x1xf32>
    %6 = vector.shape_cast %5 : vector<1x1x1xf32> to vector<1x1xf32>
    %7 = vector.broadcast %6 : vector<1x1xf32> to vector<32x128xf32>
    %8 = arith.mulf %4, %7 : vector<32x128xf32>
    %c0_7 = arith.constant 0 : index
    %c0_8 = arith.constant 0 : index
    %c0_9 = arith.constant 0 : index
    %9 = vector.load %arg5[%c0_7, %c0_8, %c0_9] : memref<1x1x1xf32, #tpu.memory_space<vmem>>, vector<1x1x1xf32>
    %10 = vector.shape_cast %9 : vector<1x1x1xf32> to vector<1x1xf32>
    %11 = vector.broadcast %10 : vector<1x1xf32> to vector<32x128xf32>
    %12 = arith.addf %8, %11 : vector<32x128xf32>
    %c0_10 = arith.constant 0 : index
    %c0_11 = arith.constant 0 : index
    %c0_12 = arith.constant 0 : index
    %13 = vector.load %arg6[%c0_10, %c0_11, %c0_12] : memref<1x32x128xf32, #tpu.memory_space<vmem>>, vector<1x32x128xf32>
    %14 = vector.shape_cast %13 : vector<1x32x128xf32> to vector<32x128xf32>
    %15 = vector.shape_cast %12 : vector<32x128xf32> to vector<1x32x128xf32>
    tpu.vector_store %arg6[%c0_10, %c0_11, %c0_12], %15 {strides = array<i32>} : memref<1x32x128xf32, #tpu.memory_space<vmem>>, vector<1x32x128xf32>,
    return
  }
  func.func @transform_0(%arg0: i32, %arg1: i32) -> (i32, i32) {
    %c0_i32 = arith.constant 0 : i32
    %c0_i32_0 = arith.constant 0 : i32
    %c0_i32_1 = arith.constant 0 : i32
    return %c0_i32, %c0_i32_0 : i32, i32
  }
  func.func @transform_1(%arg0: i32, %arg1: i32) -> (i32, i32, i32) {
    %c0_i32 = arith.constant 0 : i32
    %c0_i32_0 = arith.constant 0 : i32
    return %arg0, %c0_i32, %arg1 : i32, i32, i32
  }
  func.func @transform_2(%arg0: i32, %arg1: i32) -> (i32, i32, i32) {
    %c0_i32 = arith.constant 0 : i32
    %c0_i32_0 = arith.constant 0 : i32
    %c0_i32_1 = arith.constant 0 : i32
    %c0_i32_2 = arith.constant 0 : i32
    return %c0_i32, %c0_i32_0, %c0_i32_1 : i32, i32, i32
  }
  func.func @transform_3(%arg0: i32, %arg1: i32) -> (i32, i32, i32) {
    %c0_i32 = arith.constant 0 : i32
    %c0_i32_0 = arith.constant 0 : i32
    %c0_i32_1 = arith.constant 0 : i32
    %c0_i32_2 = arith.constant 0 : i32
    return %c0_i32, %c0_i32_0, %c0_i32_1 : i32, i32, i32
  }
  func.func @transform_4(%arg0: i32, %arg1: i32) -> (i32, i32, i32) {
    %c0_i32 = arith.constant 0 : i32
    %c0_i32_0 = arith.constant 0 : i32
    return %arg0, %c0_i32, %arg1 : i32, i32, i32
  }
}

module attributes {stable_mosaic.version = 11 : i64} {
  func.func @_fm_matmul_kernel(%arg0: i32, %arg1: i32, %arg2: memref<16x16xbf16, #tpu.memory_space<vmem>>, %arg3: memref<1x16x128xf32, #tpu.memory_space<vmem>>, %arg4: memref<1x1x1xf32, #tpu.memory_space<vmem>>, %arg5: memref<1x16x1xf32, #tpu.memory_space<vmem>>, %arg6: memref<1x16x128xf32, #tpu.memory_space<vmem>>) attributes {dimension_semantics = [#tpu.dimension_semantics<parallel>, #tpu.dimension_semantics<parallel>], iteration_bounds = array<i64: 4, 1>, scalar_prefetch = 0 : i64, scratch_operands = 0 : i64, tpu.core_type = #tpu.core_type<tc>, window_params = [{pipeline_mode = #tpu.pipeline_mode<synchronous>, transform_indices = @transform_0, window_bounds = array<i64: 16, 16>}, {transform_indices = @transform_1, window_bounds = array<i64: 1, 16, 128>}, {pipeline_mode = #tpu.pipeline_mode<synchronous>, transform_indices = @transform_2, window_bounds = array<i64: 1, 1, 1>}, {pipeline_mode = #tpu.pipeline_mode<synchronous>, transform_indices = @transform_3, window_bounds = array<i64: 1, 16, 1>}, {transform_indices = @transform_4, window_bounds = array<i64: 1, 16, 128>}]} {
    %c0 = arith.constant 0 : index
    %c0_0 = arith.constant 0 : index
    %0 = vector.load %arg2[%c0, %c0_0] : memref<16x16xbf16, #tpu.memory_space<vmem>>, vector<16x16xbf16>
    %c0_1 = arith.constant 0 : index
    %c0_2 = arith.constant 0 : index
    %c0_3 = arith.constant 0 : index
    %1 = vector.load %arg3[%c0_1, %c0_2, %c0_3] : memref<1x16x128xf32, #tpu.memory_space<vmem>>, vector<1x16x128xf32>
    %2 = vector.shape_cast %1 : vector<1x16x128xf32> to vector<16x128xf32>
    %3 = arith.truncf %2 : vector<16x128xf32> to vector<16x128xbf16>
    %cst = arith.constant dense<0.000000e+00> : vector<16x128xf32>
    %4 = tpu.matmul %0, %3, %cst {dimension_numbers = #tpu.dot_dimension_numbers<[1], [0], [0], [1], [0, 0, 1, 1], [], []>} : vector<16x16xbf16>, vector<16x128xbf16>, vector<16x128xf32> -> vector<16x128xf32>
    %c0_4 = arith.constant 0 : index
    %c0_5 = arith.constant 0 : index
    %c0_6 = arith.constant 0 : index
    %5 = vector.load %arg4[%c0_4, %c0_5, %c0_6] : memref<1x1x1xf32, #tpu.memory_space<vmem>>, vector<1x1x1xf32>
    %6 = vector.shape_cast %5 : vector<1x1x1xf32> to vector<1x1xf32>
    %7 = vector.broadcast %6 : vector<1x1xf32> to vector<16x128xf32>
    %8 = arith.mulf %4, %7 : vector<16x128xf32>
    %c0_7 = arith.constant 0 : index
    %c0_8 = arith.constant 0 : index
    %c0_9 = arith.constant 0 : index
    %9 = vector.load %arg5[%c0_7, %c0_8, %c0_9] : memref<1x16x1xf32, #tpu.memory_space<vmem>>, vector<1x16x1xf32>
    %10 = vector.shape_cast %9 : vector<1x16x1xf32> to vector<16x1xf32>
    %11 = vector.broadcast %10 : vector<16x1xf32> to vector<16x128xf32>
    %12 = arith.addf %8, %11 : vector<16x128xf32>
    %c0_10 = arith.constant 0 : index
    %c0_11 = arith.constant 0 : index
    %c0_12 = arith.constant 0 : index
    %13 = vector.load %arg6[%c0_10, %c0_11, %c0_12] : memref<1x16x128xf32, #tpu.memory_space<vmem>>, vector<1x16x128xf32>
    %14 = vector.shape_cast %13 : vector<1x16x128xf32> to vector<16x128xf32>
    %15 = vector.shape_cast %12 : vector<16x128xf32> to vector<1x16x128xf32>
    tpu.vector_store %arg6[%c0_10, %c0_11, %c0_12], %15 {strides = array<i32>} : memref<1x16x128xf32, #tpu.memory_space<vmem>>, vector<1x16x128xf32>,
    return
  }
  func.func @transform_0(%arg0: i32, %arg1: i32) -> (i32, i32) {
    %c0_i32 = arith.constant 0 : i32
    %c0_i32_0 = arith.constant 0 : i32
    %c0_i32_1 = arith.constant 0 : i32
    return %c0_i32, %c0_i32_0 : i32, i32
  }
  func.func @transform_1(%arg0: i32, %arg1: i32) -> (i32, i32, i32) {
    %c0_i32 = arith.constant 0 : i32
    %c0_i32_0 = arith.constant 0 : i32
    return %arg0, %c0_i32, %arg1 : i32, i32, i32
  }
  func.func @transform_2(%arg0: i32, %arg1: i32) -> (i32, i32, i32) {
    %c0_i32 = arith.constant 0 : i32
    %c0_i32_0 = arith.constant 0 : i32
    %c0_i32_1 = arith.constant 0 : i32
    %c0_i32_2 = arith.constant 0 : i32
    return %c0_i32, %c0_i32_0, %c0_i32_1 : i32, i32, i32
  }
  func.func @transform_3(%arg0: i32, %arg1: i32) -> (i32, i32, i32) {
    %c0_i32 = arith.constant 0 : i32
    %c0_i32_0 = arith.constant 0 : i32
    %c0_i32_1 = arith.constant 0 : i32
    %c0_i32_2 = arith.constant 0 : i32
    return %c0_i32, %c0_i32_0, %c0_i32_1 : i32, i32, i32
  }
  func.func @transform_4(%arg0: i32, %arg1: i32) -> (i32, i32, i32) {
    %c0_i32 = arith.constant 0 : i32
    %c0_i32_0 = arith.constant 0 : i32
    return %arg0, %c0_i32, %arg1 : i32, i32, i32
  }
}

module attributes {stable_mosaic.version = 11 : i64} {
  func.func @_attn_self_kernel(%arg0: i32, %arg1: memref<4x48x128xf32, #tpu.memory_space<vmem>>, %arg2: memref<4x16x128xf32, #tpu.memory_space<vmem>>) attributes {dimension_semantics = [#tpu.dimension_semantics<parallel>], iteration_bounds = array<i64: 1>, scalar_prefetch = 0 : i64, scratch_operands = 0 : i64, tpu.core_type = #tpu.core_type<tc>, window_params = [{transform_indices = @transform_0, window_bounds = array<i64: 4, 48, 128>}, {transform_indices = @transform_1, window_bounds = array<i64: 4, 16, 128>}]} {
    %c0 = arith.constant 0 : index
    %c0_0 = arith.constant 0 : index
    %c0_1 = arith.constant 0 : index
    %0 = vector.load %arg1[%c0, %c0_0, %c0_1] : memref<4x48x128xf32, #tpu.memory_space<vmem>>, vector<4x48x128xf32>
    %1 = vector.extract_strided_slice %0 {offsets = [0, 0, 0], sizes = [4, 16, 128], strides = [1, 1, 1]} : vector<4x48x128xf32> to vector<4x16x128xf32>
    %2 = vector.extract_strided_slice %0 {offsets = [0, 16, 0], sizes = [4, 32, 128], strides = [1, 1, 1]} : vector<4x48x128xf32> to vector<4x32x128xf32>
    %cst = arith.constant 0.353553385 : f32
    %3 = vector.broadcast %cst : f32 to vector<4x16x128xf32>
    %4 = arith.mulf %1, %3 : vector<4x16x128xf32>
    %5 = vector.extract_strided_slice %4 {offsets = [0, 0, 0], sizes = [4, 8, 128], strides = [1, 1, 1]} : vector<4x16x128xf32> to vector<4x8x128xf32>
    %6 = vector.extract_strided_slice %2 {offsets = [0, 0, 0], sizes = [4, 8, 128], strides = [1, 1, 1]} : vector<4x32x128xf32> to vector<4x8x128xf32>
    %7 = vector.extract_strided_slice %2 {offsets = [0, 16, 0], sizes = [4, 8, 128], strides = [1, 1, 1]} : vector<4x32x128xf32> to vector<4x8x128xf32>
    %cst_2 = arith.constant 0.000000e+00 : f32
    %8 = vector.broadcast %cst_2 : f32 to vector<4x4x128xf32>
    %9 = vector.extract_strided_slice %5 {offsets = [0, 0, 0], sizes = [4, 1, 128], strides = [1, 1, 1]} : vector<4x8x128xf32> to vector<4x1x128xf32>
    %10 = vector.shape_cast %9 : vector<4x1x128xf32> to vector<4x128xf32>
    %11 = vector.shape_cast %10 : vector<4x128xf32> to vector<4x1x128xf32>
    %12 = vector.extract_strided_slice %6 {offsets = [0, 0, 0], sizes = [4, 1, 128], strides = [1, 1, 1]} : vector<4x8x128xf32> to vector<4x1x128xf32>
    %13 = vector.shape_cast %12 : vector<4x1x128xf32> to vector<4x128xf32>
    %14 = vector.shape_cast %13 : vector<4x128xf32> to vector<1x4x128xf32>
    %15 = vector.broadcast %11 : vector<4x1x128xf32> to vector<4x4x128xf32>
    %16 = vector.broadcast %14 : vector<1x4x128xf32> to vector<4x4x128xf32>
    %17 = arith.mulf %15, %16 : vector<4x4x128xf32>
    %18 = arith.addf %8, %17 : vector<4x4x128xf32>
    %19 = vector.extract_strided_slice %5 {offsets = [0, 1, 0], sizes = [4, 1, 128], strides = [1, 1, 1]} : vector<4x8x128xf32> to vector<4x1x128xf32>
    %20 = vector.shape_cast %19 : vector<4x1x128xf32> to vector<4x128xf32>
    %21 = vector.shape_cast %20 : vector<4x128xf32> to vector<4x1x128xf32>
    %22 = vector.extract_strided_slice %6 {offsets = [0, 1, 0], sizes = [4, 1, 128], strides = [1, 1, 1]} : vector<4x8x128xf32> to vector<4x1x128xf32>
    %23 = vector.shape_cast %22 : vector<4x1x128xf32> to vector<4x128xf32>
    %24 = vector.shape_cast %23 : vector<4x128xf32> to vector<1x4x128xf32>
    %25 = vector.broadcast %21 : vector<4x1x128xf32> to vector<4x4x128xf32>
    %26 = vector.broadcast %24 : vector<1x4x128xf32> to vector<4x4x128xf32>
    %27 = arith.mulf %25, %26 : vector<4x4x128xf32>
    %28 = arith.addf %18, %27 : vector<4x4x128xf32>
    %29 = vector.extract_strided_slice %5 {offsets = [0, 2, 0], sizes = [4, 1, 128], strides = [1, 1, 1]} : vector<4x8x128xf32> to vector<4x1x128xf32>
    %30 = vector.shape_cast %29 : vector<4x1x128xf32> to vector<4x128xf32>
    %31 = vector.shape_cast %30 : vector<4x128xf32> to vector<4x1x128xf32>
    %32 = vector.extract_strided_slice %6 {offsets = [0, 2, 0], sizes = [4, 1, 128], strides = [1, 1, 1]} : vector<4x8x128xf32> to vector<4x1x128xf32>
    %33 = vector.shape_cast %32 : vector<4x1x128xf32> to vector<4x128xf32>
    %34 = vector.shape_cast %33 : vector<4x128xf32> to vector<1x4x128xf32>
    %35 = vector.broadcast %31 : vector<4x1x128xf32> to vector<4x4x128xf32>
    %36 = vector.broadcast %34 : vector<1x4x128xf32> to vector<4x4x128xf32>
    %37 = arith.mulf %35, %36 : vector<4x4x128xf32>
    %38 = arith.addf %28, %37 : vector<4x4x128xf32>
    %39 = vector.extract_strided_slice %5 {offsets = [0, 3, 0], sizes = [4, 1, 128], strides = [1, 1, 1]} : vector<4x8x128xf32> to vector<4x1x128xf32>
    %40 = vector.shape_cast %39 : vector<4x1x128xf32> to vector<4x128xf32>
    %41 = vector.shape_cast %40 : vector<4x128xf32> to vector<4x1x128xf32>
    %42 = vector.extract_strided_slice %6 {offsets = [0, 3, 0], sizes = [4, 1, 128], strides = [1, 1, 1]} : vector<4x8x128xf32> to vector<4x1x128xf32>
    %43 = vector.shape_cast %42 : vector<4x1x128xf32> to vector<4x128xf32>
    %44 = vector.shape_cast %43 : vector<4x128xf32> to vector<1x4x128xf32>
    %45 = vector.broadcast %41 : vector<4x1x128xf32> to vector<4x4x128xf32>
    %46 = vector.broadcast %44 : vector<1x4x128xf32> to vector<4x4x128xf32>
    %47 = arith.mulf %45, %46 : vector<4x4x128xf32>
    %48 = arith.addf %38, %47 : vector<4x4x128xf32>
    %49 = vector.extract_strided_slice %5 {offsets = [0, 4, 0], sizes = [4, 1, 128], strides = [1, 1, 1]} : vector<4x8x128xf32> to vector<4x1x128xf32>
    %50 = vector.shape_cast %49 : vector<4x1x128xf32> to vector<4x128xf32>
    %51 = vector.shape_cast %50 : vector<4x128xf32> to vector<4x1x128xf32>
    %52 = vector.extract_strided_slice %6 {offsets = [0, 4, 0], sizes = [4, 1, 128], strides = [1, 1, 1]} : vector<4x8x128xf32> to vector<4x1x128xf32>
    %53 = vector.shape_cast %52 : vector<4x1x128xf32> to vector<4x128xf32>
    %54 = vector.shape_cast %53 : vector<4x128xf32> to vector<1x4x128xf32>
    %55 = vector.broadcast %51 : vector<4x1x128xf32> to vector<4x4x128xf32>
    %56 = vector.broadcast %54 : vector<1x4x128xf32> to vector<4x4x128xf32>
    %57 = arith.mulf %55, %56 : vector<4x4x128xf32>
    %58 = arith.addf %48, %57 : vector<4x4x128xf32>
    %59 = vector.extract_strided_slice %5 {offsets = [0, 5, 0], sizes = [4, 1, 128], strides = [1, 1, 1]} : vector<4x8x128xf32> to vector<4x1x128xf32>
    %60 = vector.shape_cast %59 : vector<4x1x128xf32> to vector<4x128xf32>
    %61 = vector.shape_cast %60 : vector<4x128xf32> to vector<4x1x128xf32>
    %62 = vector.extract_strided_slice %6 {offsets = [0, 5, 0], sizes = [4, 1, 128], strides = [1, 1, 1]} : vector<4x8x128xf32> to vector<4x1x128xf32>
    %63 = vector.shape_cast %62 : vector<4x1x128xf32> to vector<4x128xf32>
    %64 = vector.shape_cast %63 : vector<4x128xf32> to vector<1x4x128xf32>
    %65 = vector.broadcast %61 : vector<4x1x128xf32> to vector<4x4x128xf32>
    %66 = vector.broadcast %64 : vector<1x4x128xf32> to vector<4x4x128xf32>
    %67 = arith.mulf %65, %66 : vector<4x4x128xf32>
    %68 = arith.addf %58, %67 : vector<4x4x128xf32>
    %69 = vector.extract_strided_slice %5 {offsets = [0, 6, 0], sizes = [4, 1, 128], strides = [1, 1, 1]} : vector<4x8x128xf32> to vector<4x1x128xf32>
    %70 = vector.shape_cast %69 : vector<4x1x128xf32> to vector<4x128xf32>
    %71 = vector.shape_cast %70 : vector<4x128xf32> to vector<4x1x128xf32>
    %72 = vector.extract_strided_slice %6 {offsets = [0, 6, 0], sizes = [4, 1, 128], strides = [1, 1, 1]} : vector<4x8x128xf32> to vector<4x1x128xf32>
    %73 = vector.shape_cast %72 : vector<4x1x128xf32> to vector<4x128xf32>
    %74 = vector.shape_cast %73 : vector<4x128xf32> to vector<1x4x128xf32>
    %75 = vector.broadcast %71 : vector<4x1x128xf32> to vector<4x4x128xf32>
    %76 = vector.broadcast %74 : vector<1x4x128xf32> to vector<4x4x128xf32>
    %77 = arith.mulf %75, %76 : vector<4x4x128xf32>
    %78 = arith.addf %68, %77 : vector<4x4x128xf32>
    %79 = vector.extract_strided_slice %5 {offsets = [0, 7, 0], sizes = [4, 1, 128], strides = [1, 1, 1]} : vector<4x8x128xf32> to vector<4x1x128xf32>
    %80 = vector.shape_cast %79 : vector<4x1x128xf32> to vector<4x128xf32>
    %81 = vector.shape_cast %80 : vector<4x128xf32> to vector<4x1x128xf32>
    %82 = vector.extract_strided_slice %6 {offsets = [0, 7, 0], sizes = [4, 1, 128], strides = [1, 1, 1]} : vector<4x8x128xf32> to vector<4x1x128xf32>
    %83 = vector.shape_cast %82 : vector<4x1x128xf32> to vector<4x128xf32>
    %84 = vector.shape_cast %83 : vector<4x128xf32> to vector<1x4x128xf32>
    %85 = vector.broadcast %81 : vector<4x1x128xf32> to vector<4x4x128xf32>
    %86 = vector.broadcast %84 : vector<1x4x128xf32> to vector<4x4x128xf32>
    %87 = arith.mulf %85, %86 : vector<4x4x128xf32>
    %88 = arith.addf %78, %87 : vector<4x4x128xf32>
    %cst_3 = arith.constant dense<0xFF800000> : vector<4x128xf32>
    %89 = vector.multi_reduction <maximumf>, %88, %cst_3 [1] : vector<4x4x128xf32> to vector<4x128xf32>
    %90 = vector.shape_cast %89 : vector<4x128xf32> to vector<4x1x128xf32>
    %91 = vector.broadcast %90 : vector<4x1x128xf32> to vector<4x4x128xf32>
    %92 = arith.subf %88, %91 : vector<4x4x128xf32>
    %93 = math.exp %92 : vector<4x4x128xf32>
    %cst_4 = arith.constant dense<0.000000e+00> : vector<4x128xf32>
    %94 = vector.multi_reduction <add>, %93, %cst_4 [1] : vector<4x4x128xf32> to vector<4x128xf32>
    %95 = vector.shape_cast %94 : vector<4x128xf32> to vector<4x1x128xf32>
    %96 = tpu.reciprocal %95 {approx = true} : vector<4x1x128xf32> -> vector<4x1x128xf32>
    %97 = vector.broadcast %96 : vector<4x1x128xf32> to vector<4x4x128xf32>
    %98 = arith.mulf %93, %97 : vector<4x4x128xf32>
    %cst_5 = arith.constant 0.000000e+00 : f32
    %99 = vector.broadcast %cst_5 : f32 to vector<4x8x128xf32>
    %100 = vector.extract_strided_slice %98 {offsets = [0, 0, 0], sizes = [4, 1, 128], strides = [1, 1, 1]} : vector<4x4x128xf32> to vector<4x1x128xf32>
    %101 = vector.shape_cast %100 : vector<4x1x128xf32> to vector<4x128xf32>
    %102 = vector.shape_cast %101 : vector<4x128xf32> to vector<4x1x128xf32>
    %103 = vector.extract_strided_slice %7 {offsets = [0, 0, 0], sizes = [1, 8, 128], strides = [1, 1, 1]} : vector<4x8x128xf32> to vector<1x8x128xf32>
    %104 = vector.shape_cast %103 : vector<1x8x128xf32> to vector<8x128xf32>
    %105 = vector.shape_cast %104 : vector<8x128xf32> to vector<1x8x128xf32>
    %106 = vector.broadcast %102 : vector<4x1x128xf32> to vector<4x8x128xf32>
    %107 = vector.broadcast %105 : vector<1x8x128xf32> to vector<4x8x128xf32>
    %108 = arith.mulf %106, %107 : vector<4x8x128xf32>
    %109 = arith.addf %99, %108 : vector<4x8x128xf32>
    %110 = vector.extract_strided_slice %98 {offsets = [0, 1, 0], sizes = [4, 1, 128], strides = [1, 1, 1]} : vector<4x4x128xf32> to vector<4x1x128xf32>
    %111 = vector.shape_cast %110 : vector<4x1x128xf32> to vector<4x128xf32>
    %112 = vector.shape_cast %111 : vector<4x128xf32> to vector<4x1x128xf32>
    %113 = vector.extract_strided_slice %7 {offsets = [1, 0, 0], sizes = [1, 8, 128], strides = [1, 1, 1]} : vector<4x8x128xf32> to vector<1x8x128xf32>
    %114 = vector.shape_cast %113 : vector<1x8x128xf32> to vector<8x128xf32>
    %115 = vector.shape_cast %114 : vector<8x128xf32> to vector<1x8x128xf32>
    %116 = vector.broadcast %112 : vector<4x1x128xf32> to vector<4x8x128xf32>
    %117 = vector.broadcast %115 : vector<1x8x128xf32> to vector<4x8x128xf32>
    %118 = arith.mulf %116, %117 : vector<4x8x128xf32>
    %119 = arith.addf %109, %118 : vector<4x8x128xf32>
    %120 = vector.extract_strided_slice %98 {offsets = [0, 2, 0], sizes = [4, 1, 128], strides = [1, 1, 1]} : vector<4x4x128xf32> to vector<4x1x128xf32>
    %121 = vector.shape_cast %120 : vector<4x1x128xf32> to vector<4x128xf32>
    %122 = vector.shape_cast %121 : vector<4x128xf32> to vector<4x1x128xf32>
    %123 = vector.extract_strided_slice %7 {offsets = [2, 0, 0], sizes = [1, 8, 128], strides = [1, 1, 1]} : vector<4x8x128xf32> to vector<1x8x128xf32>
    %124 = vector.shape_cast %123 : vector<1x8x128xf32> to vector<8x128xf32>
    %125 = vector.shape_cast %124 : vector<8x128xf32> to vector<1x8x128xf32>
    %126 = vector.broadcast %122 : vector<4x1x128xf32> to vector<4x8x128xf32>
    %127 = vector.broadcast %125 : vector<1x8x128xf32> to vector<4x8x128xf32>
    %128 = arith.mulf %126, %127 : vector<4x8x128xf32>
    %129 = arith.addf %119, %128 : vector<4x8x128xf32>
    %130 = vector.extract_strided_slice %98 {offsets = [0, 3, 0], sizes = [4, 1, 128], strides = [1, 1, 1]} : vector<4x4x128xf32> to vector<4x1x128xf32>
    %131 = vector.shape_cast %130 : vector<4x1x128xf32> to vector<4x128xf32>
    %132 = vector.shape_cast %131 : vector<4x128xf32> to vector<4x1x128xf32>
    %133 = vector.extract_strided_slice %7 {offsets = [3, 0, 0], sizes = [1, 8, 128], strides = [1, 1, 1]} : vector<4x8x128xf32> to vector<1x8x128xf32>
    %134 = vector.shape_cast %133 : vector<1x8x128xf32> to vector<8x128xf32>
    %135 = vector.shape_cast %134 : vector<8x128xf32> to vector<1x8x128xf32>
    %136 = vector.broadcast %132 : vector<4x1x128xf32> to vector<4x8x128xf32>
    %137 = vector.broadcast %135 : vector<1x8x128xf32> to vector<4x8x128xf32>
    %138 = arith.mulf %136, %137 : vector<4x8x128xf32>
    %139 = arith.addf %129, %138 : vector<4x8x128xf32>
    %c0_6 = arith.constant 0 : index
    %c0_7 = arith.constant 0 : index
    %c0_8 = arith.constant 0 : index
    %140 = vector.load %arg2[%c0_6, %c0_7, %c0_8] : memref<4x16x128xf32, #tpu.memory_space<vmem>>, vector<4x8x128xf32>
    tpu.vector_store %arg2[%c0_6, %c0_7, %c0_8], %139 {strides = array<i32>} : memref<4x16x128xf32, #tpu.memory_space<vmem>>, vector<4x8x128xf32>,
    %141 = vector.extract_strided_slice %4 {offsets = [0, 8, 0], sizes = [4, 8, 128], strides = [1, 1, 1]} : vector<4x16x128xf32> to vector<4x8x128xf32>
    %142 = vector.extract_strided_slice %2 {offsets = [0, 8, 0], sizes = [4, 8, 128], strides = [1, 1, 1]} : vector<4x32x128xf32> to vector<4x8x128xf32>
    %143 = vector.extract_strided_slice %2 {offsets = [0, 24, 0], sizes = [4, 8, 128], strides = [1, 1, 1]} : vector<4x32x128xf32> to vector<4x8x128xf32>
    %cst_9 = arith.constant 0.000000e+00 : f32
    %144 = vector.broadcast %cst_9 : f32 to vector<4x4x128xf32>
    %145 = vector.extract_strided_slice %141 {offsets = [0, 0, 0], sizes = [4, 1, 128], strides = [1, 1, 1]} : vector<4x8x128xf32> to vector<4x1x128xf32>
    %146 = vector.shape_cast %145 : vector<4x1x128xf32> to vector<4x128xf32>
    %147 = vector.shape_cast %146 : vector<4x128xf32> to vector<4x1x128xf32>
    %148 = vector.extract_strided_slice %142 {offsets = [0, 0, 0], sizes = [4, 1, 128], strides = [1, 1, 1]} : vector<4x8x128xf32> to vector<4x1x128xf32>
    %149 = vector.shape_cast %148 : vector<4x1x128xf32> to vector<4x128xf32>
    %150 = vector.shape_cast %149 : vector<4x128xf32> to vector<1x4x128xf32>
    %151 = vector.broadcast %147 : vector<4x1x128xf32> to vector<4x4x128xf32>
    %152 = vector.broadcast %150 : vector<1x4x128xf32> to vector<4x4x128xf32>
    %153 = arith.mulf %151, %152 : vector<4x4x128xf32>
    %154 = arith.addf %144, %153 : vector<4x4x128xf32>
    %155 = vector.extract_strided_slice %141 {offsets = [0, 1, 0], sizes = [4, 1, 128], strides = [1, 1, 1]} : vector<4x8x128xf32> to vector<4x1x128xf32>
    %156 = vector.shape_cast %155 : vector<4x1x128xf32> to vector<4x128xf32>
    %157 = vector.shape_cast %156 : vector<4x128xf32> to vector<4x1x128xf32>
    %158 = vector.extract_strided_slice %142 {offsets = [0, 1, 0], sizes = [4, 1, 128], strides = [1, 1, 1]} : vector<4x8x128xf32> to vector<4x1x128xf32>
    %159 = vector.shape_cast %158 : vector<4x1x128xf32> to vector<4x128xf32>
    %160 = vector.shape_cast %159 : vector<4x128xf32> to vector<1x4x128xf32>
    %161 = vector.broadcast %157 : vector<4x1x128xf32> to vector<4x4x128xf32>
    %162 = vector.broadcast %160 : vector<1x4x128xf32> to vector<4x4x128xf32>
    %163 = arith.mulf %161, %162 : vector<4x4x128xf32>
    %164 = arith.addf %154, %163 : vector<4x4x128xf32>
    %165 = vector.extract_strided_slice %141 {offsets = [0, 2, 0], sizes = [4, 1, 128], strides = [1, 1, 1]} : vector<4x8x128xf32> to vector<4x1x128xf32>
    %166 = vector.shape_cast %165 : vector<4x1x128xf32> to vector<4x128xf32>
    %167 = vector.shape_cast %166 : vector<4x128xf32> to vector<4x1x128xf32>
    %168 = vector.extract_strided_slice %142 {offsets = [0, 2, 0], sizes = [4, 1, 128], strides = [1, 1, 1]} : vector<4x8x128xf32> to vector<4x1x128xf32>
    %169 = vector.shape_cast %168 : vector<4x1x128xf32> to vector<4x128xf32>
    %170 = vector.shape_cast %169 : vector<4x128xf32> to vector<1x4x128xf32>
    %171 = vector.broadcast %167 : vector<4x1x128xf32> to vector<4x4x128xf32>
    %172 = vector.broadcast %170 : vector<1x4x128xf32> to vector<4x4x128xf32>
    %173 = arith.mulf %171, %172 : vector<4x4x128xf32>
    %174 = arith.addf %164, %173 : vector<4x4x128xf32>
    %175 = vector.extract_strided_slice %141 {offsets = [0, 3, 0], sizes = [4, 1, 128], strides = [1, 1, 1]} : vector<4x8x128xf32> to vector<4x1x128xf32>
    %176 = vector.shape_cast %175 : vector<4x1x128xf32> to vector<4x128xf32>
    %177 = vector.shape_cast %176 : vector<4x128xf32> to vector<4x1x128xf32>
    %178 = vector.extract_strided_slice %142 {offsets = [0, 3, 0], sizes = [4, 1, 128], strides = [1, 1, 1]} : vector<4x8x128xf32> to vector<4x1x128xf32>
    %179 = vector.shape_cast %178 : vector<4x1x128xf32> to vector<4x128xf32>
    %180 = vector.shape_cast %179 : vector<4x128xf32> to vector<1x4x128xf32>
    %181 = vector.broadcast %177 : vector<4x1x128xf32> to vector<4x4x128xf32>
    %182 = vector.broadcast %180 : vector<1x4x128xf32> to vector<4x4x128xf32>
    %183 = arith.mulf %181, %182 : vector<4x4x128xf32>
    %184 = arith.addf %174, %183 : vector<4x4x128xf32>
    %185 = vector.extract_strided_slice %141 {offsets = [0, 4, 0], sizes = [4, 1, 128], strides = [1, 1, 1]} : vector<4x8x128xf32> to vector<4x1x128xf32>
    %186 = vector.shape_cast %185 : vector<4x1x128xf32> to vector<4x128xf32>
    %187 = vector.shape_cast %186 : vector<4x128xf32> to vector<4x1x128xf32>
    %188 = vector.extract_strided_slice %142 {offsets = [0, 4, 0], sizes = [4, 1, 128], strides = [1, 1, 1]} : vector<4x8x128xf32> to vector<4x1x128xf32>
    %189 = vector.shape_cast %188 : vector<4x1x128xf32> to vector<4x128xf32>
    %190 = vector.shape_cast %189 : vector<4x128xf32> to vector<1x4x128xf32>
    %191 = vector.broadcast %187 : vector<4x1x128xf32> to vector<4x4x128xf32>
    %192 = vector.broadcast %190 : vector<1x4x128xf32> to vector<4x4x128xf32>
    %193 = arith.mulf %191, %192 : vector<4x4x128xf32>
    %194 = arith.addf %184, %193 : vector<4x4x128xf32>
    %195 = vector.extract_strided_slice %141 {offsets = [0, 5, 0], sizes = [4, 1, 128], strides = [1, 1, 1]} : vector<4x8x128xf32> to vector<4x1x128xf32>
    %196 = vector.shape_cast %195 : vector<4x1x128xf32> to vector<4x128xf32>
    %197 = vector.shape_cast %196 : vector<4x128xf32> to vector<4x1x128xf32>
    %198 = vector.extract_strided_slice %142 {offsets = [0, 5, 0], sizes = [4, 1, 128], strides = [1, 1, 1]} : vector<4x8x128xf32> to vector<4x1x128xf32>
    %199 = vector.shape_cast %198 : vector<4x1x128xf32> to vector<4x128xf32>
    %200 = vector.shape_cast %199 : vector<4x128xf32> to vector<1x4x128xf32>
    %201 = vector.broadcast %197 : vector<4x1x128xf32> to vector<4x4x128xf32>
    %202 = vector.broadcast %200 : vector<1x4x128xf32> to vector<4x4x128xf32>
    %203 = arith.mulf %201, %202 : vector<4x4x128xf32>
    %204 = arith.addf %194, %203 : vector<4x4x128xf32>
    %205 = vector.extract_strided_slice %141 {offsets = [0, 6, 0], sizes = [4, 1, 128], strides = [1, 1, 1]} : vector<4x8x128xf32> to vector<4x1x128xf32>
    %206 = vector.shape_cast %205 : vector<4x1x128xf32> to vector<4x128xf32>
    %207 = vector.shape_cast %206 : vector<4x128xf32> to vector<4x1x128xf32>
    %208 = vector.extract_strided_slice %142 {offsets = [0, 6, 0], sizes = [4, 1, 128], strides = [1, 1, 1]} : vector<4x8x128xf32> to vector<4x1x128xf32>
    %209 = vector.shape_cast %208 : vector<4x1x128xf32> to vector<4x128xf32>
    %210 = vector.shape_cast %209 : vector<4x128xf32> to vector<1x4x128xf32>
    %211 = vector.broadcast %207 : vector<4x1x128xf32> to vector<4x4x128xf32>
    %212 = vector.broadcast %210 : vector<1x4x128xf32> to vector<4x4x128xf32>
    %213 = arith.mulf %211, %212 : vector<4x4x128xf32>
    %214 = arith.addf %204, %213 : vector<4x4x128xf32>
    %215 = vector.extract_strided_slice %141 {offsets = [0, 7, 0], sizes = [4, 1, 128], strides = [1, 1, 1]} : vector<4x8x128xf32> to vector<4x1x128xf32>
    %216 = vector.shape_cast %215 : vector<4x1x128xf32> to vector<4x128xf32>
    %217 = vector.shape_cast %216 : vector<4x128xf32> to vector<4x1x128xf32>
    %218 = vector.extract_strided_slice %142 {offsets = [0, 7, 0], sizes = [4, 1, 128], strides = [1, 1, 1]} : vector<4x8x128xf32> to vector<4x1x128xf32>
    %219 = vector.shape_cast %218 : vector<4x1x128xf32> to vector<4x128xf32>
    %220 = vector.shape_cast %219 : vector<4x128xf32> to vector<1x4x128xf32>
    %221 = vector.broadcast %217 : vector<4x1x128xf32> to vector<4x4x128xf32>
    %222 = vector.broadcast %220 : vector<1x4x128xf32> to vector<4x4x128xf32>
    %223 = arith.mulf %221, %222 : vector<4x4x128xf32>
    %224 = arith.addf %214, %223 : vector<4x4x128xf32>
    %cst_10 = arith.constant dense<0xFF800000> : vector<4x128xf32>
    %225 = vector.multi_reduction <maximumf>, %224, %cst_10 [1] : vector<4x4x128xf32> to vector<4x128xf32>
    %226 = vector.shape_cast %225 : vector<4x128xf32> to vector<4x1x128xf32>
    %227 = vector.broadcast %226 : vector<4x1x128xf32> to vector<4x4x128xf32>
    %228 = arith.subf %224, %227 : vector<4x4x128xf32>
    %229 = math.exp %228 : vector<4x4x128xf32>
    %cst_11 = arith.constant dense<0.000000e+00> : vector<4x128xf32>
    %230 = vector.multi_reduction <add>, %229, %cst_11 [1] : vector<4x4x128xf32> to vector<4x128xf32>
    %231 = vector.shape_cast %230 : vector<4x128xf32> to vector<4x1x128xf32>
    %232 = tpu.reciprocal %231 {approx = true} : vector<4x1x128xf32> -> vector<4x1x128xf32>
    %233 = vector.broadcast %232 : vector<4x1x128xf32> to vector<4x4x128xf32>
    %234 = arith.mulf %229, %233 : vector<4x4x128xf32>
    %cst_12 = arith.constant 0.000000e+00 : f32
    %235 = vector.broadcast %cst_12 : f32 to vector<4x8x128xf32>
    %236 = vector.extract_strided_slice %234 {offsets = [0, 0, 0], sizes = [4, 1, 128], strides = [1, 1, 1]} : vector<4x4x128xf32> to vector<4x1x128xf32>
    %237 = vector.shape_cast %236 : vector<4x1x128xf32> to vector<4x128xf32>
    %238 = vector.shape_cast %237 : vector<4x128xf32> to vector<4x1x128xf32>
    %239 = vector.extract_strided_slice %143 {offsets = [0, 0, 0], sizes = [1, 8, 128], strides = [1, 1, 1]} : vector<4x8x128xf32> to vector<1x8x128xf32>
    %240 = vector.shape_cast %239 : vector<1x8x128xf32> to vector<8x128xf32>
    %241 = vector.shape_cast %240 : vector<8x128xf32> to vector<1x8x128xf32>
    %242 = vector.broadcast %238 : vector<4x1x128xf32> to vector<4x8x128xf32>
    %243 = vector.broadcast %241 : vector<1x8x128xf32> to vector<4x8x128xf32>
    %244 = arith.mulf %242, %243 : vector<4x8x128xf32>
    %245 = arith.addf %235, %244 : vector<4x8x128xf32>
    %246 = vector.extract_strided_slice %234 {offsets = [0, 1, 0], sizes = [4, 1, 128], strides = [1, 1, 1]} : vector<4x4x128xf32> to vector<4x1x128xf32>
    %247 = vector.shape_cast %246 : vector<4x1x128xf32> to vector<4x128xf32>
    %248 = vector.shape_cast %247 : vector<4x128xf32> to vector<4x1x128xf32>
    %249 = vector.extract_strided_slice %143 {offsets = [1, 0, 0], sizes = [1, 8, 128], strides = [1, 1, 1]} : vector<4x8x128xf32> to vector<1x8x128xf32>
    %250 = vector.shape_cast %249 : vector<1x8x128xf32> to vector<8x128xf32>
    %251 = vector.shape_cast %250 : vector<8x128xf32> to vector<1x8x128xf32>
    %252 = vector.broadcast %248 : vector<4x1x128xf32> to vector<4x8x128xf32>
    %253 = vector.broadcast %251 : vector<1x8x128xf32> to vector<4x8x128xf32>
    %254 = arith.mulf %252, %253 : vector<4x8x128xf32>
    %255 = arith.addf %245, %254 : vector<4x8x128xf32>
    %256 = vector.extract_strided_slice %234 {offsets = [0, 2, 0], sizes = [4, 1, 128], strides = [1, 1, 1]} : vector<4x4x128xf32> to vector<4x1x128xf32>
    %257 = vector.shape_cast %256 : vector<4x1x128xf32> to vector<4x128xf32>
    %258 = vector.shape_cast %257 : vector<4x128xf32> to vector<4x1x128xf32>
    %259 = vector.extract_strided_slice %143 {offsets = [2, 0, 0], sizes = [1, 8, 128], strides = [1, 1, 1]} : vector<4x8x128xf32> to vector<1x8x128xf32>
    %260 = vector.shape_cast %259 : vector<1x8x128xf32> to vector<8x128xf32>
    %261 = vector.shape_cast %260 : vector<8x128xf32> to vector<1x8x128xf32>
    %262 = vector.broadcast %258 : vector<4x1x128xf32> to vector<4x8x128xf32>
    %263 = vector.broadcast %261 : vector<1x8x128xf32> to vector<4x8x128xf32>
    %264 = arith.mulf %262, %263 : vector<4x8x128xf32>
    %265 = arith.addf %255, %264 : vector<4x8x128xf32>
    %266 = vector.extract_strided_slice %234 {offsets = [0, 3, 0], sizes = [4, 1, 128], strides = [1, 1, 1]} : vector<4x4x128xf32> to vector<4x1x128xf32>
    %267 = vector.shape_cast %266 : vector<4x1x128xf32> to vector<4x128xf32>
    %268 = vector.shape_cast %267 : vector<4x128xf32> to vector<4x1x128xf32>
    %269 = vector.extract_strided_slice %143 {offsets = [3, 0, 0], sizes = [1, 8, 128], strides = [1, 1, 1]} : vector<4x8x128xf32> to vector<1x8x128xf32>
    %270 = vector.shape_cast %269 : vector<1x8x128xf32> to vector<8x128xf32>
    %271 = vector.shape_cast %270 : vector<8x128xf32> to vector<1x8x128xf32>
    %272 = vector.broadcast %268 : vector<4x1x128xf32> to vector<4x8x128xf32>
    %273 = vector.broadcast %271 : vector<1x8x128xf32> to vector<4x8x128xf32>
    %274 = arith.mulf %272, %273 : vector<4x8x128xf32>
    %275 = arith.addf %265, %274 : vector<4x8x128xf32>
    %c0_13 = arith.constant 0 : index
    %c8 = arith.constant 8 : index
    %c0_14 = arith.constant 0 : index
    %276 = vector.load %arg2[%c0_13, %c8, %c0_14] : memref<4x16x128xf32, #tpu.memory_space<vmem>>, vector<4x8x128xf32>
    tpu.vector_store %arg2[%c0_13, %c8, %c0_14], %275 {strides = array<i32>} : memref<4x16x128xf32, #tpu.memory_space<vmem>>, vector<4x8x128xf32>,
    return
  }
  func.func @transform_0(%arg0: i32) -> (i32, i32, i32) {
    %c0_i32 = arith.constant 0 : i32
    %c0_i32_0 = arith.constant 0 : i32
    %c0_i32_1 = arith.constant 0 : i32
    return %c0_i32, %c0_i32_0, %arg0 : i32, i32, i32
  }
  func.func @transform_1(%arg0: i32) -> (i32, i32, i32) {
    %c0_i32 = arith.constant 0 : i32
    %c0_i32_0 = arith.constant 0 : i32
    %c0_i32_1 = arith.constant 0 : i32
    return %c0_i32, %c0_i32_0, %arg0 : i32, i32, i32
  }
}

module attributes {stable_mosaic.version = 11 : i64} {
  func.func @_fm_matmul_kernel(%arg0: i32, %arg1: i32, %arg2: memref<48x16xbf16, #tpu.memory_space<vmem>>, %arg3: memref<1x16x128xf32, #tpu.memory_space<vmem>>, %arg4: memref<1x1x1xf32, #tpu.memory_space<vmem>>, %arg5: memref<1x48x1xf32, #tpu.memory_space<vmem>>, %arg6: memref<1x48x128xf32, #tpu.memory_space<vmem>>) attributes {dimension_semantics = [#tpu.dimension_semantics<parallel>, #tpu.dimension_semantics<parallel>], iteration_bounds = array<i64: 4, 1>, scalar_prefetch = 0 : i64, scratch_operands = 0 : i64, tpu.core_type = #tpu.core_type<tc>, window_params = [{pipeline_mode = #tpu.pipeline_mode<synchronous>, transform_indices = @transform_0, window_bounds = array<i64: 48, 16>}, {transform_indices = @transform_1, window_bounds = array<i64: 1, 16, 128>}, {pipeline_mode = #tpu.pipeline_mode<synchronous>, transform_indices = @transform_2, window_bounds = array<i64: 1, 1, 1>}, {pipeline_mode = #tpu.pipeline_mode<synchronous>, transform_indices = @transform_3, window_bounds = array<i64: 1, 48, 1>}, {transform_indices = @transform_4, window_bounds = array<i64: 1, 48, 128>}]} {
    %c0 = arith.constant 0 : index
    %c0_0 = arith.constant 0 : index
    %0 = vector.load %arg2[%c0, %c0_0] : memref<48x16xbf16, #tpu.memory_space<vmem>>, vector<48x16xbf16>
    %c0_1 = arith.constant 0 : index
    %c0_2 = arith.constant 0 : index
    %c0_3 = arith.constant 0 : index
    %1 = vector.load %arg3[%c0_1, %c0_2, %c0_3] : memref<1x16x128xf32, #tpu.memory_space<vmem>>, vector<1x16x128xf32>
    %2 = vector.shape_cast %1 : vector<1x16x128xf32> to vector<16x128xf32>
    %3 = arith.truncf %2 : vector<16x128xf32> to vector<16x128xbf16>
    %cst = arith.constant dense<0.000000e+00> : vector<48x128xf32>
    %4 = tpu.matmul %0, %3, %cst {dimension_numbers = #tpu.dot_dimension_numbers<[1], [0], [0], [1], [0, 0, 1, 1], [], []>} : vector<48x16xbf16>, vector<16x128xbf16>, vector<48x128xf32> -> vector<48x128xf32>
    %c0_4 = arith.constant 0 : index
    %c0_5 = arith.constant 0 : index
    %c0_6 = arith.constant 0 : index
    %5 = vector.load %arg4[%c0_4, %c0_5, %c0_6] : memref<1x1x1xf32, #tpu.memory_space<vmem>>, vector<1x1x1xf32>
    %6 = vector.shape_cast %5 : vector<1x1x1xf32> to vector<1x1xf32>
    %7 = vector.broadcast %6 : vector<1x1xf32> to vector<48x128xf32>
    %8 = arith.mulf %4, %7 : vector<48x128xf32>
    %c0_7 = arith.constant 0 : index
    %c0_8 = arith.constant 0 : index
    %c0_9 = arith.constant 0 : index
    %9 = vector.load %arg5[%c0_7, %c0_8, %c0_9] : memref<1x48x1xf32, #tpu.memory_space<vmem>>, vector<1x48x1xf32>
    %10 = vector.shape_cast %9 : vector<1x48x1xf32> to vector<48x1xf32>
    %11 = vector.broadcast %10 : vector<48x1xf32> to vector<48x128xf32>
    %12 = arith.addf %8, %11 : vector<48x128xf32>
    %c0_10 = arith.constant 0 : index
    %c0_11 = arith.constant 0 : index
    %c0_12 = arith.constant 0 : index
    %13 = vector.load %arg6[%c0_10, %c0_11, %c0_12] : memref<1x48x128xf32, #tpu.memory_space<vmem>>, vector<1x48x128xf32>
    %14 = vector.shape_cast %13 : vector<1x48x128xf32> to vector<48x128xf32>
    %15 = vector.shape_cast %12 : vector<48x128xf32> to vector<1x48x128xf32>
    tpu.vector_store %arg6[%c0_10, %c0_11, %c0_12], %15 {strides = array<i32>} : memref<1x48x128xf32, #tpu.memory_space<vmem>>, vector<1x48x128xf32>,
    return
  }
  func.func @transform_0(%arg0: i32, %arg1: i32) -> (i32, i32) {
    %c0_i32 = arith.constant 0 : i32
    %c0_i32_0 = arith.constant 0 : i32
    %c0_i32_1 = arith.constant 0 : i32
    return %c0_i32, %c0_i32_0 : i32, i32
  }
  func.func @transform_1(%arg0: i32, %arg1: i32) -> (i32, i32, i32) {
    %c0_i32 = arith.constant 0 : i32
    %c0_i32_0 = arith.constant 0 : i32
    return %arg0, %c0_i32, %arg1 : i32, i32, i32
  }
  func.func @transform_2(%arg0: i32, %arg1: i32) -> (i32, i32, i32) {
    %c0_i32 = arith.constant 0 : i32
    %c0_i32_0 = arith.constant 0 : i32
    %c0_i32_1 = arith.constant 0 : i32
    %c0_i32_2 = arith.constant 0 : i32
    return %c0_i32, %c0_i32_0, %c0_i32_1 : i32, i32, i32
  }
  func.func @transform_3(%arg0: i32, %arg1: i32) -> (i32, i32, i32) {
    %c0_i32 = arith.constant 0 : i32
    %c0_i32_0 = arith.constant 0 : i32
    %c0_i32_1 = arith.constant 0 : i32
    %c0_i32_2 = arith.constant 0 : i32
    return %c0_i32, %c0_i32_0, %c0_i32_1 : i32, i32, i32
  }
  func.func @transform_4(%arg0: i32, %arg1: i32) -> (i32, i32, i32) {
    %c0_i32 = arith.constant 0 : i32
    %c0_i32_0 = arith.constant 0 : i32
    return %arg0, %c0_i32, %arg1 : i32, i32, i32
  }
}

module attributes {stable_mosaic.version = 11 : i64} {
  func.func @_fm_matmul_kernel(%arg0: i32, %arg1: i32, %arg2: memref<16x16xbf16, #tpu.memory_space<vmem>>, %arg3: memref<1x16x128xf32, #tpu.memory_space<vmem>>, %arg4: memref<1x1x1xf32, #tpu.memory_space<vmem>>, %arg5: memref<1x16x1xf32, #tpu.memory_space<vmem>>, %arg6: memref<1x16x128xf32, #tpu.memory_space<vmem>>) attributes {dimension_semantics = [#tpu.dimension_semantics<parallel>, #tpu.dimension_semantics<parallel>], iteration_bounds = array<i64: 4, 1>, scalar_prefetch = 0 : i64, scratch_operands = 0 : i64, tpu.core_type = #tpu.core_type<tc>, window_params = [{pipeline_mode = #tpu.pipeline_mode<synchronous>, transform_indices = @transform_0, window_bounds = array<i64: 16, 16>}, {transform_indices = @transform_1, window_bounds = array<i64: 1, 16, 128>}, {pipeline_mode = #tpu.pipeline_mode<synchronous>, transform_indices = @transform_2, window_bounds = array<i64: 1, 1, 1>}, {pipeline_mode = #tpu.pipeline_mode<synchronous>, transform_indices = @transform_3, window_bounds = array<i64: 1, 16, 1>}, {transform_indices = @transform_4, window_bounds = array<i64: 1, 16, 128>}]} {
    %c0 = arith.constant 0 : index
    %c0_0 = arith.constant 0 : index
    %0 = vector.load %arg2[%c0, %c0_0] : memref<16x16xbf16, #tpu.memory_space<vmem>>, vector<16x16xbf16>
    %c0_1 = arith.constant 0 : index
    %c0_2 = arith.constant 0 : index
    %c0_3 = arith.constant 0 : index
    %1 = vector.load %arg3[%c0_1, %c0_2, %c0_3] : memref<1x16x128xf32, #tpu.memory_space<vmem>>, vector<1x16x128xf32>
    %2 = vector.shape_cast %1 : vector<1x16x128xf32> to vector<16x128xf32>
    %3 = arith.truncf %2 : vector<16x128xf32> to vector<16x128xbf16>
    %cst = arith.constant dense<0.000000e+00> : vector<16x128xf32>
    %4 = tpu.matmul %0, %3, %cst {dimension_numbers = #tpu.dot_dimension_numbers<[1], [0], [0], [1], [0, 0, 1, 1], [], []>} : vector<16x16xbf16>, vector<16x128xbf16>, vector<16x128xf32> -> vector<16x128xf32>
    %c0_4 = arith.constant 0 : index
    %c0_5 = arith.constant 0 : index
    %c0_6 = arith.constant 0 : index
    %5 = vector.load %arg4[%c0_4, %c0_5, %c0_6] : memref<1x1x1xf32, #tpu.memory_space<vmem>>, vector<1x1x1xf32>
    %6 = vector.shape_cast %5 : vector<1x1x1xf32> to vector<1x1xf32>
    %7 = vector.broadcast %6 : vector<1x1xf32> to vector<16x128xf32>
    %8 = arith.mulf %4, %7 : vector<16x128xf32>
    %c0_7 = arith.constant 0 : index
    %c0_8 = arith.constant 0 : index
    %c0_9 = arith.constant 0 : index
    %9 = vector.load %arg5[%c0_7, %c0_8, %c0_9] : memref<1x16x1xf32, #tpu.memory_space<vmem>>, vector<1x16x1xf32>
    %10 = vector.shape_cast %9 : vector<1x16x1xf32> to vector<16x1xf32>
    %11 = vector.broadcast %10 : vector<16x1xf32> to vector<16x128xf32>
    %12 = arith.addf %8, %11 : vector<16x128xf32>
    %cst_10 = arith.constant 0.000000e+00 : f32
    %13 = vector.broadcast %cst_10 : f32 to vector<16x128xf32>
    %14 = arith.maximumf %12, %13 : vector<16x128xf32>
    %c0_11 = arith.constant 0 : index
    %c0_12 = arith.constant 0 : index
    %c0_13 = arith.constant 0 : index
    %15 = vector.load %arg6[%c0_11, %c0_12, %c0_13] : memref<1x16x128xf32, #tpu.memory_space<vmem>>, vector<1x16x128xf32>
    %16 = vector.shape_cast %15 : vector<1x16x128xf32> to vector<16x128xf32>
    %17 = vector.shape_cast %14 : vector<16x128xf32> to vector<1x16x128xf32>
    tpu.vector_store %arg6[%c0_11, %c0_12, %c0_13], %17 {strides = array<i32>} : memref<1x16x128xf32, #tpu.memory_space<vmem>>, vector<1x16x128xf32>,
    return
  }
  func.func @transform_0(%arg0: i32, %arg1: i32) -> (i32, i32) {
    %c0_i32 = arith.constant 0 : i32
    %c0_i32_0 = arith.constant 0 : i32
    %c0_i32_1 = arith.constant 0 : i32
    return %c0_i32, %c0_i32_0 : i32, i32
  }
  func.func @transform_1(%arg0: i32, %arg1: i32) -> (i32, i32, i32) {
    %c0_i32 = arith.constant 0 : i32
    %c0_i32_0 = arith.constant 0 : i32
    return %arg0, %c0_i32, %arg1 : i32, i32, i32
  }
  func.func @transform_2(%arg0: i32, %arg1: i32) -> (i32, i32, i32) {
    %c0_i32 = arith.constant 0 : i32
    %c0_i32_0 = arith.constant 0 : i32
    %c0_i32_1 = arith.constant 0 : i32
    %c0_i32_2 = arith.constant 0 : i32
    return %c0_i32, %c0_i32_0, %c0_i32_1 : i32, i32, i32
  }
  func.func @transform_3(%arg0: i32, %arg1: i32) -> (i32, i32, i32) {
    %c0_i32 = arith.constant 0 : i32
    %c0_i32_0 = arith.constant 0 : i32
    %c0_i32_1 = arith.constant 0 : i32
    %c0_i32_2 = arith.constant 0 : i32
    return %c0_i32, %c0_i32_0, %c0_i32_1 : i32, i32, i32
  }
  func.func @transform_4(%arg0: i32, %arg1: i32) -> (i32, i32, i32) {
    %c0_i32 = arith.constant 0 : i32
    %c0_i32_0 = arith.constant 0 : i32
    return %arg0, %c0_i32, %arg1 : i32, i32, i32
  }
}

module attributes {stable_mosaic.version = 11 : i64} {
  func.func @_fm_matmul_kernel(%arg0: i32, %arg1: i32, %arg2: memref<32x16xbf16, #tpu.memory_space<vmem>>, %arg3: memref<1x16x128xf32, #tpu.memory_space<vmem>>, %arg4: memref<1x1x1xf32, #tpu.memory_space<vmem>>, %arg5: memref<1x32x1xf32, #tpu.memory_space<vmem>>, %arg6: memref<1x32x128xf32, #tpu.memory_space<vmem>>) attributes {dimension_semantics = [#tpu.dimension_semantics<parallel>, #tpu.dimension_semantics<parallel>], iteration_bounds = array<i64: 4, 1>, scalar_prefetch = 0 : i64, scratch_operands = 0 : i64, tpu.core_type = #tpu.core_type<tc>, window_params = [{pipeline_mode = #tpu.pipeline_mode<synchronous>, transform_indices = @transform_0, window_bounds = array<i64: 32, 16>}, {transform_indices = @transform_1, window_bounds = array<i64: 1, 16, 128>}, {pipeline_mode = #tpu.pipeline_mode<synchronous>, transform_indices = @transform_2, window_bounds = array<i64: 1, 1, 1>}, {pipeline_mode = #tpu.pipeline_mode<synchronous>, transform_indices = @transform_3, window_bounds = array<i64: 1, 32, 1>}, {transform_indices = @transform_4, window_bounds = array<i64: 1, 32, 128>}]} {
    %c0 = arith.constant 0 : index
    %c0_0 = arith.constant 0 : index
    %0 = vector.load %arg2[%c0, %c0_0] : memref<32x16xbf16, #tpu.memory_space<vmem>>, vector<32x16xbf16>
    %c0_1 = arith.constant 0 : index
    %c0_2 = arith.constant 0 : index
    %c0_3 = arith.constant 0 : index
    %1 = vector.load %arg3[%c0_1, %c0_2, %c0_3] : memref<1x16x128xf32, #tpu.memory_space<vmem>>, vector<1x16x128xf32>
    %2 = vector.shape_cast %1 : vector<1x16x128xf32> to vector<16x128xf32>
    %3 = arith.truncf %2 : vector<16x128xf32> to vector<16x128xbf16>
    %cst = arith.constant dense<0.000000e+00> : vector<32x128xf32>
    %4 = tpu.matmul %0, %3, %cst {dimension_numbers = #tpu.dot_dimension_numbers<[1], [0], [0], [1], [0, 0, 1, 1], [], []>} : vector<32x16xbf16>, vector<16x128xbf16>, vector<32x128xf32> -> vector<32x128xf32>
    %c0_4 = arith.constant 0 : index
    %c0_5 = arith.constant 0 : index
    %c0_6 = arith.constant 0 : index
    %5 = vector.load %arg4[%c0_4, %c0_5, %c0_6] : memref<1x1x1xf32, #tpu.memory_space<vmem>>, vector<1x1x1xf32>
    %6 = vector.shape_cast %5 : vector<1x1x1xf32> to vector<1x1xf32>
    %7 = vector.broadcast %6 : vector<1x1xf32> to vector<32x128xf32>
    %8 = arith.mulf %4, %7 : vector<32x128xf32>
    %c0_7 = arith.constant 0 : index
    %c0_8 = arith.constant 0 : index
    %c0_9 = arith.constant 0 : index
    %9 = vector.load %arg5[%c0_7, %c0_8, %c0_9] : memref<1x32x1xf32, #tpu.memory_space<vmem>>, vector<1x32x1xf32>
    %10 = vector.shape_cast %9 : vector<1x32x1xf32> to vector<32x1xf32>
    %11 = vector.broadcast %10 : vector<32x1xf32> to vector<32x128xf32>
    %12 = arith.addf %8, %11 : vector<32x128xf32>
    %c0_10 = arith.constant 0 : index
    %c0_11 = arith.constant 0 : index
    %c0_12 = arith.constant 0 : index
    %13 = vector.load %arg6[%c0_10, %c0_11, %c0_12] : memref<1x32x128xf32, #tpu.memory_space<vmem>>, vector<1x32x128xf32>
    %14 = vector.shape_cast %13 : vector<1x32x128xf32> to vector<32x128xf32>
    %15 = vector.shape_cast %12 : vector<32x128xf32> to vector<1x32x128xf32>
    tpu.vector_store %arg6[%c0_10, %c0_11, %c0_12], %15 {strides = array<i32>} : memref<1x32x128xf32, #tpu.memory_space<vmem>>, vector<1x32x128xf32>,
    return
  }
  func.func @transform_0(%arg0: i32, %arg1: i32) -> (i32, i32) {
    %c0_i32 = arith.constant 0 : i32
    %c0_i32_0 = arith.constant 0 : i32
    %c0_i32_1 = arith.constant 0 : i32
    return %c0_i32, %c0_i32_0 : i32, i32
  }
  func.func @transform_1(%arg0: i32, %arg1: i32) -> (i32, i32, i32) {
    %c0_i32 = arith.constant 0 : i32
    %c0_i32_0 = arith.constant 0 : i32
    return %arg0, %c0_i32, %arg1 : i32, i32, i32
  }
  func.func @transform_2(%arg0: i32, %arg1: i32) -> (i32, i32, i32) {
    %c0_i32 = arith.constant 0 : i32
    %c0_i32_0 = arith.constant 0 : i32
    %c0_i32_1 = arith.constant 0 : i32
    %c0_i32_2 = arith.constant 0 : i32
    return %c0_i32, %c0_i32_0, %c0_i32_1 : i32, i32, i32
  }
  func.func @transform_3(%arg0: i32, %arg1: i32) -> (i32, i32, i32) {
    %c0_i32 = arith.constant 0 : i32
    %c0_i32_0 = arith.constant 0 : i32
    %c0_i32_1 = arith.constant 0 : i32
    %c0_i32_2 = arith.constant 0 : i32
    return %c0_i32, %c0_i32_0, %c0_i32_1 : i32, i32, i32
  }
  func.func @transform_4(%arg0: i32, %arg1: i32) -> (i32, i32, i32) {
    %c0_i32 = arith.constant 0 : i32
    %c0_i32_0 = arith.constant 0 : i32
    return %arg0, %c0_i32, %arg1 : i32, i32, i32
  }
}

module attributes {stable_mosaic.version = 11 : i64} {
  func.func @_fm_matmul_kernel(%arg0: i32, %arg1: i32, %arg2: memref<48x16xbf16, #tpu.memory_space<vmem>>, %arg3: memref<1x16x128xf32, #tpu.memory_space<vmem>>, %arg4: memref<1x1x1xf32, #tpu.memory_space<vmem>>, %arg5: memref<1x48x1xf32, #tpu.memory_space<vmem>>, %arg6: memref<1x48x128xf32, #tpu.memory_space<vmem>>) attributes {dimension_semantics = [#tpu.dimension_semantics<parallel>, #tpu.dimension_semantics<parallel>], iteration_bounds = array<i64: 1, 1>, scalar_prefetch = 0 : i64, scratch_operands = 0 : i64, tpu.core_type = #tpu.core_type<tc>, window_params = [{pipeline_mode = #tpu.pipeline_mode<synchronous>, transform_indices = @transform_0, window_bounds = array<i64: 48, 16>}, {transform_indices = @transform_1, window_bounds = array<i64: 1, 16, 128>}, {pipeline_mode = #tpu.pipeline_mode<synchronous>, transform_indices = @transform_2, window_bounds = array<i64: 1, 1, 1>}, {pipeline_mode = #tpu.pipeline_mode<synchronous>, transform_indices = @transform_3, window_bounds = array<i64: 1, 48, 1>}, {transform_indices = @transform_4, window_bounds = array<i64: 1, 48, 128>}]} {
    %c0 = arith.constant 0 : index
    %c0_0 = arith.constant 0 : index
    %0 = vector.load %arg2[%c0, %c0_0] : memref<48x16xbf16, #tpu.memory_space<vmem>>, vector<48x16xbf16>
    %c0_1 = arith.constant 0 : index
    %c0_2 = arith.constant 0 : index
    %c0_3 = arith.constant 0 : index
    %1 = vector.load %arg3[%c0_1, %c0_2, %c0_3] : memref<1x16x128xf32, #tpu.memory_space<vmem>>, vector<1x16x128xf32>
    %2 = vector.shape_cast %1 : vector<1x16x128xf32> to vector<16x128xf32>
    %3 = arith.truncf %2 : vector<16x128xf32> to vector<16x128xbf16>
    %cst = arith.constant dense<0.000000e+00> : vector<48x128xf32>
    %4 = tpu.matmul %0, %3, %cst {dimension_numbers = #tpu.dot_dimension_numbers<[1], [0], [0], [1], [0, 0, 1, 1], [], []>} : vector<48x16xbf16>, vector<16x128xbf16>, vector<48x128xf32> -> vector<48x128xf32>
    %c0_4 = arith.constant 0 : index
    %c0_5 = arith.constant 0 : index
    %c0_6 = arith.constant 0 : index
    %5 = vector.load %arg4[%c0_4, %c0_5, %c0_6] : memref<1x1x1xf32, #tpu.memory_space<vmem>>, vector<1x1x1xf32>
    %6 = vector.shape_cast %5 : vector<1x1x1xf32> to vector<1x1xf32>
    %7 = vector.broadcast %6 : vector<1x1xf32> to vector<48x128xf32>
    %8 = arith.mulf %4, %7 : vector<48x128xf32>
    %c0_7 = arith.constant 0 : index
    %c0_8 = arith.constant 0 : index
    %c0_9 = arith.constant 0 : index
    %9 = vector.load %arg5[%c0_7, %c0_8, %c0_9] : memref<1x48x1xf32, #tpu.memory_space<vmem>>, vector<1x48x1xf32>
    %10 = vector.shape_cast %9 : vector<1x48x1xf32> to vector<48x1xf32>
    %11 = vector.broadcast %10 : vector<48x1xf32> to vector<48x128xf32>
    %12 = arith.addf %8, %11 : vector<48x128xf32>
    %c0_10 = arith.constant 0 : index
    %c0_11 = arith.constant 0 : index
    %c0_12 = arith.constant 0 : index
    %13 = vector.load %arg6[%c0_10, %c0_11, %c0_12] : memref<1x48x128xf32, #tpu.memory_space<vmem>>, vector<1x48x128xf32>
    %14 = vector.shape_cast %13 : vector<1x48x128xf32> to vector<48x128xf32>
    %15 = vector.shape_cast %12 : vector<48x128xf32> to vector<1x48x128xf32>
    tpu.vector_store %arg6[%c0_10, %c0_11, %c0_12], %15 {strides = array<i32>} : memref<1x48x128xf32, #tpu.memory_space<vmem>>, vector<1x48x128xf32>,
    return
  }
  func.func @transform_0(%arg0: i32, %arg1: i32) -> (i32, i32) {
    %c0_i32 = arith.constant 0 : i32
    %c0_i32_0 = arith.constant 0 : i32
    %c0_i32_1 = arith.constant 0 : i32
    return %c0_i32, %c0_i32_0 : i32, i32
  }
  func.func @transform_1(%arg0: i32, %arg1: i32) -> (i32, i32, i32) {
    %c0_i32 = arith.constant 0 : i32
    %c0_i32_0 = arith.constant 0 : i32
    return %arg0, %c0_i32, %arg1 : i32, i32, i32
  }
  func.func @transform_2(%arg0: i32, %arg1: i32) -> (i32, i32, i32) {
    %c0_i32 = arith.constant 0 : i32
    %c0_i32_0 = arith.constant 0 : i32
    %c0_i32_1 = arith.constant 0 : i32
    %c0_i32_2 = arith.constant 0 : i32
    return %c0_i32, %c0_i32_0, %c0_i32_1 : i32, i32, i32
  }
  func.func @transform_3(%arg0: i32, %arg1: i32) -> (i32, i32, i32) {
    %c0_i32 = arith.constant 0 : i32
    %c0_i32_0 = arith.constant 0 : i32
    %c0_i32_1 = arith.constant 0 : i32
    %c0_i32_2 = arith.constant 0 : i32
    return %c0_i32, %c0_i32_0, %c0_i32_1 : i32, i32, i32
  }
  func.func @transform_4(%arg0: i32, %arg1: i32) -> (i32, i32, i32) {
    %c0_i32 = arith.constant 0 : i32
    %c0_i32_0 = arith.constant 0 : i32
    return %arg0, %c0_i32, %arg1 : i32, i32, i32
  }
}

module attributes {stable_mosaic.version = 11 : i64} {
  func.func @_attn_self_kernel(%arg0: i32, %arg1: memref<1x48x128xf32, #tpu.memory_space<vmem>>, %arg2: memref<1x16x128xf32, #tpu.memory_space<vmem>>) attributes {dimension_semantics = [#tpu.dimension_semantics<parallel>], iteration_bounds = array<i64: 1>, scalar_prefetch = 0 : i64, scratch_operands = 0 : i64, tpu.core_type = #tpu.core_type<tc>, window_params = [{transform_indices = @transform_0, window_bounds = array<i64: 1, 48, 128>}, {transform_indices = @transform_1, window_bounds = array<i64: 1, 16, 128>}]} {
    %c0 = arith.constant 0 : index
    %c0_0 = arith.constant 0 : index
    %c0_1 = arith.constant 0 : index
    %0 = vector.load %arg1[%c0, %c0_0, %c0_1] : memref<1x48x128xf32, #tpu.memory_space<vmem>>, vector<1x48x128xf32>
    %1 = vector.extract_strided_slice %0 {offsets = [0, 0, 0], sizes = [1, 16, 128], strides = [1, 1, 1]} : vector<1x48x128xf32> to vector<1x16x128xf32>
    %2 = vector.extract_strided_slice %0 {offsets = [0, 16, 0], sizes = [1, 32, 128], strides = [1, 1, 1]} : vector<1x48x128xf32> to vector<1x32x128xf32>
    %cst = arith.constant 0.353553385 : f32
    %3 = vector.broadcast %cst : f32 to vector<1x16x128xf32>
    %4 = arith.mulf %1, %3 : vector<1x16x128xf32>
    %5 = vector.extract_strided_slice %4 {offsets = [0, 0, 0], sizes = [1, 8, 128], strides = [1, 1, 1]} : vector<1x16x128xf32> to vector<1x8x128xf32>
    %6 = vector.extract_strided_slice %2 {offsets = [0, 0, 0], sizes = [1, 8, 128], strides = [1, 1, 1]} : vector<1x32x128xf32> to vector<1x8x128xf32>
    %7 = vector.extract_strided_slice %2 {offsets = [0, 16, 0], sizes = [1, 8, 128], strides = [1, 1, 1]} : vector<1x32x128xf32> to vector<1x8x128xf32>
    %cst_2 = arith.constant 0.000000e+00 : f32
    %8 = vector.broadcast %cst_2 : f32 to vector<1x1x128xf32>
    %9 = vector.extract_strided_slice %5 {offsets = [0, 0, 0], sizes = [1, 1, 128], strides = [1, 1, 1]} : vector<1x8x128xf32> to vector<1x1x128xf32>
    %10 = vector.shape_cast %9 : vector<1x1x128xf32> to vector<1x128xf32>
    %11 = vector.shape_cast %10 : vector<1x128xf32> to vector<1x1x128xf32>
    %12 = vector.extract_strided_slice %6 {offsets = [0, 0, 0], sizes = [1, 1, 128], strides = [1, 1, 1]} : vector<1x8x128xf32> to vector<1x1x128xf32>
    %13 = vector.shape_cast %12 : vector<1x1x128xf32> to vector<1x128xf32>
    %14 = vector.shape_cast %13 : vector<1x128xf32> to vector<1x1x128xf32>
    %15 = arith.mulf %11, %14 : vector<1x1x128xf32>
    %16 = arith.addf %8, %15 : vector<1x1x128xf32>
    %17 = vector.extract_strided_slice %5 {offsets = [0, 1, 0], sizes = [1, 1, 128], strides = [1, 1, 1]} : vector<1x8x128xf32> to vector<1x1x128xf32>
    %18 = vector.shape_cast %17 : vector<1x1x128xf32> to vector<1x128xf32>
    %19 = vector.shape_cast %18 : vector<1x128xf32> to vector<1x1x128xf32>
    %20 = vector.extract_strided_slice %6 {offsets = [0, 1, 0], sizes = [1, 1, 128], strides = [1, 1, 1]} : vector<1x8x128xf32> to vector<1x1x128xf32>
    %21 = vector.shape_cast %20 : vector<1x1x128xf32> to vector<1x128xf32>
    %22 = vector.shape_cast %21 : vector<1x128xf32> to vector<1x1x128xf32>
    %23 = arith.mulf %19, %22 : vector<1x1x128xf32>
    %24 = arith.addf %16, %23 : vector<1x1x128xf32>
    %25 = vector.extract_strided_slice %5 {offsets = [0, 2, 0], sizes = [1, 1, 128], strides = [1, 1, 1]} : vector<1x8x128xf32> to vector<1x1x128xf32>
    %26 = vector.shape_cast %25 : vector<1x1x128xf32> to vector<1x128xf32>
    %27 = vector.shape_cast %26 : vector<1x128xf32> to vector<1x1x128xf32>
    %28 = vector.extract_strided_slice %6 {offsets = [0, 2, 0], sizes = [1, 1, 128], strides = [1, 1, 1]} : vector<1x8x128xf32> to vector<1x1x128xf32>
    %29 = vector.shape_cast %28 : vector<1x1x128xf32> to vector<1x128xf32>
    %30 = vector.shape_cast %29 : vector<1x128xf32> to vector<1x1x128xf32>
    %31 = arith.mulf %27, %30 : vector<1x1x128xf32>
    %32 = arith.addf %24, %31 : vector<1x1x128xf32>
    %33 = vector.extract_strided_slice %5 {offsets = [0, 3, 0], sizes = [1, 1, 128], strides = [1, 1, 1]} : vector<1x8x128xf32> to vector<1x1x128xf32>
    %34 = vector.shape_cast %33 : vector<1x1x128xf32> to vector<1x128xf32>
    %35 = vector.shape_cast %34 : vector<1x128xf32> to vector<1x1x128xf32>
    %36 = vector.extract_strided_slice %6 {offsets = [0, 3, 0], sizes = [1, 1, 128], strides = [1, 1, 1]} : vector<1x8x128xf32> to vector<1x1x128xf32>
    %37 = vector.shape_cast %36 : vector<1x1x128xf32> to vector<1x128xf32>
    %38 = vector.shape_cast %37 : vector<1x128xf32> to vector<1x1x128xf32>
    %39 = arith.mulf %35, %38 : vector<1x1x128xf32>
    %40 = arith.addf %32, %39 : vector<1x1x128xf32>
    %41 = vector.extract_strided_slice %5 {offsets = [0, 4, 0], sizes = [1, 1, 128], strides = [1, 1, 1]} : vector<1x8x128xf32> to vector<1x1x128xf32>
    %42 = vector.shape_cast %41 : vector<1x1x128xf32> to vector<1x128xf32>
    %43 = vector.shape_cast %42 : vector<1x128xf32> to vector<1x1x128xf32>
    %44 = vector.extract_strided_slice %6 {offsets = [0, 4, 0], sizes = [1, 1, 128], strides = [1, 1, 1]} : vector<1x8x128xf32> to vector<1x1x128xf32>
    %45 = vector.shape_cast %44 : vector<1x1x128xf32> to vector<1x128xf32>
    %46 = vector.shape_cast %45 : vector<1x128xf32> to vector<1x1x128xf32>
    %47 = arith.mulf %43, %46 : vector<1x1x128xf32>
    %48 = arith.addf %40, %47 : vector<1x1x128xf32>
    %49 = vector.extract_strided_slice %5 {offsets = [0, 5, 0], sizes = [1, 1, 128], strides = [1, 1, 1]} : vector<1x8x128xf32> to vector<1x1x128xf32>
    %50 = vector.shape_cast %49 : vector<1x1x128xf32> to vector<1x128xf32>
    %51 = vector.shape_cast %50 : vector<1x128xf32> to vector<1x1x128xf32>
    %52 = vector.extract_strided_slice %6 {offsets = [0, 5, 0], sizes = [1, 1, 128], strides = [1, 1, 1]} : vector<1x8x128xf32> to vector<1x1x128xf32>
    %53 = vector.shape_cast %52 : vector<1x1x128xf32> to vector<1x128xf32>
    %54 = vector.shape_cast %53 : vector<1x128xf32> to vector<1x1x128xf32>
    %55 = arith.mulf %51, %54 : vector<1x1x128xf32>
    %56 = arith.addf %48, %55 : vector<1x1x128xf32>
    %57 = vector.extract_strided_slice %5 {offsets = [0, 6, 0], sizes = [1, 1, 128], strides = [1, 1, 1]} : vector<1x8x128xf32> to vector<1x1x128xf32>
    %58 = vector.shape_cast %57 : vector<1x1x128xf32> to vector<1x128xf32>
    %59 = vector.shape_cast %58 : vector<1x128xf32> to vector<1x1x128xf32>
    %60 = vector.extract_strided_slice %6 {offsets = [0, 6, 0], sizes = [1, 1, 128], strides = [1, 1, 1]} : vector<1x8x128xf32> to vector<1x1x128xf32>
    %61 = vector.shape_cast %60 : vector<1x1x128xf32> to vector<1x128xf32>
    %62 = vector.shape_cast %61 : vector<1x128xf32> to vector<1x1x128xf32>
    %63 = arith.mulf %59, %62 : vector<1x1x128xf32>
    %64 = arith.addf %56, %63 : vector<1x1x128xf32>
    %65 = vector.extract_strided_slice %5 {offsets = [0, 7, 0], sizes = [1, 1, 128], strides = [1, 1, 1]} : vector<1x8x128xf32> to vector<1x1x128xf32>
    %66 = vector.shape_cast %65 : vector<1x1x128xf32> to vector<1x128xf32>
    %67 = vector.shape_cast %66 : vector<1x128xf32> to vector<1x1x128xf32>
    %68 = vector.extract_strided_slice %6 {offsets = [0, 7, 0], sizes = [1, 1, 128], strides = [1, 1, 1]} : vector<1x8x128xf32> to vector<1x1x128xf32>
    %69 = vector.shape_cast %68 : vector<1x1x128xf32> to vector<1x128xf32>
    %70 = vector.shape_cast %69 : vector<1x128xf32> to vector<1x1x128xf32>
    %71 = arith.mulf %67, %70 : vector<1x1x128xf32>
    %72 = arith.addf %64, %71 : vector<1x1x128xf32>
    %cst_3 = arith.constant dense<0xFF800000> : vector<1x128xf32>
    %73 = vector.multi_reduction <maximumf>, %72, %cst_3 [1] : vector<1x1x128xf32> to vector<1x128xf32>
    %74 = vector.shape_cast %73 : vector<1x128xf32> to vector<1x1x128xf32>
    %75 = arith.subf %72, %74 : vector<1x1x128xf32>
    %76 = math.exp %75 : vector<1x1x128xf32>
    %cst_4 = arith.constant dense<0.000000e+00> : vector<1x128xf32>
    %77 = vector.multi_reduction <add>, %76, %cst_4 [1] : vector<1x1x128xf32> to vector<1x128xf32>
    %78 = vector.shape_cast %77 : vector<1x128xf32> to vector<1x1x128xf32>
    %79 = tpu.reciprocal %78 {approx = true} : vector<1x1x128xf32> -> vector<1x1x128xf32>
    %80 = arith.mulf %76, %79 : vector<1x1x128xf32>
    %cst_5 = arith.constant 0.000000e+00 : f32
    %81 = vector.broadcast %cst_5 : f32 to vector<1x8x128xf32>
    %82 = vector.shape_cast %80 : vector<1x1x128xf32> to vector<1x128xf32>
    %83 = vector.shape_cast %82 : vector<1x128xf32> to vector<1x1x128xf32>
    %84 = vector.shape_cast %7 : vector<1x8x128xf32> to vector<8x128xf32>
    %85 = vector.shape_cast %84 : vector<8x128xf32> to vector<1x8x128xf32>
    %86 = vector.broadcast %83 : vector<1x1x128xf32> to vector<1x8x128xf32>
    %87 = arith.mulf %86, %85 : vector<1x8x128xf32>
    %88 = arith.addf %81, %87 : vector<1x8x128xf32>
    %c0_6 = arith.constant 0 : index
    %c0_7 = arith.constant 0 : index
    %c0_8 = arith.constant 0 : index
    %89 = vector.load %arg2[%c0_6, %c0_7, %c0_8] : memref<1x16x128xf32, #tpu.memory_space<vmem>>, vector<1x8x128xf32>
    tpu.vector_store %arg2[%c0_6, %c0_7, %c0_8], %88 {strides = array<i32>} : memref<1x16x128xf32, #tpu.memory_space<vmem>>, vector<1x8x128xf32>,
    %90 = vector.extract_strided_slice %4 {offsets = [0, 8, 0], sizes = [1, 8, 128], strides = [1, 1, 1]} : vector<1x16x128xf32> to vector<1x8x128xf32>
    %91 = vector.extract_strided_slice %2 {offsets = [0, 8, 0], sizes = [1, 8, 128], strides = [1, 1, 1]} : vector<1x32x128xf32> to vector<1x8x128xf32>
    %92 = vector.extract_strided_slice %2 {offsets = [0, 24, 0], sizes = [1, 8, 128], strides = [1, 1, 1]} : vector<1x32x128xf32> to vector<1x8x128xf32>
    %cst_9 = arith.constant 0.000000e+00 : f32
    %93 = vector.broadcast %cst_9 : f32 to vector<1x1x128xf32>
    %94 = vector.extract_strided_slice %90 {offsets = [0, 0, 0], sizes = [1, 1, 128], strides = [1, 1, 1]} : vector<1x8x128xf32> to vector<1x1x128xf32>
    %95 = vector.shape_cast %94 : vector<1x1x128xf32> to vector<1x128xf32>
    %96 = vector.shape_cast %95 : vector<1x128xf32> to vector<1x1x128xf32>
    %97 = vector.extract_strided_slice %91 {offsets = [0, 0, 0], sizes = [1, 1, 128], strides = [1, 1, 1]} : vector<1x8x128xf32> to vector<1x1x128xf32>
    %98 = vector.shape_cast %97 : vector<1x1x128xf32> to vector<1x128xf32>
    %99 = vector.shape_cast %98 : vector<1x128xf32> to vector<1x1x128xf32>
    %100 = arith.mulf %96, %99 : vector<1x1x128xf32>
    %101 = arith.addf %93, %100 : vector<1x1x128xf32>
    %102 = vector.extract_strided_slice %90 {offsets = [0, 1, 0], sizes = [1, 1, 128], strides = [1, 1, 1]} : vector<1x8x128xf32> to vector<1x1x128xf32>
    %103 = vector.shape_cast %102 : vector<1x1x128xf32> to vector<1x128xf32>
    %104 = vector.shape_cast %103 : vector<1x128xf32> to vector<1x1x128xf32>
    %105 = vector.extract_strided_slice %91 {offsets = [0, 1, 0], sizes = [1, 1, 128], strides = [1, 1, 1]} : vector<1x8x128xf32> to vector<1x1x128xf32>
    %106 = vector.shape_cast %105 : vector<1x1x128xf32> to vector<1x128xf32>
    %107 = vector.shape_cast %106 : vector<1x128xf32> to vector<1x1x128xf32>
    %108 = arith.mulf %104, %107 : vector<1x1x128xf32>
    %109 = arith.addf %101, %108 : vector<1x1x128xf32>
    %110 = vector.extract_strided_slice %90 {offsets = [0, 2, 0], sizes = [1, 1, 128], strides = [1, 1, 1]} : vector<1x8x128xf32> to vector<1x1x128xf32>
    %111 = vector.shape_cast %110 : vector<1x1x128xf32> to vector<1x128xf32>
    %112 = vector.shape_cast %111 : vector<1x128xf32> to vector<1x1x128xf32>
    %113 = vector.extract_strided_slice %91 {offsets = [0, 2, 0], sizes = [1, 1, 128], strides = [1, 1, 1]} : vector<1x8x128xf32> to vector<1x1x128xf32>
    %114 = vector.shape_cast %113 : vector<1x1x128xf32> to vector<1x128xf32>
    %115 = vector.shape_cast %114 : vector<1x128xf32> to vector<1x1x128xf32>
    %116 = arith.mulf %112, %115 : vector<1x1x128xf32>
    %117 = arith.addf %109, %116 : vector<1x1x128xf32>
    %118 = vector.extract_strided_slice %90 {offsets = [0, 3, 0], sizes = [1, 1, 128], strides = [1, 1, 1]} : vector<1x8x128xf32> to vector<1x1x128xf32>
    %119 = vector.shape_cast %118 : vector<1x1x128xf32> to vector<1x128xf32>
    %120 = vector.shape_cast %119 : vector<1x128xf32> to vector<1x1x128xf32>
    %121 = vector.extract_strided_slice %91 {offsets = [0, 3, 0], sizes = [1, 1, 128], strides = [1, 1, 1]} : vector<1x8x128xf32> to vector<1x1x128xf32>
    %122 = vector.shape_cast %121 : vector<1x1x128xf32> to vector<1x128xf32>
    %123 = vector.shape_cast %122 : vector<1x128xf32> to vector<1x1x128xf32>
    %124 = arith.mulf %120, %123 : vector<1x1x128xf32>
    %125 = arith.addf %117, %124 : vector<1x1x128xf32>
    %126 = vector.extract_strided_slice %90 {offsets = [0, 4, 0], sizes = [1, 1, 128], strides = [1, 1, 1]} : vector<1x8x128xf32> to vector<1x1x128xf32>
    %127 = vector.shape_cast %126 : vector<1x1x128xf32> to vector<1x128xf32>
    %128 = vector.shape_cast %127 : vector<1x128xf32> to vector<1x1x128xf32>
    %129 = vector.extract_strided_slice %91 {offsets = [0, 4, 0], sizes = [1, 1, 128], strides = [1, 1, 1]} : vector<1x8x128xf32> to vector<1x1x128xf32>
    %130 = vector.shape_cast %129 : vector<1x1x128xf32> to vector<1x128xf32>
    %131 = vector.shape_cast %130 : vector<1x128xf32> to vector<1x1x128xf32>
    %132 = arith.mulf %128, %131 : vector<1x1x128xf32>
    %133 = arith.addf %125, %132 : vector<1x1x128xf32>
    %134 = vector.extract_strided_slice %90 {offsets = [0, 5, 0], sizes = [1, 1, 128], strides = [1, 1, 1]} : vector<1x8x128xf32> to vector<1x1x128xf32>
    %135 = vector.shape_cast %134 : vector<1x1x128xf32> to vector<1x128xf32>
    %136 = vector.shape_cast %135 : vector<1x128xf32> to vector<1x1x128xf32>
    %137 = vector.extract_strided_slice %91 {offsets = [0, 5, 0], sizes = [1, 1, 128], strides = [1, 1, 1]} : vector<1x8x128xf32> to vector<1x1x128xf32>
    %138 = vector.shape_cast %137 : vector<1x1x128xf32> to vector<1x128xf32>
    %139 = vector.shape_cast %138 : vector<1x128xf32> to vector<1x1x128xf32>
    %140 = arith.mulf %136, %139 : vector<1x1x128xf32>
    %141 = arith.addf %133, %140 : vector<1x1x128xf32>
    %142 = vector.extract_strided_slice %90 {offsets = [0, 6, 0], sizes = [1, 1, 128], strides = [1, 1, 1]} : vector<1x8x128xf32> to vector<1x1x128xf32>
    %143 = vector.shape_cast %142 : vector<1x1x128xf32> to vector<1x128xf32>
    %144 = vector.shape_cast %143 : vector<1x128xf32> to vector<1x1x128xf32>
    %145 = vector.extract_strided_slice %91 {offsets = [0, 6, 0], sizes = [1, 1, 128], strides = [1, 1, 1]} : vector<1x8x128xf32> to vector<1x1x128xf32>
    %146 = vector.shape_cast %145 : vector<1x1x128xf32> to vector<1x128xf32>
    %147 = vector.shape_cast %146 : vector<1x128xf32> to vector<1x1x128xf32>
    %148 = arith.mulf %144, %147 : vector<1x1x128xf32>
    %149 = arith.addf %141, %148 : vector<1x1x128xf32>
    %150 = vector.extract_strided_slice %90 {offsets = [0, 7, 0], sizes = [1, 1, 128], strides = [1, 1, 1]} : vector<1x8x128xf32> to vector<1x1x128xf32>
    %151 = vector.shape_cast %150 : vector<1x1x128xf32> to vector<1x128xf32>
    %152 = vector.shape_cast %151 : vector<1x128xf32> to vector<1x1x128xf32>
    %153 = vector.extract_strided_slice %91 {offsets = [0, 7, 0], sizes = [1, 1, 128], strides = [1, 1, 1]} : vector<1x8x128xf32> to vector<1x1x128xf32>
    %154 = vector.shape_cast %153 : vector<1x1x128xf32> to vector<1x128xf32>
    %155 = vector.shape_cast %154 : vector<1x128xf32> to vector<1x1x128xf32>
    %156 = arith.mulf %152, %155 : vector<1x1x128xf32>
    %157 = arith.addf %149, %156 : vector<1x1x128xf32>
    %cst_10 = arith.constant dense<0xFF800000> : vector<1x128xf32>
    %158 = vector.multi_reduction <maximumf>, %157, %cst_10 [1] : vector<1x1x128xf32> to vector<1x128xf32>
    %159 = vector.shape_cast %158 : vector<1x128xf32> to vector<1x1x128xf32>
    %160 = arith.subf %157, %159 : vector<1x1x128xf32>
    %161 = math.exp %160 : vector<1x1x128xf32>
    %cst_11 = arith.constant dense<0.000000e+00> : vector<1x128xf32>
    %162 = vector.multi_reduction <add>, %161, %cst_11 [1] : vector<1x1x128xf32> to vector<1x128xf32>
    %163 = vector.shape_cast %162 : vector<1x128xf32> to vector<1x1x128xf32>
    %164 = tpu.reciprocal %163 {approx = true} : vector<1x1x128xf32> -> vector<1x1x128xf32>
    %165 = arith.mulf %161, %164 : vector<1x1x128xf32>
    %cst_12 = arith.constant 0.000000e+00 : f32
    %166 = vector.broadcast %cst_12 : f32 to vector<1x8x128xf32>
    %167 = vector.shape_cast %165 : vector<1x1x128xf32> to vector<1x128xf32>
    %168 = vector.shape_cast %167 : vector<1x128xf32> to vector<1x1x128xf32>
    %169 = vector.shape_cast %92 : vector<1x8x128xf32> to vector<8x128xf32>
    %170 = vector.shape_cast %169 : vector<8x128xf32> to vector<1x8x128xf32>
    %171 = vector.broadcast %168 : vector<1x1x128xf32> to vector<1x8x128xf32>
    %172 = arith.mulf %171, %170 : vector<1x8x128xf32>
    %173 = arith.addf %166, %172 : vector<1x8x128xf32>
    %c0_13 = arith.constant 0 : index
    %c8 = arith.constant 8 : index
    %c0_14 = arith.constant 0 : index
    %174 = vector.load %arg2[%c0_13, %c8, %c0_14] : memref<1x16x128xf32, #tpu.memory_space<vmem>>, vector<1x8x128xf32>
    tpu.vector_store %arg2[%c0_13, %c8, %c0_14], %173 {strides = array<i32>} : memref<1x16x128xf32, #tpu.memory_space<vmem>>, vector<1x8x128xf32>,
    return
  }
  func.func @transform_0(%arg0: i32) -> (i32, i32, i32) {
    %c0_i32 = arith.constant 0 : i32
    %c0_i32_0 = arith.constant 0 : i32
    %c0_i32_1 = arith.constant 0 : i32
    return %c0_i32, %c0_i32_0, %arg0 : i32, i32, i32
  }
  func.func @transform_1(%arg0: i32) -> (i32, i32, i32) {
    %c0_i32 = arith.constant 0 : i32
    %c0_i32_0 = arith.constant 0 : i32
    %c0_i32_1 = arith.constant 0 : i32
    return %c0_i32, %c0_i32_0, %arg0 : i32, i32, i32
  }
}

module attributes {stable_mosaic.version = 11 : i64} {
  func.func @_fm_matmul_kernel(%arg0: i32, %arg1: i32, %arg2: memref<16x16xbf16, #tpu.memory_space<vmem>>, %arg3: memref<1x16x128xf32, #tpu.memory_space<vmem>>, %arg4: memref<1x1x1xf32, #tpu.memory_space<vmem>>, %arg5: memref<1x16x1xf32, #tpu.memory_space<vmem>>, %arg6: memref<1x16x128xf32, #tpu.memory_space<vmem>>) attributes {dimension_semantics = [#tpu.dimension_semantics<parallel>, #tpu.dimension_semantics<parallel>], iteration_bounds = array<i64: 1, 1>, scalar_prefetch = 0 : i64, scratch_operands = 0 : i64, tpu.core_type = #tpu.core_type<tc>, window_params = [{pipeline_mode = #tpu.pipeline_mode<synchronous>, transform_indices = @transform_0, window_bounds = array<i64: 16, 16>}, {transform_indices = @transform_1, window_bounds = array<i64: 1, 16, 128>}, {pipeline_mode = #tpu.pipeline_mode<synchronous>, transform_indices = @transform_2, window_bounds = array<i64: 1, 1, 1>}, {pipeline_mode = #tpu.pipeline_mode<synchronous>, transform_indices = @transform_3, window_bounds = array<i64: 1, 16, 1>}, {transform_indices = @transform_4, window_bounds = array<i64: 1, 16, 128>}]} {
    %c0 = arith.constant 0 : index
    %c0_0 = arith.constant 0 : index
    %0 = vector.load %arg2[%c0, %c0_0] : memref<16x16xbf16, #tpu.memory_space<vmem>>, vector<16x16xbf16>
    %c0_1 = arith.constant 0 : index
    %c0_2 = arith.constant 0 : index
    %c0_3 = arith.constant 0 : index
    %1 = vector.load %arg3[%c0_1, %c0_2, %c0_3] : memref<1x16x128xf32, #tpu.memory_space<vmem>>, vector<1x16x128xf32>
    %2 = vector.shape_cast %1 : vector<1x16x128xf32> to vector<16x128xf32>
    %3 = arith.truncf %2 : vector<16x128xf32> to vector<16x128xbf16>
    %cst = arith.constant dense<0.000000e+00> : vector<16x128xf32>
    %4 = tpu.matmul %0, %3, %cst {dimension_numbers = #tpu.dot_dimension_numbers<[1], [0], [0], [1], [0, 0, 1, 1], [], []>} : vector<16x16xbf16>, vector<16x128xbf16>, vector<16x128xf32> -> vector<16x128xf32>
    %c0_4 = arith.constant 0 : index
    %c0_5 = arith.constant 0 : index
    %c0_6 = arith.constant 0 : index
    %5 = vector.load %arg4[%c0_4, %c0_5, %c0_6] : memref<1x1x1xf32, #tpu.memory_space<vmem>>, vector<1x1x1xf32>
    %6 = vector.shape_cast %5 : vector<1x1x1xf32> to vector<1x1xf32>
    %7 = vector.broadcast %6 : vector<1x1xf32> to vector<16x128xf32>
    %8 = arith.mulf %4, %7 : vector<16x128xf32>
    %c0_7 = arith.constant 0 : index
    %c0_8 = arith.constant 0 : index
    %c0_9 = arith.constant 0 : index
    %9 = vector.load %arg5[%c0_7, %c0_8, %c0_9] : memref<1x16x1xf32, #tpu.memory_space<vmem>>, vector<1x16x1xf32>
    %10 = vector.shape_cast %9 : vector<1x16x1xf32> to vector<16x1xf32>
    %11 = vector.broadcast %10 : vector<16x1xf32> to vector<16x128xf32>
    %12 = arith.addf %8, %11 : vector<16x128xf32>
    %c0_10 = arith.constant 0 : index
    %c0_11 = arith.constant 0 : index
    %c0_12 = arith.constant 0 : index
    %13 = vector.load %arg6[%c0_10, %c0_11, %c0_12] : memref<1x16x128xf32, #tpu.memory_space<vmem>>, vector<1x16x128xf32>
    %14 = vector.shape_cast %13 : vector<1x16x128xf32> to vector<16x128xf32>
    %15 = vector.shape_cast %12 : vector<16x128xf32> to vector<1x16x128xf32>
    tpu.vector_store %arg6[%c0_10, %c0_11, %c0_12], %15 {strides = array<i32>} : memref<1x16x128xf32, #tpu.memory_space<vmem>>, vector<1x16x128xf32>,
    return
  }
  func.func @transform_0(%arg0: i32, %arg1: i32) -> (i32, i32) {
    %c0_i32 = arith.constant 0 : i32
    %c0_i32_0 = arith.constant 0 : i32
    %c0_i32_1 = arith.constant 0 : i32
    return %c0_i32, %c0_i32_0 : i32, i32
  }
  func.func @transform_1(%arg0: i32, %arg1: i32) -> (i32, i32, i32) {
    %c0_i32 = arith.constant 0 : i32
    %c0_i32_0 = arith.constant 0 : i32
    return %arg0, %c0_i32, %arg1 : i32, i32, i32
  }
  func.func @transform_2(%arg0: i32, %arg1: i32) -> (i32, i32, i32) {
    %c0_i32 = arith.constant 0 : i32
    %c0_i32_0 = arith.constant 0 : i32
    %c0_i32_1 = arith.constant 0 : i32
    %c0_i32_2 = arith.constant 0 : i32
    return %c0_i32, %c0_i32_0, %c0_i32_1 : i32, i32, i32
  }
  func.func @transform_3(%arg0: i32, %arg1: i32) -> (i32, i32, i32) {
    %c0_i32 = arith.constant 0 : i32
    %c0_i32_0 = arith.constant 0 : i32
    %c0_i32_1 = arith.constant 0 : i32
    %c0_i32_2 = arith.constant 0 : i32
    return %c0_i32, %c0_i32_0, %c0_i32_1 : i32, i32, i32
  }
  func.func @transform_4(%arg0: i32, %arg1: i32) -> (i32, i32, i32) {
    %c0_i32 = arith.constant 0 : i32
    %c0_i32_0 = arith.constant 0 : i32
    return %arg0, %c0_i32, %arg1 : i32, i32, i32
  }
}

module attributes {stable_mosaic.version = 11 : i64} {
  func.func @_attn_cross_kernel(%arg0: i32, %arg1: memref<1x16x128xf32, #tpu.memory_space<vmem>>, %arg2: memref<4x32x128xf32, #tpu.memory_space<vmem>>, %arg3: memref<1x16x128xf32, #tpu.memory_space<vmem>>) attributes {dimension_semantics = [#tpu.dimension_semantics<parallel>], iteration_bounds = array<i64: 1>, scalar_prefetch = 0 : i64, scratch_operands = 0 : i64, tpu.core_type = #tpu.core_type<tc>, window_params = [{transform_indices = @transform_0, window_bounds = array<i64: 1, 16, 128>}, {transform_indices = @transform_1, window_bounds = array<i64: 4, 32, 128>}, {transform_indices = @transform_2, window_bounds = array<i64: 1, 16, 128>}]} {
    %c0 = arith.constant 0 : index
    %c0_0 = arith.constant 0 : index
    %c0_1 = arith.constant 0 : index
    %0 = vector.load %arg1[%c0, %c0_0, %c0_1] : memref<1x16x128xf32, #tpu.memory_space<vmem>>, vector<1x16x128xf32>
    %c0_2 = arith.constant 0 : index
    %c0_3 = arith.constant 0 : index
    %c0_4 = arith.constant 0 : index
    %1 = vector.load %arg2[%c0_2, %c0_3, %c0_4] : memref<4x32x128xf32, #tpu.memory_space<vmem>>, vector<4x32x128xf32>
    %cst = arith.constant 0.353553385 : f32
    %2 = vector.broadcast %cst : f32 to vector<1x16x128xf32>
    %3 = arith.mulf %0, %2 : vector<1x16x128xf32>
    %4 = vector.extract_strided_slice %3 {offsets = [0, 0, 0], sizes = [1, 8, 128], strides = [1, 1, 1]} : vector<1x16x128xf32> to vector<1x8x128xf32>
    %5 = vector.extract_strided_slice %1 {offsets = [0, 0, 0], sizes = [4, 8, 128], strides = [1, 1, 1]} : vector<4x32x128xf32> to vector<4x8x128xf32>
    %6 = vector.extract_strided_slice %1 {offsets = [0, 16, 0], sizes = [4, 8, 128], strides = [1, 1, 1]} : vector<4x32x128xf32> to vector<4x8x128xf32>
    %cst_5 = arith.constant 0.000000e+00 : f32
    %7 = vector.broadcast %cst_5 : f32 to vector<1x4x128xf32>
    %8 = vector.extract_strided_slice %4 {offsets = [0, 0, 0], sizes = [1, 1, 128], strides = [1, 1, 1]} : vector<1x8x128xf32> to vector<1x1x128xf32>
    %9 = vector.shape_cast %8 : vector<1x1x128xf32> to vector<1x128xf32>
    %10 = vector.shape_cast %9 : vector<1x128xf32> to vector<1x1x128xf32>
    %11 = vector.extract_strided_slice %5 {offsets = [0, 0, 0], sizes = [4, 1, 128], strides = [1, 1, 1]} : vector<4x8x128xf32> to vector<4x1x128xf32>
    %12 = vector.shape_cast %11 : vector<4x1x128xf32> to vector<4x128xf32>
    %13 = vector.shape_cast %12 : vector<4x128xf32> to vector<1x4x128xf32>
    %14 = vector.broadcast %10 : vector<1x1x128xf32> to vector<1x4x128xf32>
    %15 = arith.mulf %14, %13 : vector<1x4x128xf32>
    %16 = arith.addf %7, %15 : vector<1x4x128xf32>
    %17 = vector.extract_strided_slice %4 {offsets = [0, 1, 0], sizes = [1, 1, 128], strides = [1, 1, 1]} : vector<1x8x128xf32> to vector<1x1x128xf32>
    %18 = vector.shape_cast %17 : vector<1x1x128xf32> to vector<1x128xf32>
    %19 = vector.shape_cast %18 : vector<1x128xf32> to vector<1x1x128xf32>
    %20 = vector.extract_strided_slice %5 {offsets = [0, 1, 0], sizes = [4, 1, 128], strides = [1, 1, 1]} : vector<4x8x128xf32> to vector<4x1x128xf32>
    %21 = vector.shape_cast %20 : vector<4x1x128xf32> to vector<4x128xf32>
    %22 = vector.shape_cast %21 : vector<4x128xf32> to vector<1x4x128xf32>
    %23 = vector.broadcast %19 : vector<1x1x128xf32> to vector<1x4x128xf32>
    %24 = arith.mulf %23, %22 : vector<1x4x128xf32>
    %25 = arith.addf %16, %24 : vector<1x4x128xf32>
    %26 = vector.extract_strided_slice %4 {offsets = [0, 2, 0], sizes = [1, 1, 128], strides = [1, 1, 1]} : vector<1x8x128xf32> to vector<1x1x128xf32>
    %27 = vector.shape_cast %26 : vector<1x1x128xf32> to vector<1x128xf32>
    %28 = vector.shape_cast %27 : vector<1x128xf32> to vector<1x1x128xf32>
    %29 = vector.extract_strided_slice %5 {offsets = [0, 2, 0], sizes = [4, 1, 128], strides = [1, 1, 1]} : vector<4x8x128xf32> to vector<4x1x128xf32>
    %30 = vector.shape_cast %29 : vector<4x1x128xf32> to vector<4x128xf32>
    %31 = vector.shape_cast %30 : vector<4x128xf32> to vector<1x4x128xf32>
    %32 = vector.broadcast %28 : vector<1x1x128xf32> to vector<1x4x128xf32>
    %33 = arith.mulf %32, %31 : vector<1x4x128xf32>
    %34 = arith.addf %25, %33 : vector<1x4x128xf32>
    %35 = vector.extract_strided_slice %4 {offsets = [0, 3, 0], sizes = [1, 1, 128], strides = [1, 1, 1]} : vector<1x8x128xf32> to vector<1x1x128xf32>
    %36 = vector.shape_cast %35 : vector<1x1x128xf32> to vector<1x128xf32>
    %37 = vector.shape_cast %36 : vector<1x128xf32> to vector<1x1x128xf32>
    %38 = vector.extract_strided_slice %5 {offsets = [0, 3, 0], sizes = [4, 1, 128], strides = [1, 1, 1]} : vector<4x8x128xf32> to vector<4x1x128xf32>
    %39 = vector.shape_cast %38 : vector<4x1x128xf32> to vector<4x128xf32>
    %40 = vector.shape_cast %39 : vector<4x128xf32> to vector<1x4x128xf32>
    %41 = vector.broadcast %37 : vector<1x1x128xf32> to vector<1x4x128xf32>
    %42 = arith.mulf %41, %40 : vector<1x4x128xf32>
    %43 = arith.addf %34, %42 : vector<1x4x128xf32>
    %44 = vector.extract_strided_slice %4 {offsets = [0, 4, 0], sizes = [1, 1, 128], strides = [1, 1, 1]} : vector<1x8x128xf32> to vector<1x1x128xf32>
    %45 = vector.shape_cast %44 : vector<1x1x128xf32> to vector<1x128xf32>
    %46 = vector.shape_cast %45 : vector<1x128xf32> to vector<1x1x128xf32>
    %47 = vector.extract_strided_slice %5 {offsets = [0, 4, 0], sizes = [4, 1, 128], strides = [1, 1, 1]} : vector<4x8x128xf32> to vector<4x1x128xf32>
    %48 = vector.shape_cast %47 : vector<4x1x128xf32> to vector<4x128xf32>
    %49 = vector.shape_cast %48 : vector<4x128xf32> to vector<1x4x128xf32>
    %50 = vector.broadcast %46 : vector<1x1x128xf32> to vector<1x4x128xf32>
    %51 = arith.mulf %50, %49 : vector<1x4x128xf32>
    %52 = arith.addf %43, %51 : vector<1x4x128xf32>
    %53 = vector.extract_strided_slice %4 {offsets = [0, 5, 0], sizes = [1, 1, 128], strides = [1, 1, 1]} : vector<1x8x128xf32> to vector<1x1x128xf32>
    %54 = vector.shape_cast %53 : vector<1x1x128xf32> to vector<1x128xf32>
    %55 = vector.shape_cast %54 : vector<1x128xf32> to vector<1x1x128xf32>
    %56 = vector.extract_strided_slice %5 {offsets = [0, 5, 0], sizes = [4, 1, 128], strides = [1, 1, 1]} : vector<4x8x128xf32> to vector<4x1x128xf32>
    %57 = vector.shape_cast %56 : vector<4x1x128xf32> to vector<4x128xf32>
    %58 = vector.shape_cast %57 : vector<4x128xf32> to vector<1x4x128xf32>
    %59 = vector.broadcast %55 : vector<1x1x128xf32> to vector<1x4x128xf32>
    %60 = arith.mulf %59, %58 : vector<1x4x128xf32>
    %61 = arith.addf %52, %60 : vector<1x4x128xf32>
    %62 = vector.extract_strided_slice %4 {offsets = [0, 6, 0], sizes = [1, 1, 128], strides = [1, 1, 1]} : vector<1x8x128xf32> to vector<1x1x128xf32>
    %63 = vector.shape_cast %62 : vector<1x1x128xf32> to vector<1x128xf32>
    %64 = vector.shape_cast %63 : vector<1x128xf32> to vector<1x1x128xf32>
    %65 = vector.extract_strided_slice %5 {offsets = [0, 6, 0], sizes = [4, 1, 128], strides = [1, 1, 1]} : vector<4x8x128xf32> to vector<4x1x128xf32>
    %66 = vector.shape_cast %65 : vector<4x1x128xf32> to vector<4x128xf32>
    %67 = vector.shape_cast %66 : vector<4x128xf32> to vector<1x4x128xf32>
    %68 = vector.broadcast %64 : vector<1x1x128xf32> to vector<1x4x128xf32>
    %69 = arith.mulf %68, %67 : vector<1x4x128xf32>
    %70 = arith.addf %61, %69 : vector<1x4x128xf32>
    %71 = vector.extract_strided_slice %4 {offsets = [0, 7, 0], sizes = [1, 1, 128], strides = [1, 1, 1]} : vector<1x8x128xf32> to vector<1x1x128xf32>
    %72 = vector.shape_cast %71 : vector<1x1x128xf32> to vector<1x128xf32>
    %73 = vector.shape_cast %72 : vector<1x128xf32> to vector<1x1x128xf32>
    %74 = vector.extract_strided_slice %5 {offsets = [0, 7, 0], sizes = [4, 1, 128], strides = [1, 1, 1]} : vector<4x8x128xf32> to vector<4x1x128xf32>
    %75 = vector.shape_cast %74 : vector<4x1x128xf32> to vector<4x128xf32>
    %76 = vector.shape_cast %75 : vector<4x128xf32> to vector<1x4x128xf32>
    %77 = vector.broadcast %73 : vector<1x1x128xf32> to vector<1x4x128xf32>
    %78 = arith.mulf %77, %76 : vector<1x4x128xf32>
    %79 = arith.addf %70, %78 : vector<1x4x128xf32>
    %cst_6 = arith.constant dense<0xFF800000> : vector<1x128xf32>
    %80 = vector.multi_reduction <maximumf>, %79, %cst_6 [1] : vector<1x4x128xf32> to vector<1x128xf32>
    %81 = vector.shape_cast %80 : vector<1x128xf32> to vector<1x1x128xf32>
    %82 = vector.broadcast %81 : vector<1x1x128xf32> to vector<1x4x128xf32>
    %83 = arith.subf %79, %82 : vector<1x4x128xf32>
    %84 = math.exp %83 : vector<1x4x128xf32>
    %cst_7 = arith.constant dense<0.000000e+00> : vector<1x128xf32>
    %85 = vector.multi_reduction <add>, %84, %cst_7 [1] : vector<1x4x128xf32> to vector<1x128xf32>
    %86 = vector.shape_cast %85 : vector<1x128xf32> to vector<1x1x128xf32>
    %87 = tpu.reciprocal %86 {approx = true} : vector<1x1x128xf32> -> vector<1x1x128xf32>
    %88 = vector.broadcast %87 : vector<1x1x128xf32> to vector<1x4x128xf32>
    %89 = arith.mulf %84, %88 : vector<1x4x128xf32>
    %cst_8 = arith.constant 0.000000e+00 : f32
    %90 = vector.broadcast %cst_8 : f32 to vector<1x8x128xf32>
    %91 = vector.extract_strided_slice %89 {offsets = [0, 0, 0], sizes = [1, 1, 128], strides = [1, 1, 1]} : vector<1x4x128xf32> to vector<1x1x128xf32>
    %92 = vector.shape_cast %91 : vector<1x1x128xf32> to vector<1x128xf32>
    %93 = vector.shape_cast %92 : vector<1x128xf32> to vector<1x1x128xf32>
    %94 = vector.extract_strided_slice %6 {offsets = [0, 0, 0], sizes = [1, 8, 128], strides = [1, 1, 1]} : vector<4x8x128xf32> to vector<1x8x128xf32>
    %95 = vector.shape_cast %94 : vector<1x8x128xf32> to vector<8x128xf32>
    %96 = vector.shape_cast %95 : vector<8x128xf32> to vector<1x8x128xf32>
    %97 = vector.broadcast %93 : vector<1x1x128xf32> to vector<1x8x128xf32>
    %98 = arith.mulf %97, %96 : vector<1x8x128xf32>
    %99 = arith.addf %90, %98 : vector<1x8x128xf32>
    %100 = vector.extract_strided_slice %89 {offsets = [0, 1, 0], sizes = [1, 1, 128], strides = [1, 1, 1]} : vector<1x4x128xf32> to vector<1x1x128xf32>
    %101 = vector.shape_cast %100 : vector<1x1x128xf32> to vector<1x128xf32>
    %102 = vector.shape_cast %101 : vector<1x128xf32> to vector<1x1x128xf32>
    %103 = vector.extract_strided_slice %6 {offsets = [1, 0, 0], sizes = [1, 8, 128], strides = [1, 1, 1]} : vector<4x8x128xf32> to vector<1x8x128xf32>
    %104 = vector.shape_cast %103 : vector<1x8x128xf32> to vector<8x128xf32>
    %105 = vector.shape_cast %104 : vector<8x128xf32> to vector<1x8x128xf32>
    %106 = vector.broadcast %102 : vector<1x1x128xf32> to vector<1x8x128xf32>
    %107 = arith.mulf %106, %105 : vector<1x8x128xf32>
    %108 = arith.addf %99, %107 : vector<1x8x128xf32>
    %109 = vector.extract_strided_slice %89 {offsets = [0, 2, 0], sizes = [1, 1, 128], strides = [1, 1, 1]} : vector<1x4x128xf32> to vector<1x1x128xf32>
    %110 = vector.shape_cast %109 : vector<1x1x128xf32> to vector<1x128xf32>
    %111 = vector.shape_cast %110 : vector<1x128xf32> to vector<1x1x128xf32>
    %112 = vector.extract_strided_slice %6 {offsets = [2, 0, 0], sizes = [1, 8, 128], strides = [1, 1, 1]} : vector<4x8x128xf32> to vector<1x8x128xf32>
    %113 = vector.shape_cast %112 : vector<1x8x128xf32> to vector<8x128xf32>
    %114 = vector.shape_cast %113 : vector<8x128xf32> to vector<1x8x128xf32>
    %115 = vector.broadcast %111 : vector<1x1x128xf32> to vector<1x8x128xf32>
    %116 = arith.mulf %115, %114 : vector<1x8x128xf32>
    %117 = arith.addf %108, %116 : vector<1x8x128xf32>
    %118 = vector.extract_strided_slice %89 {offsets = [0, 3, 0], sizes = [1, 1, 128], strides = [1, 1, 1]} : vector<1x4x128xf32> to vector<1x1x128xf32>
    %119 = vector.shape_cast %118 : vector<1x1x128xf32> to vector<1x128xf32>
    %120 = vector.shape_cast %119 : vector<1x128xf32> to vector<1x1x128xf32>
    %121 = vector.extract_strided_slice %6 {offsets = [3, 0, 0], sizes = [1, 8, 128], strides = [1, 1, 1]} : vector<4x8x128xf32> to vector<1x8x128xf32>
    %122 = vector.shape_cast %121 : vector<1x8x128xf32> to vector<8x128xf32>
    %123 = vector.shape_cast %122 : vector<8x128xf32> to vector<1x8x128xf32>
    %124 = vector.broadcast %120 : vector<1x1x128xf32> to vector<1x8x128xf32>
    %125 = arith.mulf %124, %123 : vector<1x8x128xf32>
    %126 = arith.addf %117, %125 : vector<1x8x128xf32>
    %c0_9 = arith.constant 0 : index
    %c0_10 = arith.constant 0 : index
    %c0_11 = arith.constant 0 : index
    %127 = vector.load %arg3[%c0_9, %c0_10, %c0_11] : memref<1x16x128xf32, #tpu.memory_space<vmem>>, vector<1x8x128xf32>
    tpu.vector_store %arg3[%c0_9, %c0_10, %c0_11], %126 {strides = array<i32>} : memref<1x16x128xf32, #tpu.memory_space<vmem>>, vector<1x8x128xf32>,
    %128 = vector.extract_strided_slice %3 {offsets = [0, 8, 0], sizes = [1, 8, 128], strides = [1, 1, 1]} : vector<1x16x128xf32> to vector<1x8x128xf32>
    %129 = vector.extract_strided_slice %1 {offsets = [0, 8, 0], sizes = [4, 8, 128], strides = [1, 1, 1]} : vector<4x32x128xf32> to vector<4x8x128xf32>
    %130 = vector.extract_strided_slice %1 {offsets = [0, 24, 0], sizes = [4, 8, 128], strides = [1, 1, 1]} : vector<4x32x128xf32> to vector<4x8x128xf32>
    %cst_12 = arith.constant 0.000000e+00 : f32
    %131 = vector.broadcast %cst_12 : f32 to vector<1x4x128xf32>
    %132 = vector.extract_strided_slice %128 {offsets = [0, 0, 0], sizes = [1, 1, 128], strides = [1, 1, 1]} : vector<1x8x128xf32> to vector<1x1x128xf32>
    %133 = vector.shape_cast %132 : vector<1x1x128xf32> to vector<1x128xf32>
    %134 = vector.shape_cast %133 : vector<1x128xf32> to vector<1x1x128xf32>
    %135 = vector.extract_strided_slice %129 {offsets = [0, 0, 0], sizes = [4, 1, 128], strides = [1, 1, 1]} : vector<4x8x128xf32> to vector<4x1x128xf32>
    %136 = vector.shape_cast %135 : vector<4x1x128xf32> to vector<4x128xf32>
    %137 = vector.shape_cast %136 : vector<4x128xf32> to vector<1x4x128xf32>
    %138 = vector.broadcast %134 : vector<1x1x128xf32> to vector<1x4x128xf32>
    %139 = arith.mulf %138, %137 : vector<1x4x128xf32>
    %140 = arith.addf %131, %139 : vector<1x4x128xf32>
    %141 = vector.extract_strided_slice %128 {offsets = [0, 1, 0], sizes = [1, 1, 128], strides = [1, 1, 1]} : vector<1x8x128xf32> to vector<1x1x128xf32>
    %142 = vector.shape_cast %141 : vector<1x1x128xf32> to vector<1x128xf32>
    %143 = vector.shape_cast %142 : vector<1x128xf32> to vector<1x1x128xf32>
    %144 = vector.extract_strided_slice %129 {offsets = [0, 1, 0], sizes = [4, 1, 128], strides = [1, 1, 1]} : vector<4x8x128xf32> to vector<4x1x128xf32>
    %145 = vector.shape_cast %144 : vector<4x1x128xf32> to vector<4x128xf32>
    %146 = vector.shape_cast %145 : vector<4x128xf32> to vector<1x4x128xf32>
    %147 = vector.broadcast %143 : vector<1x1x128xf32> to vector<1x4x128xf32>
    %148 = arith.mulf %147, %146 : vector<1x4x128xf32>
    %149 = arith.addf %140, %148 : vector<1x4x128xf32>
    %150 = vector.extract_strided_slice %128 {offsets = [0, 2, 0], sizes = [1, 1, 128], strides = [1, 1, 1]} : vector<1x8x128xf32> to vector<1x1x128xf32>
    %151 = vector.shape_cast %150 : vector<1x1x128xf32> to vector<1x128xf32>
    %152 = vector.shape_cast %151 : vector<1x128xf32> to vector<1x1x128xf32>
    %153 = vector.extract_strided_slice %129 {offsets = [0, 2, 0], sizes = [4, 1, 128], strides = [1, 1, 1]} : vector<4x8x128xf32> to vector<4x1x128xf32>
    %154 = vector.shape_cast %153 : vector<4x1x128xf32> to vector<4x128xf32>
    %155 = vector.shape_cast %154 : vector<4x128xf32> to vector<1x4x128xf32>
    %156 = vector.broadcast %152 : vector<1x1x128xf32> to vector<1x4x128xf32>
    %157 = arith.mulf %156, %155 : vector<1x4x128xf32>
    %158 = arith.addf %149, %157 : vector<1x4x128xf32>
    %159 = vector.extract_strided_slice %128 {offsets = [0, 3, 0], sizes = [1, 1, 128], strides = [1, 1, 1]} : vector<1x8x128xf32> to vector<1x1x128xf32>
    %160 = vector.shape_cast %159 : vector<1x1x128xf32> to vector<1x128xf32>
    %161 = vector.shape_cast %160 : vector<1x128xf32> to vector<1x1x128xf32>
    %162 = vector.extract_strided_slice %129 {offsets = [0, 3, 0], sizes = [4, 1, 128], strides = [1, 1, 1]} : vector<4x8x128xf32> to vector<4x1x128xf32>
    %163 = vector.shape_cast %162 : vector<4x1x128xf32> to vector<4x128xf32>
    %164 = vector.shape_cast %163 : vector<4x128xf32> to vector<1x4x128xf32>
    %165 = vector.broadcast %161 : vector<1x1x128xf32> to vector<1x4x128xf32>
    %166 = arith.mulf %165, %164 : vector<1x4x128xf32>
    %167 = arith.addf %158, %166 : vector<1x4x128xf32>
    %168 = vector.extract_strided_slice %128 {offsets = [0, 4, 0], sizes = [1, 1, 128], strides = [1, 1, 1]} : vector<1x8x128xf32> to vector<1x1x128xf32>
    %169 = vector.shape_cast %168 : vector<1x1x128xf32> to vector<1x128xf32>
    %170 = vector.shape_cast %169 : vector<1x128xf32> to vector<1x1x128xf32>
    %171 = vector.extract_strided_slice %129 {offsets = [0, 4, 0], sizes = [4, 1, 128], strides = [1, 1, 1]} : vector<4x8x128xf32> to vector<4x1x128xf32>
    %172 = vector.shape_cast %171 : vector<4x1x128xf32> to vector<4x128xf32>
    %173 = vector.shape_cast %172 : vector<4x128xf32> to vector<1x4x128xf32>
    %174 = vector.broadcast %170 : vector<1x1x128xf32> to vector<1x4x128xf32>
    %175 = arith.mulf %174, %173 : vector<1x4x128xf32>
    %176 = arith.addf %167, %175 : vector<1x4x128xf32>
    %177 = vector.extract_strided_slice %128 {offsets = [0, 5, 0], sizes = [1, 1, 128], strides = [1, 1, 1]} : vector<1x8x128xf32> to vector<1x1x128xf32>
    %178 = vector.shape_cast %177 : vector<1x1x128xf32> to vector<1x128xf32>
    %179 = vector.shape_cast %178 : vector<1x128xf32> to vector<1x1x128xf32>
    %180 = vector.extract_strided_slice %129 {offsets = [0, 5, 0], sizes = [4, 1, 128], strides = [1, 1, 1]} : vector<4x8x128xf32> to vector<4x1x128xf32>
    %181 = vector.shape_cast %180 : vector<4x1x128xf32> to vector<4x128xf32>
    %182 = vector.shape_cast %181 : vector<4x128xf32> to vector<1x4x128xf32>
    %183 = vector.broadcast %179 : vector<1x1x128xf32> to vector<1x4x128xf32>
    %184 = arith.mulf %183, %182 : vector<1x4x128xf32>
    %185 = arith.addf %176, %184 : vector<1x4x128xf32>
    %186 = vector.extract_strided_slice %128 {offsets = [0, 6, 0], sizes = [1, 1, 128], strides = [1, 1, 1]} : vector<1x8x128xf32> to vector<1x1x128xf32>
    %187 = vector.shape_cast %186 : vector<1x1x128xf32> to vector<1x128xf32>
    %188 = vector.shape_cast %187 : vector<1x128xf32> to vector<1x1x128xf32>
    %189 = vector.extract_strided_slice %129 {offsets = [0, 6, 0], sizes = [4, 1, 128], strides = [1, 1, 1]} : vector<4x8x128xf32> to vector<4x1x128xf32>
    %190 = vector.shape_cast %189 : vector<4x1x128xf32> to vector<4x128xf32>
    %191 = vector.shape_cast %190 : vector<4x128xf32> to vector<1x4x128xf32>
    %192 = vector.broadcast %188 : vector<1x1x128xf32> to vector<1x4x128xf32>
    %193 = arith.mulf %192, %191 : vector<1x4x128xf32>
    %194 = arith.addf %185, %193 : vector<1x4x128xf32>
    %195 = vector.extract_strided_slice %128 {offsets = [0, 7, 0], sizes = [1, 1, 128], strides = [1, 1, 1]} : vector<1x8x128xf32> to vector<1x1x128xf32>
    %196 = vector.shape_cast %195 : vector<1x1x128xf32> to vector<1x128xf32>
    %197 = vector.shape_cast %196 : vector<1x128xf32> to vector<1x1x128xf32>
    %198 = vector.extract_strided_slice %129 {offsets = [0, 7, 0], sizes = [4, 1, 128], strides = [1, 1, 1]} : vector<4x8x128xf32> to vector<4x1x128xf32>
    %199 = vector.shape_cast %198 : vector<4x1x128xf32> to vector<4x128xf32>
    %200 = vector.shape_cast %199 : vector<4x128xf32> to vector<1x4x128xf32>
    %201 = vector.broadcast %197 : vector<1x1x128xf32> to vector<1x4x128xf32>
    %202 = arith.mulf %201, %200 : vector<1x4x128xf32>
    %203 = arith.addf %194, %202 : vector<1x4x128xf32>
    %cst_13 = arith.constant dense<0xFF800000> : vector<1x128xf32>
    %204 = vector.multi_reduction <maximumf>, %203, %cst_13 [1] : vector<1x4x128xf32> to vector<1x128xf32>
    %205 = vector.shape_cast %204 : vector<1x128xf32> to vector<1x1x128xf32>
    %206 = vector.broadcast %205 : vector<1x1x128xf32> to vector<1x4x128xf32>
    %207 = arith.subf %203, %206 : vector<1x4x128xf32>
    %208 = math.exp %207 : vector<1x4x128xf32>
    %cst_14 = arith.constant dense<0.000000e+00> : vector<1x128xf32>
    %209 = vector.multi_reduction <add>, %208, %cst_14 [1] : vector<1x4x128xf32> to vector<1x128xf32>
    %210 = vector.shape_cast %209 : vector<1x128xf32> to vector<1x1x128xf32>
    %211 = tpu.reciprocal %210 {approx = true} : vector<1x1x128xf32> -> vector<1x1x128xf32>
    %212 = vector.broadcast %211 : vector<1x1x128xf32> to vector<1x4x128xf32>
    %213 = arith.mulf %208, %212 : vector<1x4x128xf32>
    %cst_15 = arith.constant 0.000000e+00 : f32
    %214 = vector.broadcast %cst_15 : f32 to vector<1x8x128xf32>
    %215 = vector.extract_strided_slice %213 {offsets = [0, 0, 0], sizes = [1, 1, 128], strides = [1, 1, 1]} : vector<1x4x128xf32> to vector<1x1x128xf32>
    %216 = vector.shape_cast %215 : vector<1x1x128xf32> to vector<1x128xf32>
    %217 = vector.shape_cast %216 : vector<1x128xf32> to vector<1x1x128xf32>
    %218 = vector.extract_strided_slice %130 {offsets = [0, 0, 0], sizes = [1, 8, 128], strides = [1, 1, 1]} : vector<4x8x128xf32> to vector<1x8x128xf32>
    %219 = vector.shape_cast %218 : vector<1x8x128xf32> to vector<8x128xf32>
    %220 = vector.shape_cast %219 : vector<8x128xf32> to vector<1x8x128xf32>
    %221 = vector.broadcast %217 : vector<1x1x128xf32> to vector<1x8x128xf32>
    %222 = arith.mulf %221, %220 : vector<1x8x128xf32>
    %223 = arith.addf %214, %222 : vector<1x8x128xf32>
    %224 = vector.extract_strided_slice %213 {offsets = [0, 1, 0], sizes = [1, 1, 128], strides = [1, 1, 1]} : vector<1x4x128xf32> to vector<1x1x128xf32>
    %225 = vector.shape_cast %224 : vector<1x1x128xf32> to vector<1x128xf32>
    %226 = vector.shape_cast %225 : vector<1x128xf32> to vector<1x1x128xf32>
    %227 = vector.extract_strided_slice %130 {offsets = [1, 0, 0], sizes = [1, 8, 128], strides = [1, 1, 1]} : vector<4x8x128xf32> to vector<1x8x128xf32>
    %228 = vector.shape_cast %227 : vector<1x8x128xf32> to vector<8x128xf32>
    %229 = vector.shape_cast %228 : vector<8x128xf32> to vector<1x8x128xf32>
    %230 = vector.broadcast %226 : vector<1x1x128xf32> to vector<1x8x128xf32>
    %231 = arith.mulf %230, %229 : vector<1x8x128xf32>
    %232 = arith.addf %223, %231 : vector<1x8x128xf32>
    %233 = vector.extract_strided_slice %213 {offsets = [0, 2, 0], sizes = [1, 1, 128], strides = [1, 1, 1]} : vector<1x4x128xf32> to vector<1x1x128xf32>
    %234 = vector.shape_cast %233 : vector<1x1x128xf32> to vector<1x128xf32>
    %235 = vector.shape_cast %234 : vector<1x128xf32> to vector<1x1x128xf32>
    %236 = vector.extract_strided_slice %130 {offsets = [2, 0, 0], sizes = [1, 8, 128], strides = [1, 1, 1]} : vector<4x8x128xf32> to vector<1x8x128xf32>
    %237 = vector.shape_cast %236 : vector<1x8x128xf32> to vector<8x128xf32>
    %238 = vector.shape_cast %237 : vector<8x128xf32> to vector<1x8x128xf32>
    %239 = vector.broadcast %235 : vector<1x1x128xf32> to vector<1x8x128xf32>
    %240 = arith.mulf %239, %238 : vector<1x8x128xf32>
    %241 = arith.addf %232, %240 : vector<1x8x128xf32>
    %242 = vector.extract_strided_slice %213 {offsets = [0, 3, 0], sizes = [1, 1, 128], strides = [1, 1, 1]} : vector<1x4x128xf32> to vector<1x1x128xf32>
    %243 = vector.shape_cast %242 : vector<1x1x128xf32> to vector<1x128xf32>
    %244 = vector.shape_cast %243 : vector<1x128xf32> to vector<1x1x128xf32>
    %245 = vector.extract_strided_slice %130 {offsets = [3, 0, 0], sizes = [1, 8, 128], strides = [1, 1, 1]} : vector<4x8x128xf32> to vector<1x8x128xf32>
    %246 = vector.shape_cast %245 : vector<1x8x128xf32> to vector<8x128xf32>
    %247 = vector.shape_cast %246 : vector<8x128xf32> to vector<1x8x128xf32>
    %248 = vector.broadcast %244 : vector<1x1x128xf32> to vector<1x8x128xf32>
    %249 = arith.mulf %248, %247 : vector<1x8x128xf32>
    %250 = arith.addf %241, %249 : vector<1x8x128xf32>
    %c0_16 = arith.constant 0 : index
    %c8 = arith.constant 8 : index
    %c0_17 = arith.constant 0 : index
    %251 = vector.load %arg3[%c0_16, %c8, %c0_17] : memref<1x16x128xf32, #tpu.memory_space<vmem>>, vector<1x8x128xf32>
    tpu.vector_store %arg3[%c0_16, %c8, %c0_17], %250 {strides = array<i32>} : memref<1x16x128xf32, #tpu.memory_space<vmem>>, vector<1x8x128xf32>,
    return
  }
  func.func @transform_0(%arg0: i32) -> (i32, i32, i32) {
    %c0_i32 = arith.constant 0 : i32
    %c0_i32_0 = arith.constant 0 : i32
    %c0_i32_1 = arith.constant 0 : i32
    return %c0_i32, %c0_i32_0, %arg0 : i32, i32, i32
  }
  func.func @transform_1(%arg0: i32) -> (i32, i32, i32) {
    %c0_i32 = arith.constant 0 : i32
    %c0_i32_0 = arith.constant 0 : i32
    %c0_i32_1 = arith.constant 0 : i32
    return %c0_i32, %c0_i32_0, %arg0 : i32, i32, i32
  }
  func.func @transform_2(%arg0: i32) -> (i32, i32, i32) {
    %c0_i32 = arith.constant 0 : i32
    %c0_i32_0 = arith.constant 0 : i32
    %c0_i32_1 = arith.constant 0 : i32
    return %c0_i32, %c0_i32_0, %arg0 : i32, i32, i32
  }
}

module attributes {stable_mosaic.version = 11 : i64} {
  func.func @_fm_matmul_kernel(%arg0: i32, %arg1: i32, %arg2: memref<16x16xbf16, #tpu.memory_space<vmem>>, %arg3: memref<1x16x128xf32, #tpu.memory_space<vmem>>, %arg4: memref<1x1x1xf32, #tpu.memory_space<vmem>>, %arg5: memref<1x16x1xf32, #tpu.memory_space<vmem>>, %arg6: memref<1x16x128xf32, #tpu.memory_space<vmem>>) attributes {dimension_semantics = [#tpu.dimension_semantics<parallel>, #tpu.dimension_semantics<parallel>], iteration_bounds = array<i64: 1, 1>, scalar_prefetch = 0 : i64, scratch_operands = 0 : i64, tpu.core_type = #tpu.core_type<tc>, window_params = [{pipeline_mode = #tpu.pipeline_mode<synchronous>, transform_indices = @transform_0, window_bounds = array<i64: 16, 16>}, {transform_indices = @transform_1, window_bounds = array<i64: 1, 16, 128>}, {pipeline_mode = #tpu.pipeline_mode<synchronous>, transform_indices = @transform_2, window_bounds = array<i64: 1, 1, 1>}, {pipeline_mode = #tpu.pipeline_mode<synchronous>, transform_indices = @transform_3, window_bounds = array<i64: 1, 16, 1>}, {transform_indices = @transform_4, window_bounds = array<i64: 1, 16, 128>}]} {
    %c0 = arith.constant 0 : index
    %c0_0 = arith.constant 0 : index
    %0 = vector.load %arg2[%c0, %c0_0] : memref<16x16xbf16, #tpu.memory_space<vmem>>, vector<16x16xbf16>
    %c0_1 = arith.constant 0 : index
    %c0_2 = arith.constant 0 : index
    %c0_3 = arith.constant 0 : index
    %1 = vector.load %arg3[%c0_1, %c0_2, %c0_3] : memref<1x16x128xf32, #tpu.memory_space<vmem>>, vector<1x16x128xf32>
    %2 = vector.shape_cast %1 : vector<1x16x128xf32> to vector<16x128xf32>
    %3 = arith.truncf %2 : vector<16x128xf32> to vector<16x128xbf16>
    %cst = arith.constant dense<0.000000e+00> : vector<16x128xf32>
    %4 = tpu.matmul %0, %3, %cst {dimension_numbers = #tpu.dot_dimension_numbers<[1], [0], [0], [1], [0, 0, 1, 1], [], []>} : vector<16x16xbf16>, vector<16x128xbf16>, vector<16x128xf32> -> vector<16x128xf32>
    %c0_4 = arith.constant 0 : index
    %c0_5 = arith.constant 0 : index
    %c0_6 = arith.constant 0 : index
    %5 = vector.load %arg4[%c0_4, %c0_5, %c0_6] : memref<1x1x1xf32, #tpu.memory_space<vmem>>, vector<1x1x1xf32>
    %6 = vector.shape_cast %5 : vector<1x1x1xf32> to vector<1x1xf32>
    %7 = vector.broadcast %6 : vector<1x1xf32> to vector<16x128xf32>
    %8 = arith.mulf %4, %7 : vector<16x128xf32>
    %c0_7 = arith.constant 0 : index
    %c0_8 = arith.constant 0 : index
    %c0_9 = arith.constant 0 : index
    %9 = vector.load %arg5[%c0_7, %c0_8, %c0_9] : memref<1x16x1xf32, #tpu.memory_space<vmem>>, vector<1x16x1xf32>
    %10 = vector.shape_cast %9 : vector<1x16x1xf32> to vector<16x1xf32>
    %11 = vector.broadcast %10 : vector<16x1xf32> to vector<16x128xf32>
    %12 = arith.addf %8, %11 : vector<16x128xf32>
    %cst_10 = arith.constant 0.000000e+00 : f32
    %13 = vector.broadcast %cst_10 : f32 to vector<16x128xf32>
    %14 = arith.maximumf %12, %13 : vector<16x128xf32>
    %c0_11 = arith.constant 0 : index
    %c0_12 = arith.constant 0 : index
    %c0_13 = arith.constant 0 : index
    %15 = vector.load %arg6[%c0_11, %c0_12, %c0_13] : memref<1x16x128xf32, #tpu.memory_space<vmem>>, vector<1x16x128xf32>
    %16 = vector.shape_cast %15 : vector<1x16x128xf32> to vector<16x128xf32>
    %17 = vector.shape_cast %14 : vector<16x128xf32> to vector<1x16x128xf32>
    tpu.vector_store %arg6[%c0_11, %c0_12, %c0_13], %17 {strides = array<i32>} : memref<1x16x128xf32, #tpu.memory_space<vmem>>, vector<1x16x128xf32>,
    return
  }
  func.func @transform_0(%arg0: i32, %arg1: i32) -> (i32, i32) {
    %c0_i32 = arith.constant 0 : i32
    %c0_i32_0 = arith.constant 0 : i32
    %c0_i32_1 = arith.constant 0 : i32
    return %c0_i32, %c0_i32_0 : i32, i32
  }
  func.func @transform_1(%arg0: i32, %arg1: i32) -> (i32, i32, i32) {
    %c0_i32 = arith.constant 0 : i32
    %c0_i32_0 = arith.constant 0 : i32
    return %arg0, %c0_i32, %arg1 : i32, i32, i32
  }
  func.func @transform_2(%arg0: i32, %arg1: i32) -> (i32, i32, i32) {
    %c0_i32 = arith.constant 0 : i32
    %c0_i32_0 = arith.constant 0 : i32
    %c0_i32_1 = arith.constant 0 : i32
    %c0_i32_2 = arith.constant 0 : i32
    return %c0_i32, %c0_i32_0, %c0_i32_1 : i32, i32, i32
  }
  func.func @transform_3(%arg0: i32, %arg1: i32) -> (i32, i32, i32) {
    %c0_i32 = arith.constant 0 : i32
    %c0_i32_0 = arith.constant 0 : i32
    %c0_i32_1 = arith.constant 0 : i32
    %c0_i32_2 = arith.constant 0 : i32
    return %c0_i32, %c0_i32_0, %c0_i32_1 : i32, i32, i32
  }
  func.func @transform_4(%arg0: i32, %arg1: i32) -> (i32, i32, i32) {
    %c0_i32 = arith.constant 0 : i32
    %c0_i32_0 = arith.constant 0 : i32
    return %arg0, %c0_i32, %arg1 : i32, i32, i32
  }
}

module attributes {stable_mosaic.version = 11 : i64} {
  func.func @_fm_matmul_kernel(%arg0: i32, %arg1: i32, %arg2: memref<8x16xbf16, #tpu.memory_space<vmem>>, %arg3: memref<1x16x128xf32, #tpu.memory_space<vmem>>, %arg4: memref<1x1x1xf32, #tpu.memory_space<vmem>>, %arg5: memref<1x8x1xf32, #tpu.memory_space<vmem>>, %arg6: memref<1x8x128xf32, #tpu.memory_space<vmem>>) attributes {dimension_semantics = [#tpu.dimension_semantics<parallel>, #tpu.dimension_semantics<parallel>], iteration_bounds = array<i64: 1, 1>, scalar_prefetch = 0 : i64, scratch_operands = 0 : i64, tpu.core_type = #tpu.core_type<tc>, window_params = [{pipeline_mode = #tpu.pipeline_mode<synchronous>, transform_indices = @transform_0, window_bounds = array<i64: 8, 16>}, {transform_indices = @transform_1, window_bounds = array<i64: 1, 16, 128>}, {pipeline_mode = #tpu.pipeline_mode<synchronous>, transform_indices = @transform_2, window_bounds = array<i64: 1, 1, 1>}, {pipeline_mode = #tpu.pipeline_mode<synchronous>, transform_indices = @transform_3, window_bounds = array<i64: 1, 8, 1>}, {transform_indices = @transform_4, window_bounds = array<i64: 1, 8, 128>}]} {
    %c0 = arith.constant 0 : index
    %c0_0 = arith.constant 0 : index
    %0 = vector.load %arg2[%c0, %c0_0] : memref<8x16xbf16, #tpu.memory_space<vmem>>, vector<8x16xbf16>
    %c0_1 = arith.constant 0 : index
    %c0_2 = arith.constant 0 : index
    %c0_3 = arith.constant 0 : index
    %1 = vector.load %arg3[%c0_1, %c0_2, %c0_3] : memref<1x16x128xf32, #tpu.memory_space<vmem>>, vector<1x16x128xf32>
    %2 = vector.shape_cast %1 : vector<1x16x128xf32> to vector<16x128xf32>
    %3 = arith.truncf %2 : vector<16x128xf32> to vector<16x128xbf16>
    %cst = arith.constant dense<0.000000e+00> : vector<8x128xf32>
    %4 = tpu.matmul %0, %3, %cst {dimension_numbers = #tpu.dot_dimension_numbers<[1], [0], [0], [1], [0, 0, 1, 1], [], []>} : vector<8x16xbf16>, vector<16x128xbf16>, vector<8x128xf32> -> vector<8x128xf32>
    %c0_4 = arith.constant 0 : index
    %c0_5 = arith.constant 0 : index
    %c0_6 = arith.constant 0 : index
    %5 = vector.load %arg4[%c0_4, %c0_5, %c0_6] : memref<1x1x1xf32, #tpu.memory_space<vmem>>, vector<1x1x1xf32>
    %6 = vector.shape_cast %5 : vector<1x1x1xf32> to vector<1x1xf32>
    %7 = vector.broadcast %6 : vector<1x1xf32> to vector<8x128xf32>
    %8 = arith.mulf %4, %7 : vector<8x128xf32>
    %c0_7 = arith.constant 0 : index
    %c0_8 = arith.constant 0 : index
    %c0_9 = arith.constant 0 : index
    %9 = vector.load %arg5[%c0_7, %c0_8, %c0_9] : memref<1x8x1xf32, #tpu.memory_space<vmem>>, vector<1x8x1xf32>
    %10 = vector.shape_cast %9 : vector<1x8x1xf32> to vector<8x1xf32>
    %11 = vector.broadcast %10 : vector<8x1xf32> to vector<8x128xf32>
    %12 = arith.addf %8, %11 : vector<8x128xf32>
    %cst_10 = arith.constant 0.000000e+00 : f32
    %13 = vector.broadcast %cst_10 : f32 to vector<8x128xf32>
    %14 = arith.subf %13, %12 : vector<8x128xf32>
    %15 = math.exp %14 : vector<8x128xf32>
    %cst_11 = arith.constant 1.000000e+00 : f32
    %16 = vector.broadcast %cst_11 : f32 to vector<8x128xf32>
    %17 = arith.addf %16, %15 : vector<8x128xf32>
    %cst_12 = arith.constant 1.000000e+00 : f32
    %18 = vector.broadcast %cst_12 : f32 to vector<8x128xf32>
    %19 = arith.divf %18, %17 : vector<8x128xf32>
    %c0_13 = arith.constant 0 : index
    %c0_14 = arith.constant 0 : index
    %c0_15 = arith.constant 0 : index
    %20 = vector.load %arg6[%c0_13, %c0_14, %c0_15] : memref<1x8x128xf32, #tpu.memory_space<vmem>>, vector<1x8x128xf32>
    %21 = vector.shape_cast %20 : vector<1x8x128xf32> to vector<8x128xf32>
    %22 = vector.shape_cast %19 : vector<8x128xf32> to vector<1x8x128xf32>
    tpu.vector_store %arg6[%c0_13, %c0_14, %c0_15], %22 {strides = array<i32>} : memref<1x8x128xf32, #tpu.memory_space<vmem>>, vector<1x8x128xf32>,
    return
  }
  func.func @transform_0(%arg0: i32, %arg1: i32) -> (i32, i32) {
    %c0_i32 = arith.constant 0 : i32
    %c0_i32_0 = arith.constant 0 : i32
    %c0_i32_1 = arith.constant 0 : i32
    return %c0_i32, %c0_i32_0 : i32, i32
  }
  func.func @transform_1(%arg0: i32, %arg1: i32) -> (i32, i32, i32) {
    %c0_i32 = arith.constant 0 : i32
    %c0_i32_0 = arith.constant 0 : i32
    return %arg0, %c0_i32, %arg1 : i32, i32, i32
  }
  func.func @transform_2(%arg0: i32, %arg1: i32) -> (i32, i32, i32) {
    %c0_i32 = arith.constant 0 : i32
    %c0_i32_0 = arith.constant 0 : i32
    %c0_i32_1 = arith.constant 0 : i32
    %c0_i32_2 = arith.constant 0 : i32
    return %c0_i32, %c0_i32_0, %c0_i32_1 : i32, i32, i32
  }
  func.func @transform_3(%arg0: i32, %arg1: i32) -> (i32, i32, i32) {
    %c0_i32 = arith.constant 0 : i32
    %c0_i32_0 = arith.constant 0 : i32
    %c0_i32_1 = arith.constant 0 : i32
    %c0_i32_2 = arith.constant 0 : i32
    return %c0_i32, %c0_i32_0, %c0_i32_1 : i32, i32, i32
  }
  func.func @transform_4(%arg0: i32, %arg1: i32) -> (i32, i32, i32) {
    %c0_i32 = arith.constant 0 : i32
    %c0_i32_0 = arith.constant 0 : i32
    return %arg0, %c0_i32, %arg1 : i32, i32, i32
  }
}

module attributes {stable_mosaic.version = 11 : i64} {
  func.func @_fm_matmul_kernel(%arg0: i32, %arg1: i32, %arg2: memref<24x96xbf16, #tpu.memory_space<vmem>>, %arg3: memref<1x96x32xf32, #tpu.memory_space<vmem>>, %arg4: memref<1x24x1xf32, #tpu.memory_space<vmem>>, %arg5: memref<1x24x1xf32, #tpu.memory_space<vmem>>, %arg6: memref<1x24x32xf32, #tpu.memory_space<vmem>>) attributes {dimension_semantics = [#tpu.dimension_semantics<parallel>, #tpu.dimension_semantics<parallel>], iteration_bounds = array<i64: 1, 1>, scalar_prefetch = 0 : i64, scratch_operands = 0 : i64, tpu.core_type = #tpu.core_type<tc>, window_params = [{pipeline_mode = #tpu.pipeline_mode<synchronous>, transform_indices = @transform_0, window_bounds = array<i64: 24, 96>}, {transform_indices = @transform_1, window_bounds = array<i64: 1, 96, 32>}, {pipeline_mode = #tpu.pipeline_mode<synchronous>, transform_indices = @transform_2, window_bounds = array<i64: 1, 24, 1>}, {pipeline_mode = #tpu.pipeline_mode<synchronous>, transform_indices = @transform_3, window_bounds = array<i64: 1, 24, 1>}, {transform_indices = @transform_4, window_bounds = array<i64: 1, 24, 32>}]} {
    %c0 = arith.constant 0 : index
    %c0_0 = arith.constant 0 : index
    %0 = vector.load %arg2[%c0, %c0_0] : memref<24x96xbf16, #tpu.memory_space<vmem>>, vector<24x96xbf16>
    %c0_1 = arith.constant 0 : index
    %c0_2 = arith.constant 0 : index
    %c0_3 = arith.constant 0 : index
    %1 = vector.load %arg3[%c0_1, %c0_2, %c0_3] : memref<1x96x32xf32, #tpu.memory_space<vmem>>, vector<1x96x32xf32>
    %2 = vector.shape_cast %1 : vector<1x96x32xf32> to vector<96x32xf32>
    %3 = arith.truncf %2 : vector<96x32xf32> to vector<96x32xbf16>
    %cst = arith.constant dense<0.000000e+00> : vector<24x32xf32>
    %4 = tpu.matmul %0, %3, %cst {dimension_numbers = #tpu.dot_dimension_numbers<[1], [0], [0], [1], [0, 0, 1, 1], [], []>} : vector<24x96xbf16>, vector<96x32xbf16>, vector<24x32xf32> -> vector<24x32xf32>
    %c0_4 = arith.constant 0 : index
    %c0_5 = arith.constant 0 : index
    %c0_6 = arith.constant 0 : index
    %5 = vector.load %arg4[%c0_4, %c0_5, %c0_6] : memref<1x24x1xf32, #tpu.memory_space<vmem>>, vector<1x24x1xf32>
    %6 = vector.shape_cast %5 : vector<1x24x1xf32> to vector<24x1xf32>
    %7 = vector.broadcast %6 : vector<24x1xf32> to vector<24x32xf32>
    %8 = arith.mulf %4, %7 : vector<24x32xf32>
    %c0_7 = arith.constant 0 : index
    %c0_8 = arith.constant 0 : index
    %c0_9 = arith.constant 0 : index
    %9 = vector.load %arg5[%c0_7, %c0_8, %c0_9] : memref<1x24x1xf32, #tpu.memory_space<vmem>>, vector<1x24x1xf32>
    %10 = vector.shape_cast %9 : vector<1x24x1xf32> to vector<24x1xf32>
    %11 = vector.broadcast %10 : vector<24x1xf32> to vector<24x32xf32>
    %12 = arith.addf %8, %11 : vector<24x32xf32>
    %cst_10 = arith.constant 0.000000e+00 : f32
    %13 = vector.broadcast %cst_10 : f32 to vector<24x32xf32>
    %14 = arith.cmpf ogt, %12, %13 : vector<24x32xf32>
    %cst_11 = arith.constant 0.000000e+00 : f32
    %15 = vector.broadcast %cst_11 : f32 to vector<24x32xf32>
    %16 = arith.minimumf %12, %15 : vector<24x32xf32>
    %17 = math.exp %16 : vector<24x32xf32>
    %cst_12 = arith.constant 1.000000e+00 : f32
    %18 = vector.broadcast %cst_12 : f32 to vector<24x32xf32>
    %19 = arith.subf %17, %18 : vector<24x32xf32>
    %20 = arith.select %14, %12, %19 : vector<24x32xi1>, vector<24x32xf32>
    %c0_13 = arith.constant 0 : index
    %c0_14 = arith.constant 0 : index
    %c0_15 = arith.constant 0 : index
    %21 = vector.load %arg6[%c0_13, %c0_14, %c0_15] : memref<1x24x32xf32, #tpu.memory_space<vmem>>, vector<1x24x32xf32>
    %22 = vector.shape_cast %21 : vector<1x24x32xf32> to vector<24x32xf32>
    %23 = vector.shape_cast %20 : vector<24x32xf32> to vector<1x24x32xf32>
    tpu.vector_store %arg6[%c0_13, %c0_14, %c0_15], %23 {strides = array<i32>} : memref<1x24x32xf32, #tpu.memory_space<vmem>>, vector<1x24x32xf32>,
    return
  }
  func.func @transform_0(%arg0: i32, %arg1: i32) -> (i32, i32) {
    %c0_i32 = arith.constant 0 : i32
    %c0_i32_0 = arith.constant 0 : i32
    %c0_i32_1 = arith.constant 0 : i32
    return %c0_i32, %c0_i32_0 : i32, i32
  }
  func.func @transform_1(%arg0: i32, %arg1: i32) -> (i32, i32, i32) {
    %c0_i32 = arith.constant 0 : i32
    %c0_i32_0 = arith.constant 0 : i32
    return %arg0, %c0_i32, %arg1 : i32, i32, i32
  }
  func.func @transform_2(%arg0: i32, %arg1: i32) -> (i32, i32, i32) {
    %c0_i32 = arith.constant 0 : i32
    %c0_i32_0 = arith.constant 0 : i32
    %c0_i32_1 = arith.constant 0 : i32
    %c0_i32_2 = arith.constant 0 : i32
    return %c0_i32, %c0_i32_0, %c0_i32_1 : i32, i32, i32
  }
  func.func @transform_3(%arg0: i32, %arg1: i32) -> (i32, i32, i32) {
    %c0_i32 = arith.constant 0 : i32
    %c0_i32_0 = arith.constant 0 : i32
    %c0_i32_1 = arith.constant 0 : i32
    %c0_i32_2 = arith.constant 0 : i32
    return %c0_i32, %c0_i32_0, %c0_i32_1 : i32, i32, i32
  }
  func.func @transform_4(%arg0: i32, %arg1: i32) -> (i32, i32, i32) {
    %c0_i32 = arith.constant 0 : i32
    %c0_i32_0 = arith.constant 0 : i32
    return %arg0, %c0_i32, %arg1 : i32, i32, i32
  }
}

module attributes {stable_mosaic.version = 11 : i64} {
  func.func @_fm_matmul_kernel(%arg0: i32, %arg1: i32, %arg2: memref<2x8xbf16, #tpu.memory_space<vmem>>, %arg3: memref<1x8x2xf32, #tpu.memory_space<vmem>>, %arg4: memref<1x1x1xf32, #tpu.memory_space<vmem>>, %arg5: memref<1x2x1xf32, #tpu.memory_space<vmem>>, %arg6: memref<1x2x2xf32, #tpu.memory_space<vmem>>) attributes {dimension_semantics = [#tpu.dimension_semantics<parallel>, #tpu.dimension_semantics<parallel>], iteration_bounds = array<i64: 1, 1>, scalar_prefetch = 0 : i64, scratch_operands = 0 : i64, tpu.core_type = #tpu.core_type<tc>, window_params = [{pipeline_mode = #tpu.pipeline_mode<synchronous>, transform_indices = @transform_0, window_bounds = array<i64: 2, 8>}, {transform_indices = @transform_1, window_bounds = array<i64: 1, 8, 2>}, {pipeline_mode = #tpu.pipeline_mode<synchronous>, transform_indices = @transform_2, window_bounds = array<i64: 1, 1, 1>}, {pipeline_mode = #tpu.pipeline_mode<synchronous>, transform_indices = @transform_3, window_bounds = array<i64: 1, 2, 1>}, {transform_indices = @transform_4, window_bounds = array<i64: 1, 2, 2>}]} {
    %c0 = arith.constant 0 : index
    %c0_0 = arith.constant 0 : index
    %0 = vector.load %arg2[%c0, %c0_0] : memref<2x8xbf16, #tpu.memory_space<vmem>>, vector<2x8xbf16>
    %c0_1 = arith.constant 0 : index
    %c0_2 = arith.constant 0 : index
    %c0_3 = arith.constant 0 : index
    %1 = vector.load %arg3[%c0_1, %c0_2, %c0_3] : memref<1x8x2xf32, #tpu.memory_space<vmem>>, vector<1x8x2xf32>
    %2 = vector.shape_cast %1 : vector<1x8x2xf32> to vector<8x2xf32>
    %3 = arith.truncf %2 : vector<8x2xf32> to vector<8x2xbf16>
    %cst = arith.constant dense<0.000000e+00> : vector<2x2xf32>
    %4 = tpu.matmul %0, %3, %cst {dimension_numbers = #tpu.dot_dimension_numbers<[1], [0], [0], [1], [0, 0, 1, 1], [], []>} : vector<2x8xbf16>, vector<8x2xbf16>, vector<2x2xf32> -> vector<2x2xf32>
    %c0_4 = arith.constant 0 : index
    %c0_5 = arith.constant 0 : index
    %c0_6 = arith.constant 0 : index
    %5 = vector.load %arg4[%c0_4, %c0_5, %c0_6] : memref<1x1x1xf32, #tpu.memory_space<vmem>>, vector<1x1x1xf32>
    %6 = vector.shape_cast %5 : vector<1x1x1xf32> to vector<1x1xf32>
    %7 = vector.broadcast %6 : vector<1x1xf32> to vector<2x2xf32>
    %8 = arith.mulf %4, %7 : vector<2x2xf32>
    %c0_7 = arith.constant 0 : index
    %c0_8 = arith.constant 0 : index
    %c0_9 = arith.constant 0 : index
    %9 = vector.load %arg5[%c0_7, %c0_8, %c0_9] : memref<1x2x1xf32, #tpu.memory_space<vmem>>, vector<1x2x1xf32>
    %10 = vector.shape_cast %9 : vector<1x2x1xf32> to vector<2x1xf32>
    %11 = vector.broadcast %10 : vector<2x1xf32> to vector<2x2xf32>
    %12 = arith.addf %8, %11 : vector<2x2xf32>
    %c0_10 = arith.constant 0 : index
    %c0_11 = arith.constant 0 : index
    %c0_12 = arith.constant 0 : index
    %13 = vector.load %arg6[%c0_10, %c0_11, %c0_12] : memref<1x2x2xf32, #tpu.memory_space<vmem>>, vector<1x2x2xf32>
    %14 = vector.shape_cast %13 : vector<1x2x2xf32> to vector<2x2xf32>
    %15 = vector.shape_cast %12 : vector<2x2xf32> to vector<1x2x2xf32>
    tpu.vector_store %arg6[%c0_10, %c0_11, %c0_12], %15 {strides = array<i32>} : memref<1x2x2xf32, #tpu.memory_space<vmem>>, vector<1x2x2xf32>,
    return
  }
  func.func @transform_0(%arg0: i32, %arg1: i32) -> (i32, i32) {
    %c0_i32 = arith.constant 0 : i32
    %c0_i32_0 = arith.constant 0 : i32
    %c0_i32_1 = arith.constant 0 : i32
    return %c0_i32, %c0_i32_0 : i32, i32
  }
  func.func @transform_1(%arg0: i32, %arg1: i32) -> (i32, i32, i32) {
    %c0_i32 = arith.constant 0 : i32
    %c0_i32_0 = arith.constant 0 : i32
    return %arg0, %c0_i32, %arg1 : i32, i32, i32
  }
  func.func @transform_2(%arg0: i32, %arg1: i32) -> (i32, i32, i32) {
    %c0_i32 = arith.constant 0 : i32
    %c0_i32_0 = arith.constant 0 : i32
    %c0_i32_1 = arith.constant 0 : i32
    %c0_i32_2 = arith.constant 0 : i32
    return %c0_i32, %c0_i32_0, %c0_i32_1 : i32, i32, i32
  }
  func.func @transform_3(%arg0: i32, %arg1: i32) -> (i32, i32, i32) {
    %c0_i32 = arith.constant 0 : i32
    %c0_i32_0 = arith.constant 0 : i32
    %c0_i32_1 = arith.constant 0 : i32
    %c0_i32_2 = arith.constant 0 : i32
    return %c0_i32, %c0_i32_0, %c0_i32_1 : i32, i32, i32
  }
  func.func @transform_4(%arg0: i32, %arg1: i32) -> (i32, i32, i32) {
    %c0_i32 = arith.constant 0 : i32
    %c0_i32_0 = arith.constant 0 : i32
    return %arg0, %c0_i32, %arg1 : i32, i32, i32
  }
}

module attributes {stable_mosaic.version = 11 : i64} {
  func.func @_fm_matmul_kernel(%arg0: i32, %arg1: i32, %arg2: memref<8x24xbf16, #tpu.memory_space<vmem>>, %arg3: memref<1x24x2xf32, #tpu.memory_space<vmem>>, %arg4: memref<1x1x1xf32, #tpu.memory_space<vmem>>, %arg5: memref<1x8x1xf32, #tpu.memory_space<vmem>>, %arg6: memref<1x8x2xf32, #tpu.memory_space<vmem>>) attributes {dimension_semantics = [#tpu.dimension_semantics<parallel>, #tpu.dimension_semantics<parallel>], iteration_bounds = array<i64: 1, 1>, scalar_prefetch = 0 : i64, scratch_operands = 0 : i64, tpu.core_type = #tpu.core_type<tc>, window_params = [{pipeline_mode = #tpu.pipeline_mode<synchronous>, transform_indices = @transform_0, window_bounds = array<i64: 8, 24>}, {transform_indices = @transform_1, window_bounds = array<i64: 1, 24, 2>}, {pipeline_mode = #tpu.pipeline_mode<synchronous>, transform_indices = @transform_2, window_bounds = array<i64: 1, 1, 1>}, {pipeline_mode = #tpu.pipeline_mode<synchronous>, transform_indices = @transform_3, window_bounds = array<i64: 1, 8, 1>}, {transform_indices = @transform_4, window_bounds = array<i64: 1, 8, 2>}]} {
    %c0 = arith.constant 0 : index
    %c0_0 = arith.constant 0 : index
    %0 = vector.load %arg2[%c0, %c0_0] : memref<8x24xbf16, #tpu.memory_space<vmem>>, vector<8x24xbf16>
    %c0_1 = arith.constant 0 : index
    %c0_2 = arith.constant 0 : index
    %c0_3 = arith.constant 0 : index
    %1 = vector.load %arg3[%c0_1, %c0_2, %c0_3] : memref<1x24x2xf32, #tpu.memory_space<vmem>>, vector<1x24x2xf32>
    %2 = vector.shape_cast %1 : vector<1x24x2xf32> to vector<24x2xf32>
    %3 = arith.truncf %2 : vector<24x2xf32> to vector<24x2xbf16>
    %cst = arith.constant dense<0.000000e+00> : vector<8x2xf32>
    %4 = tpu.matmul %0, %3, %cst {dimension_numbers = #tpu.dot_dimension_numbers<[1], [0], [0], [1], [0, 0, 1, 1], [], []>} : vector<8x24xbf16>, vector<24x2xbf16>, vector<8x2xf32> -> vector<8x2xf32>
    %c0_4 = arith.constant 0 : index
    %c0_5 = arith.constant 0 : index
    %c0_6 = arith.constant 0 : index
    %5 = vector.load %arg4[%c0_4, %c0_5, %c0_6] : memref<1x1x1xf32, #tpu.memory_space<vmem>>, vector<1x1x1xf32>
    %6 = vector.shape_cast %5 : vector<1x1x1xf32> to vector<1x1xf32>
    %7 = vector.broadcast %6 : vector<1x1xf32> to vector<8x2xf32>
    %8 = arith.mulf %4, %7 : vector<8x2xf32>
    %c0_7 = arith.constant 0 : index
    %c0_8 = arith.constant 0 : index
    %c0_9 = arith.constant 0 : index
    %9 = vector.load %arg5[%c0_7, %c0_8, %c0_9] : memref<1x8x1xf32, #tpu.memory_space<vmem>>, vector<1x8x1xf32>
    %10 = vector.shape_cast %9 : vector<1x8x1xf32> to vector<8x1xf32>
    %11 = vector.broadcast %10 : vector<8x1xf32> to vector<8x2xf32>
    %12 = arith.addf %8, %11 : vector<8x2xf32>
    %cst_10 = arith.constant 0.000000e+00 : f32
    %13 = vector.broadcast %cst_10 : f32 to vector<8x2xf32>
    %14 = arith.cmpf ogt, %12, %13 : vector<8x2xf32>
    %cst_11 = arith.constant 0.000000e+00 : f32
    %15 = vector.broadcast %cst_11 : f32 to vector<8x2xf32>
    %16 = arith.minimumf %12, %15 : vector<8x2xf32>
    %17 = math.exp %16 : vector<8x2xf32>
    %cst_12 = arith.constant 1.000000e+00 : f32
    %18 = vector.broadcast %cst_12 : f32 to vector<8x2xf32>
    %19 = arith.subf %17, %18 : vector<8x2xf32>
    %20 = arith.select %14, %12, %19 : vector<8x2xi1>, vector<8x2xf32>
    %c0_13 = arith.constant 0 : index
    %c0_14 = arith.constant 0 : index
    %c0_15 = arith.constant 0 : index
    %21 = vector.load %arg6[%c0_13, %c0_14, %c0_15] : memref<1x8x2xf32, #tpu.memory_space<vmem>>, vector<1x8x2xf32>
    %22 = vector.shape_cast %21 : vector<1x8x2xf32> to vector<8x2xf32>
    %23 = vector.shape_cast %20 : vector<8x2xf32> to vector<1x8x2xf32>
    tpu.vector_store %arg6[%c0_13, %c0_14, %c0_15], %23 {strides = array<i32>} : memref<1x8x2xf32, #tpu.memory_space<vmem>>, vector<1x8x2xf32>,
    return
  }
  func.func @transform_0(%arg0: i32, %arg1: i32) -> (i32, i32) {
    %c0_i32 = arith.constant 0 : i32
    %c0_i32_0 = arith.constant 0 : i32
    %c0_i32_1 = arith.constant 0 : i32
    return %c0_i32, %c0_i32_0 : i32, i32
  }
  func.func @transform_1(%arg0: i32, %arg1: i32) -> (i32, i32, i32) {
    %c0_i32 = arith.constant 0 : i32
    %c0_i32_0 = arith.constant 0 : i32
    return %arg0, %c0_i32, %arg1 : i32, i32, i32
  }
  func.func @transform_2(%arg0: i32, %arg1: i32) -> (i32, i32, i32) {
    %c0_i32 = arith.constant 0 : i32
    %c0_i32_0 = arith.constant 0 : i32
    %c0_i32_1 = arith.constant 0 : i32
    %c0_i32_2 = arith.constant 0 : i32
    return %c0_i32, %c0_i32_0, %c0_i32_1 : i32, i32, i32
  }
  func.func @transform_3(%arg0: i32, %arg1: i32) -> (i32, i32, i32) {
    %c0_i32 = arith.constant 0 : i32
    %c0_i32_0 = arith.constant 0 : i32
    %c0_i32_1 = arith.constant 0 : i32
    %c0_i32_2 = arith.constant 0 : i32
    return %c0_i32, %c0_i32_0, %c0_i32_1 : i32, i32, i32
  }
  func.func @transform_4(%arg0: i32, %arg1: i32) -> (i32, i32, i32) {
    %c0_i32 = arith.constant 0 : i32
    %c0_i32_0 = arith.constant 0 : i32
    return %arg0, %c0_i32, %arg1 : i32, i32, i32
  }
}

</mosaic_0001>

<bundles_post_ra>
// kernel: squeeze.8
= control target key start
LH: loop header
LB: loop body
LE: loop exit
PB: predicated region body
PF: predicated region fallthrough
CT: control target
= control target key end

     0   :  { %vm3_vm0 = vcmask 261120   ;;  %s131_s12 = smov 96   ;;  %s132_s22 = smov 64   ;;  %s220_s0 = inlined_call_operand.vmem [shape: f32[1,32,128], index: 0, kind: input, shape index: {}]   ;;  %s221_s1 = inlined_call_operand.vmem [shape: f32[8,16,32], index: 1, kind: output, shape index: {}]  }
   0x1   :  { %v110_v0 = vld [vmem:[%s220_s0 + $0x10] sm:$0xff]   ;;  %v20_v1 = vld [vmem:[%s220_s0] sm:$0xff]   ;;  %v112_v2 = vld [vmem:[%s220_s0 + $0x18] sm:$0xff]   ;;  %s133_s23 = smov 32  }
   0x2   :  { %35 = vrot.lane.b32.xlu1 %v110_v0, %s131_s12  ;;  %21 = vrot.lane.b32.xlu0 %v20_v1, %s131_s12  ;;  %v108_v3 = vld [vmem:[%s220_s0 + $0x8] sm:$0xff]   ;;  %4 = vst.msk [vmem:[%s221_s1] ss:$4 sm:$0xff] %vm3_vm0, %v20_v1  }
   0x3   :  { %104 = vst.msk [vmem:[%s221_s1 + $0x40] ss:$4 sm:$0xff] %vm3_vm0, %v110_v0   ;;  %106 = vst.msk [vmem:[%s221_s1 + $0x60] ss:$4 sm:$0xff] %vm3_vm0, %v112_v2  }
   0x4   :  { %102 = vst.msk [vmem:[%s221_s1 + $0x20] ss:$4 sm:$0xff] %vm3_vm0, %v108_v3  }
   0x6   :  { %42 = vrot.lane.b32.xlu1 %v112_v2, %s131_s12  ;;  %28 = vrot.lane.b32.xlu0 %v108_v3, %s131_s12 }
   0xa   :  { %55 = vrot.lane.b32.xlu1 %v108_v3, %s132_s22  ;;  %48 = vrot.lane.b32.xlu0 %v20_v1, %s132_s22 }
   0xe   :  { %69 = vrot.lane.b32.xlu1 %v112_v2, %s132_s22  ;;  %62 = vrot.lane.b32.xlu0 %v110_v0, %s132_s22 }
  0x12   :  { %82 = vrot.lane.b32.xlu1 %v108_v3, %s133_s23  ;;  %75 = vrot.lane.b32.xlu0 %v20_v1, %s133_s23 }
  0x16   :  { %96 = vrot.lane.b32.xlu1 %v112_v2, %s133_s23  ;;  %89 = vrot.lane.b32.xlu0 %v110_v0, %s133_s23 }
  0x74   :  { %v36_v4 = vpop.permute.xlu1 %35   ;;  %v22_v5 = vpop.permute.xlu0 %21  }
  0x75   :  { %111 = vst.msk [vmem:[%s221_s1 + $0x41] ss:$4 sm:$0xff] %vm3_vm0, %v36_v4   ;;  %107 = vst.msk [vmem:[%s221_s1 + $0x1] ss:$4 sm:$0xff] %vm3_vm0, %v22_v5  }
  0x78   :  { %v43_v6 = vpop.permute.xlu1 %42   ;;  %v29_v7 = vpop.permute.xlu0 %28  }
  0x79   :  { %113 = vst.msk [vmem:[%s221_s1 + $0x61] ss:$4 sm:$0xff] %vm3_vm0, %v43_v6   ;;  %109 = vst.msk [vmem:[%s221_s1 + $0x21] ss:$4 sm:$0xff] %vm3_vm0, %v29_v7  }
  0x7c   :  { %v56_v8 = vpop.permute.xlu1 %55   ;;  %v49_v9 = vpop.permute.xlu0 %48  }
  0x7d   :  { %116 = vst.msk [vmem:[%s221_s1 + $0x22] ss:$4 sm:$0xff] %vm3_vm0, %v56_v8   ;;  %114 = vst.msk [vmem:[%s221_s1 + $0x2] ss:$4 sm:$0xff] %vm3_vm0, %v49_v9  }
  0x80   :  { %v70_v10 = vpop.permute.xlu1 %69   ;;  %v63_v11 = vpop.permute.xlu0 %62  }
  0x81   :  { %120 = vst.msk [vmem:[%s221_s1 + $0x62] ss:$4 sm:$0xff] %vm3_vm0, %v70_v10   ;;  %118 = vst.msk [vmem:[%s221_s1 + $0x42] ss:$4 sm:$0xff] %vm3_vm0, %v63_v11  }
  0x84   :  { %v83_v12 = vpop.permute.xlu1 %82   ;;  %v76_v13 = vpop.permute.xlu0 %75  }
  0x85   :  { %123 = vst.msk [vmem:[%s221_s1 + $0x23] ss:$4 sm:$0xff] %vm3_vm0, %v83_v12   ;;  %121 = vst.msk [vmem:[%s221_s1 + $0x3] ss:$4 sm:$0xff] %vm3_vm0, %v76_v13  }
  0x88   :  { %v97_v14 = vpop.permute.xlu1 %96   ;;  %v90_v15 = vpop.permute.xlu0 %89  }
  0x89   :  { %127 = vst.msk [vmem:[%s221_s1 + $0x63] ss:$4 sm:$0xff] %vm3_vm0, %v97_v14   ;;  %125 = vst.msk [vmem:[%s221_s1 + $0x43] ss:$4 sm:$0xff] %vm3_vm0, %v90_v15  }

// kernel: cpednet_forward.42
= control target key start
LH: loop header
LB: loop body
LE: loop exit
PB: predicated region body
PF: predicated region fallthrough
CT: control target
= control target key end

     0   :  { %s507_s17 = smov 0   ;;  %s509_s18 = smov 0   ;;  %s546_s0 = inlined_call_operand.vmem [shape: bf16[4,16], index: 0, kind: input, shape index: {}]   ;;  %s547_s1 = inlined_call_operand.vmem [shape: f32[8,16,32], index: 1, kind: input, shape index: {}]   ;;  %s548_s2 = inlined_call_operand.<no memory space> [shape: f32[1,1,1], index: 2, kind: input, shape index: {}]   ;;  %s549_s3 = inlined_call_operand.vmem [shape: f32[8,1,1], index: 3, kind: input, shape index: {}]   ;;  %s550_s4 = inlined_call_operand.vmem [shape: f32[8,4,32], index: 4, kind: output, shape index: {}]  }
   0x1   :  { %v9_v0 = vstv %s548_s2  ;;  %s511_s19 = smov 0  }
   0x2   :  { %10 = vst [vmem:[#allocation2] sm:$0x1] %v9_v0 }
   0x3 LB: > { %s28_s2 = sadd.s32 1, %s470_s18  ;;  %p406_p0 = scmp.ge.s32.totalorder %s474_s19, 1  ;;  %s474_s19 = sphi %s511_s19, %s16_s19   ;;  %s470_s18 = sphi %s509_s18, %s552_s18   ;;  %s466_s17 = sphi %s507_s17, %s551_s17  }
   0x4   : > { %p30_p1 = scmp.ge.s32.totalorder %s28_s2, 8  ;;  %p191_p2 = scmp.lt.s32.totalorder %s474_s19, 9 }
   0x6   : > { %s554_s2 = smov (%p30_p1, %s28_s2), 0  ;;  %p192_p3 = pnand %p406_p0, %p191_p2 }
   0x7   : > { %p225_p4 = scmp.lt.s32.totalorder (!%p192_p3), %s466_s17, 7  ;;  %v476_v1 = vmov (!%p192_p3), 0.0   ;;  %vm477_vm0 = vmmov (!%p192_p3), 0   ;;  %v478_v3 = vmov (!%p192_p3), 0   ;;  %v244_v8 = vld [vmem:[%s546_s0] sm:$0x3] (!%p192_p3) }
   0x8   : > { %195 = sbr.rel (%p192_p3) target bundleno = 241 (0xf1), region = 36  ;;  %418 = vmatprep.subr.bf16.mxu0 (!%p192_p3), %v476_v1  ;;  %420 = vmatprep.mubr.msk.bf16.mxu0 (!%p192_p3), %vm477_vm0, %v476_v1  ;;  %vm248_vm1 = vcmask (!%p192_p3), 130048   ;;  %vm314_vm2 = vcmask (!%p192_p3), 257024  }
   0x9   : > { %v411_v2 = vld [vmem:[#allocation2] ss:$0 sm:$0xff] (!%p192_p3)  ;;  %451 = vset.pattern.permute.xlu0 (!%p192_p3), %v478_v3 }
   0xa   : > { %299 = vperm.xlu0 (!%p192_p3), %451, %v411_v2  }
   0xf   : > { %s556_s17 = smov (!%p225_p4, %s466_s17), 7 }
  0x10   : > { %s415_s20 = sshll.u32 %s556_s17, 4  ;;  %s235_s23 = scalar_lea.vmem %s549_s3, %s556_s17 }
  0x11   : > { %s232_s26 = scalar_lea.vmem %s547_s1, %s415_s20  ;;  %v412_v4 = vld [vmem:[%s235_s23] ss:$0 sm:$0xff]  ;;  %s409_s29 = sshll.u32 %s556_s17, 2 }
  0x12   : > { %v245_v5 = vld [vmem:[%s232_s26] sm:$0xff]  ;;  %v246_v6 = vld [vmem:[%s232_s26 + $0x8] sm:$0xff]  ;;  %310 = vperm.xlu0 %451, %v412_v4   ;;  %s242_s6 = scalar_lea.vmem %s550_s4, %s409_s29 }
  0x13   : > { %v247_v7 = vpack.c.bf16 %v246_v6, %v245_v5 }
  0x15   : > { %419 = vmatpush3.bf16.msra.mxu0 %v247_v7 }
  0x18   : > { %421 = vmatmul.mubr.msk.bf16.vlgmr.msra.gmra.mrb[0].mxu0 %vm248_vm1, %v244_v8 }
  0x89   : > { %v300_v9 = vpop.permute.xlu0 %299 }
  0x91   : > { %v311_v13 = vpop.permute.xlu0 %310 }
  0xeb   : > { %v286_v10 = vpop.f32.mrb[0].mxu0 }
  0xec   : > { %v302_v11 = vmul.f32 %v300_v9, %v286_v10  ;;  %v422_v12 = vpop.f32.mrb[1].mxu0 }
  0xed   : > { %v289_v14 = vpop.f32.mrb[2].mxu0 }
  0xee   : > { %v313_v15 = vadd.f32 %v311_v13, %v302_v11  ;;  %v423_v16 = vpop.f32.mrb[3].mxu0 }
  0xf0   : > { %315 = vst.msk [vmem:[%s242_s6] sm:$0xf] %vm314_vm2, %v313_v15 }
  0xf1 PF: > { %s16_s19 = sadd.s32 1, %s474_s19   ;;  %s551_s17 = smov %s470_s18 }
  0xf2   : > { %p13_p5 = scmp.ge.s32.totalorder %s16_s19, 10   ;;  %s552_s18 = smov %s554_s2 }
  0xf4   :  { %15 = sbr.rel (!%p13_p5) target bundleno = 3 (0x3), region = 69 }

// kernel: cpednet_forward.40
= control target key start
LH: loop header
LB: loop body
LE: loop exit
PB: predicated region body
PF: predicated region fallthrough
CT: control target
= control target key end

     0   :  { %s516_s17 = smov 0   ;;  %s518_s18 = smov 0   ;;  %s560_s0 = inlined_call_operand.vmem [shape: bf16[4,16], index: 0, kind: input, shape index: {}]   ;;  %s561_s1 = inlined_call_operand.vmem [shape: f32[8,16,32], index: 1, kind: input, shape index: {}]   ;;  %s562_s2 = inlined_call_operand.<no memory space> [shape: f32[1,1,1], index: 2, kind: input, shape index: {}]   ;;  %s563_s3 = inlined_call_operand.vmem [shape: f32[8,1,1], index: 3, kind: input, shape index: {}]   ;;  %s564_s4 = inlined_call_operand.vmem [shape: f32[8,4,32], index: 4, kind: output, shape index: {}]  }
   0x1   :  { %v9_v0 = vstv %s562_s2  ;;  %s520_s19 = smov 0  }
   0x2   :  { %10 = vst [vmem:[#allocation2] sm:$0x1] %v9_v0 }
   0x3 LB: > { %s28_s2 = sadd.s32 1, %s479_s18  ;;  %p412_p0 = scmp.ge.s32.totalorder %s483_s19, 1  ;;  %s483_s19 = sphi %s520_s19, %s16_s19   ;;  %s479_s18 = sphi %s518_s18, %s566_s18   ;;  %s475_s17 = sphi %s516_s17, %s565_s17  }
   0x4   : > { %p30_p1 = scmp.ge.s32.totalorder %s28_s2, 8  ;;  %p191_p2 = scmp.lt.s32.totalorder %s483_s19, 9 }
   0x6   : > { %s568_s2 = smov (%p30_p1, %s28_s2), 0  ;;  %p192_p3 = pnand %p412_p0, %p191_p2 }
   0x7   : > { %p225_p4 = scmp.lt.s32.totalorder (!%p192_p3), %s475_s17, 7  ;;  %v485_v1 = vmov (!%p192_p3), 0.0   ;;  %vm486_vm0 = vmmov (!%p192_p3), 0   ;;  %v487_v3 = vmov (!%p192_p3), 0   ;;  %v244_v8 = vld [vmem:[%s560_s0] sm:$0x3] (!%p192_p3) }
   0x8   : > { %195 = sbr.rel (%p192_p3) target bundleno = 259 (0x103), region = 36  ;;  %425 = vmatprep.subr.bf16.mxu0 (!%p192_p3), %v485_v1  ;;  %427 = vmatprep.mubr.msk.bf16.mxu0 (!%p192_p3), %vm486_vm0, %v485_v1  ;;  %vm248_vm1 = vcmask (!%p192_p3), 130048   ;;  %vm320_vm2 = vcmask (!%p192_p3), 257024  }
   0x9   : > { %v417_v2 = vld [vmem:[#allocation2] ss:$0 sm:$0xff] (!%p192_p3)  ;;  %458 = vset.pattern.permute.xlu0 (!%p192_p3), %v487_v3 }
   0xa   : > { %299 = vperm.xlu0 (!%p192_p3), %458, %v417_v2  }
   0xf   : > { %s570_s17 = smov (!%p225_p4, %s475_s17), 7 }
  0x10   : > { %s422_s20 = sshll.u32 %s570_s17, 4  ;;  %s235_s23 = scalar_lea.vmem %s563_s3, %s570_s17 }
  0x11   : > { %s232_s26 = scalar_lea.vmem %s561_s1, %s422_s20  ;;  %v418_v4 = vld [vmem:[%s235_s23] ss:$0 sm:$0xff]  ;;  %s415_s29 = sshll.u32 %s570_s17, 2 }
  0x12   : > { %v245_v5 = vld [vmem:[%s232_s26] sm:$0xff]  ;;  %v246_v6 = vld [vmem:[%s232_s26 + $0x8] sm:$0xff]  ;;  %310 = vperm.xlu0 %458, %v418_v4   ;;  %s242_s6 = scalar_lea.vmem %s564_s4, %s415_s29 }
  0x13   : > { %v247_v7 = vpack.c.bf16 %v246_v6, %v245_v5 }
  0x15   : > { %426 = vmatpush3.bf16.msra.mxu0 %v247_v7 }
  0x18   : > { %428 = vmatmul.mubr.msk.bf16.vlgmr.msra.gmra.mrb[0].mxu0 %vm248_vm1, %v244_v8 }
  0x89   : > { %v300_v9 = vpop.permute.xlu0 %299 }
  0x91   : > { %v311_v13 = vpop.permute.xlu0 %310 }
  0xeb   : > { %v286_v10 = vpop.f32.mrb[0].mxu0 }
  0xec   : > { %v302_v11 = vmul.f32 %v300_v9, %v286_v10  ;;  %v429_v12 = vpop.f32.mrb[1].mxu0 }
  0xed   : > { %v289_v14 = vpop.f32.mrb[2].mxu0 }
  0xee   : > { %v313_v15 = vadd.f32 %v311_v13, %v302_v11  ;;  %v430_v16 = vpop.f32.mrb[3].mxu0 }
  0xf0   : > { %v315_v17 = vmin.f32 %v313_v15, 0.0  ;;  %vm314_vm3 = vcmp.gt.f32.partialorder %v313_v15, 0.0 }
  0xf2   : > { %v316_v18 = vmul.f32 1.442695, %v315_v17 }
  0xf4   : > { %459 = vpow2.f32 %v316_v18 }
  0xfe   : > { %v460_v19 = vpop.eup %459 }
  0xff   : > { %v419_v20 = vadd.f32 -1.0, %v460_v19 }
 0x101   : > { %v319_v21 = vsel %vm314_vm3, %v313_v15, %v419_v20 }
 0x102   : > { %321 = vst.msk [vmem:[%s242_s6] sm:$0xf] %vm320_vm2, %v319_v21 }
 0x103 PF: > { %s16_s19 = sadd.s32 1, %s483_s19   ;;  %s565_s17 = smov %s479_s18 }
 0x104   : > { %p13_p5 = scmp.ge.s32.totalorder %s16_s19, 10   ;;  %s566_s18 = smov %s568_s2 }
 0x106   :  { %15 = sbr.rel (!%p13_p5) target bundleno = 3 (0x3), region = 69 }

// kernel: cpednet_forward.38
= control target key start
LH: loop header
LB: loop body
LE: loop exit
PB: predicated region body
PF: predicated region fallthrough
CT: control target
= control target key end

     0   :  { %vm25_vm0 = vcmask 1040384   ;;  %vm26_vm1 = vcmask 1041408   ;;  %v114_v0 = vmov 0.0   ;;  %v115_v2 = vmov 65535   ;;  %s158_s1 = inlined_call_operand.vmem [shape: f32[1,3,128], index: 1, kind: input, shape index: {}]   ;;  %s159_s2 = inlined_call_operand.vmem [shape: f32[1,8,1], index: 2, kind: input, shape index: {}]   ;;  %s160_s3 = inlined_call_operand.vmem [shape: f32[1,8,1], index: 3, kind: input, shape index: {}]   ;;  %s161_s0 = inlined_call_operand.vmem [shape: bf16[8,3], index: 0, kind: input, shape index: {}]   ;;  %s162_s4 = inlined_call_operand.vmem [shape: f32[1,8,128], index: 4, kind: output, shape index: {}]  }
   0x1   :  { %101 = vmatprep.subr.bf16.mxu0 %v114_v0  ;;  %v19_v1 = vld [vmem:[%s158_s1] sm:$0x7]  ;;  %v27_v3 = vsel %vm25_vm0, 4294967295, %v115_v2  ;;  %vm116_vm2 = vmmov 0   ;;  %v117_v7 = vmov 0   ;;  %vm21_vm3 = vcmask 23552  }
   0x2   :  { %v20_v4 = vpack.c.bf16 %v19_v1, %v19_v1  ;;  %v28_v5 = vsel %vm26_vm1, %v27_v3, 0  ;;  %103 = vmatprep.mubr.msk.bf16.mxu0 %vm116_vm2, %v114_v0  ;;  %v72_v6 = vld [vmem:[%s159_s2] sm:$0xff]  ;;  %111 = vset.pattern.permute.xlu0 %v117_v7 }
   0x3   :  { %75 = vperm.xlu0 %111, %v72_v6   ;;  %v79_v9 = vld [vmem:[%s160_s3] sm:$0xff] }
   0x4   :  { %v30_v8 = vand.u32 %v28_v5, %v20_v4  ;;  %v18_v10 = vld [vmem:[%s161_s0] sm:$0xf] }
   0x6   :  { %102 = vmatpush3.bf16.msra.mxu0 %v30_v8 }
   0x7   :  { %82 = vperm.xlu0 %111, %v79_v9  }
   0x9   :  { %104 = vmatmul.mubr.msk.bf16.vlgmr.msra.gmra.mrb[0].mxu0 %vm21_vm3, %v18_v10 }
  0x82   :  { %v76_v11 = vpop.permute.xlu0 %75 }
  0x86   :  { %v83_v15 = vpop.permute.xlu0 %82 }
  0xdc   :  { %v66_v12 = vpop.f32.mrb[0].mxu0 }
  0xdd   :  { %v78_v13 = vmul.f32 %v76_v11, %v66_v12  ;;  %v105_v14 = vpop.f32.mrb[1].mxu0 }
  0xde   :  { %v69_v16 = vpop.f32.mrb[2].mxu0 }
  0xdf   :  { %v85_v17 = vadd.f32 %v83_v15, %v78_v13  ;;  %v106_v18 = vpop.f32.mrb[3].mxu0 }
  0xe1   :  { %v87_v19 = vmin.f32 %v85_v17, 0.0  ;;  %vm86_vm4 = vcmp.gt.f32.partialorder %v85_v17, 0.0 }
  0xe3   :  { %v88_v20 = vmul.f32 1.442695, %v87_v19 }
  0xe5   :  { %112 = vpow2.f32 %v88_v20 }
  0xef   :  { %v113_v21 = vpop.eup %112 }
  0xf0   :  { %v98_v22 = vadd.f32 -1.0, %v113_v21 }
  0xf2   :  { %v91_v23 = vsel %vm86_vm4, %v85_v17, %v98_v22 }
  0xf3   :  { %92 = vst [vmem:[%s162_s4] sm:$0xff] %v91_v23 }

// kernel: cpednet_forward.39
= control target key start
LH: loop header
LB: loop body
LE: loop exit
PB: predicated region body
PF: predicated region fallthrough
CT: control target
= control target key end

     0   :  { %vm45_vm0 = vcmask 1043456   ;;  %vm38_vm1 = vcmask 64512   ;;  %v154_v1 = vmov 0   ;;  %s207_s1 = inlined_call_operand.vmem [shape: f32[1,8,128], index: 1, kind: input, shape index: {}]   ;;  %s208_s0 = inlined_call_operand.vmem [shape: bf16[32,8], index: 0, kind: input, shape index: {}]   ;;  %s209_s2 = inlined_call_operand.<no memory space> [shape: f32[1,1,1], index: 2, kind: input, shape index: {}]   ;;  %s210_s3 = inlined_call_operand.<no memory space> [shape: f32[1,1,1], index: 3, kind: input, shape index: {}]   ;;  %s211_s4 = inlined_call_operand.vmem [shape: f32[1,32,128], index: 4, kind: output, shape index: {}]  }
   0x1   :  { %v26_v0 = vld [vmem:[%s207_s1] sm:$0xff]  ;;  %151 = vset.pattern.permute.xlu0 %v154_v1  ;;  %v9_v2 = vstv %s209_s2  ;;  %v11_v5 = vstv %s210_s3  ;;  %v153_v7 = vld [vmem:[%s208_s0 + $0x8] sm:$0xff]  }
   0x2   :  { %v27_v3 = vpack.c.bf16 %v26_v0, %v26_v0  ;;  %v152_v4 = vld [vmem:[%s208_s0] sm:$0xff]   ;;  %10 = vst [vmem:[#allocation2] sm:$0x1] %v9_v2  ;;  %12 = vst [vmem:[#allocation3] sm:$0x1] %v11_v5 }
   0x3   :  { %145 = vmatprep.mubr.msk.bf16.mxu0 %vm38_vm1, %v152_v4 }
   0x4   :  { %149 = vmatprep.subr.msk.bf16.mxu0 %vm45_vm0, %v27_v3  ;;  %v47_v6 = vsel %vm45_vm0, %v27_v3, 0 }
   0x5   :  { %144 = vmatpush3.bf16.msra.mxu0 %v47_v6 }
   0x8   :  { %146 = vmatmul.mubr.msk.bf16.vlgmr.msra.gmra.mrb[0].mxu0 %vm38_vm1, %v153_v7 }
   0x9   :  { %v138_v8 = vld [vmem:[#allocation2] ss:$0 sm:$0xff]  ;;  %v139_v9 = vld [vmem:[#allocation3] ss:$0 sm:$0xff] }
   0xa   :  { %105 = vperm.xlu0 %151, %v138_v8  }
   0xe   :  { %119 = vperm.xlu0 %151, %v139_v9  }
  0x89   :  { %v106_v10 = vpop.permute.xlu0 %105 }
  0x8d   :  { %v120_v12 = vpop.permute.xlu0 %119 }
  0xdb   :  { %v147_v11 = vpop.f32.mrb[0].mxu0 }
  0xdc   :  { %v110_v13 = vmul.f32 %v147_v11, %v106_v10  ;;  %v83_v14 = vpop.f32.mrb[1].mxu0 }
  0xdd   :  { %v108_v15 = vmul.f32 %v106_v10, %v83_v14  ;;  %v148_v16 = vpop.f32.mrb[2].mxu0 }
  0xde   :  { %v124_v17 = vadd.f32 %v120_v12, %v110_v13  ;;  %v111_v18 = vmul.f32 %v148_v16, %v106_v10  ;;  %v86_v19 = vpop.f32.mrb[3].mxu0 }
  0xdf   :  { %v122_v20 = vadd.f32 %v120_v12, %v108_v15  ;;  %v109_v21 = vmul.f32 %v106_v10, %v86_v19 }
  0xe0   :  { %128 = vst [vmem:[%s211_s4 + $0x10] sm:$0xff] %v124_v17  ;;  %v125_v22 = vadd.f32 %v120_v12, %v111_v18 }
  0xe1   :  { %126 = vst [vmem:[%s211_s4] sm:$0xff] %v122_v20  ;;  %v123_v23 = vadd.f32 %v120_v12, %v109_v21 }
  0xe2   :  { %129 = vst [vmem:[%s211_s4 + $0x18] sm:$0xff] %v125_v22 }
  0xe3   :  { %127 = vst [vmem:[%s211_s4 + $0x8] sm:$0xff] %v123_v23 }

// kernel: cpednet_forward.45
= control target key start
LH: loop header
LB: loop body
LE: loop exit
PB: predicated region body
PF: predicated region fallthrough
CT: control target
= control target key end

     0   :  { %s507_s17 = smov 0   ;;  %s509_s18 = smov 0   ;;  %s549_s0 = inlined_call_operand.vmem [shape: bf16[16,16], index: 0, kind: input, shape index: {}]   ;;  %s550_s1 = inlined_call_operand.vmem [shape: f32[4,16,128], index: 1, kind: input, shape index: {}]   ;;  %s551_s2 = inlined_call_operand.<no memory space> [shape: f32[1,1,1], index: 2, kind: input, shape index: {}]   ;;  %s552_s3 = inlined_call_operand.vmem [shape: f32[1,16,1], index: 3, kind: input, shape index: {}]   ;;  %s553_s4 = inlined_call_operand.vmem [shape: f32[4,16,128], index: 4, kind: output, shape index: {}]  }
   0x1   :  { %v9_v0 = vstv %s551_s2  ;;  %s511_s19 = smov 0  }
   0x2   :  { %10 = vst [vmem:[#allocation2] sm:$0x1] %v9_v0 }
   0x3 LB: > { %s28_s2 = sadd.s32 1, %s470_s18  ;;  %p402_p0 = scmp.ge.s32.totalorder %s474_s19, 1  ;;  %s474_s19 = sphi %s511_s19, %s16_s19   ;;  %s470_s18 = sphi %s509_s18, %s555_s18   ;;  %s466_s17 = sphi %s507_s17, %s554_s17  }
   0x4   : > { %p30_p1 = scmp.ge.s32.totalorder %s28_s2, 4  ;;  %p183_p2 = scmp.lt.s32.totalorder %s474_s19, 5 }
   0x6   : > { %s557_s2 = smov (%p30_p1, %s28_s2), 0  ;;  %p184_p3 = pnand %p402_p0, %p183_p2 }
   0x7   : > { %p215_p4 = scmp.lt.s32.totalorder (!%p184_p3), %s466_s17, 3  ;;  %v476_v1 = vmov (!%p184_p3), 0.0   ;;  %vm477_vm0 = vmmov (!%p184_p3), 0   ;;  %v478_v3 = vmov (!%p184_p3), 0   ;;  %v300_v4 = vld [vmem:[%s552_s3 + $0x8] sm:$0xff] (!%p184_p3)  ;;  %v299_v5 = vld [vmem:[%s552_s3] sm:$0xff] (!%p184_p3) }
   0x8   : > { %187 = sbr.rel (%p184_p3) target bundleno = 243 (0xf3), region = 36  ;;  %416 = vmatprep.subr.bf16.mxu0 (!%p184_p3), %v476_v1  ;;  %418 = vmatprep.mubr.msk.bf16.mxu0 (!%p184_p3), %vm477_vm0, %v476_v1  ;;  %v451_v9 = vld [vmem:[%s549_s0] sm:$0xff] (!%p184_p3)   ;;  %vm242_vm1 = vcmask (!%p184_p3), 130048  }
   0x9   : > { %v409_v2 = vld [vmem:[#allocation2] ss:$0 sm:$0xff] (!%p184_p3)  ;;  %449 = vset.pattern.permute.xlu0 (!%p184_p3), %v478_v3  ;;  %450 = vset.pattern.permute.xlu1 (!%p184_p3), %v478_v3 }
   0xa   : > { %294 = vperm.xlu0 (!%p184_p3), %449, %v409_v2   ;;  %308 = vperm.xlu1 (!%p184_p3), %450, %v300_v4  }
   0xe   : > { %303 = vperm.xlu0 (!%p184_p3), %449, %v299_v5  }
   0xf   : > { %s559_s17 = smov (!%p215_p4, %s466_s17), 3 }
  0x10   : > { %s412_s22 = sshll.u32 %s559_s17, 4 }
  0x11   : > { %s222_s27 = scalar_lea.vmem %s550_s1, %s412_s22  ;;  %s230_s6 = scalar_lea.vmem %s553_s4, %s412_s22 }
  0x12   : > { %v234_v6 = vld [vmem:[%s222_s27] sm:$0xff]  ;;  %v235_v7 = vld [vmem:[%s222_s27 + $0x8] sm:$0xff] }
  0x13   : > { %v236_v8 = vpack.c.bf16 %v235_v7, %v234_v6 }
  0x15   : > { %417 = vmatpush3.bf16.msra.mxu0 %v236_v8 }
  0x18   : > { %419 = vmatmul.mubr.msk.bf16.vlgmr.msra.gmra.mrb[0].mxu0 %vm242_vm1, %v451_v9 }
  0x89   : > { %v295_v10 = vpop.permute.xlu0 %294  ;;  %v309_v14 = vpop.permute.xlu1 %308 }
  0x8d   : > { %v304_v15 = vpop.permute.xlu0 %303 }
  0xeb   : > { %v280_v11 = vpop.f32.mrb[0].mxu0 }
  0xec   : > { %v297_v12 = vmul.f32 %v295_v10, %v280_v11  ;;  %v420_v13 = vpop.f32.mrb[1].mxu0 }
  0xed   : > { %v283_v16 = vpop.f32.mrb[2].mxu0 }
  0xee   : > { %v311_v17 = vadd.f32 %v304_v15, %v297_v12  ;;  %v298_v18 = vmul.f32 %v295_v10, %v283_v16  ;;  %v421_v19 = vpop.f32.mrb[3].mxu0 }
  0xf0   : > { %v312_v20 = vadd.f32 %v309_v14, %v298_v18  ;;  %313 = vst [vmem:[%s230_s6] sm:$0xff] %v311_v17 }
  0xf2   : > { %314 = vst [vmem:[%s230_s6 + $0x8] sm:$0xff] %v312_v20 }
  0xf3 PF: > { %s16_s19 = sadd.s32 1, %s474_s19   ;;  %s554_s17 = smov %s470_s18 }
  0xf4   : > { %p13_p5 = scmp.ge.s32.totalorder %s16_s19, 6   ;;  %s555_s18 = smov %s557_s2 }
  0xf6   :  { %15 = sbr.rel (!%p13_p5) target bundleno = 3 (0x3), region = 66 }

// kernel: cpednet_forward.43
= control target key start
LH: loop header
LB: loop body
LE: loop exit
PB: predicated region body
PF: predicated region fallthrough
CT: control target
= control target key end

     0   :  { %s596_s17 = smov 0   ;;  %s598_s18 = smov 0   ;;  %s663_s0 = inlined_call_operand.vmem [shape: bf16[48,16], index: 0, kind: input, shape index: {}]   ;;  %s664_s1 = inlined_call_operand.vmem [shape: f32[4,16,128], index: 1, kind: input, shape index: {}]   ;;  %s665_s2 = inlined_call_operand.<no memory space> [shape: f32[1,1,1], index: 2, kind: input, shape index: {}]   ;;  %s666_s3 = inlined_call_operand.vmem [shape: f32[1,48,1], index: 3, kind: input, shape index: {}]   ;;  %s667_s4 = inlined_call_operand.vmem [shape: f32[4,48,128], index: 4, kind: output, shape index: {}]  }
   0x1   :  { %v9_v0 = vstv %s665_s2  ;;  %s600_s19 = smov 0  }
   0x2   :  { %10 = vst [vmem:[#allocation2] sm:$0x1] %v9_v0 }
   0x3 LB: > { %s28_s2 = sadd.s32 1, %s559_s18  ;;  %p474_p0 = scmp.ge.s32.totalorder %s563_s19, 1  ;;  %s563_s19 = sphi %s600_s19, %s16_s19   ;;  %s559_s18 = sphi %s598_s18, %s669_s18   ;;  %s555_s17 = sphi %s596_s17, %s668_s17  }
   0x4   : > { %p30_p1 = scmp.ge.s32.totalorder %s28_s2, 4  ;;  %p183_p2 = scmp.lt.s32.totalorder %s563_s19, 5 }
   0x6   : > { %s671_s2 = smov (%p30_p1, %s28_s2), 0  ;;  %p184_p3 = pnand %p474_p0, %p183_p2 }
   0x7   : > { %p215_p4 = scmp.lt.s32.totalorder (!%p184_p3), %s555_s17, 3  ;;  %v565_v1 = vmov (!%p184_p3), 0.0   ;;  %vm566_vm0 = vmmov (!%p184_p3), 0   ;;  %v567_v3 = vmov (!%p184_p3), 0   ;;  %v340_v4 = vld [vmem:[%s666_s3 + $0x8] sm:$0xff] (!%p184_p3)  ;;  %v339_v8 = vld [vmem:[%s666_s3] sm:$0xff] (!%p184_p3) }
   0x8   : > { %187 = sbr.rel (%p184_p3) target bundleno = 251 (0xfb), region = 36  ;;  %492 = vmatprep.subr.bf16.mxu0 (!%p184_p3), %v565_v1  ;;  %506 = vmatprep.subr.bf16.mxu1 (!%p184_p3), %v565_v1  ;;  %v341_v9 = vld [vmem:[%s666_s3 + $0x10] sm:$0xff] (!%p184_p3)  ;;  %v538_v10 = vld [vmem:[%s663_s0] sm:$0xff] (!%p184_p3)   ;;  %v539_v11 = vld [vmem:[%s663_s0 + $0x8] sm:$0xff] (!%p184_p3)   ;;  %vm256_vm1 = vcmask (!%p184_p3), 130048  }
   0x9   : > { %494 = vmatprep.mubr.msk.bf16.mxu0 (!%p184_p3), %vm566_vm0, %v565_v1  ;;  %498 = vmatprep.mubr.msk.bf16.mxu1 (!%p184_p3), %vm566_vm0, %v565_v1  ;;  %v484_v2 = vld [vmem:[#allocation2] ss:$0 sm:$0xff] (!%p184_p3)  ;;  %v342_v12 = vld [vmem:[%s666_s3 + $0x18] sm:$0xff] (!%p184_p3)  ;;  %v344_v14 = vld [vmem:[%s666_s3 + $0x28] sm:$0xff] (!%p184_p3) }
   0xa   : > { %536 = vset.pattern.permute.xlu0 (!%p184_p3), %v567_v3  ;;  %537 = vset.pattern.permute.xlu1 (!%p184_p3), %v567_v3  ;;  %v343_v13 = vld [vmem:[%s666_s3 + $0x20] sm:$0xff] (!%p184_p3)  ;;  %v540_v15 = vld [vmem:[%s663_s0 + $0x10] sm:$0xff] (!%p184_p3)  }
   0xb   : > { %330 = vperm.xlu0 (!%p184_p3), %536, %v484_v2   ;;  %352 = vperm.xlu1 (!%p184_p3), %537, %v340_v4  }
   0xf   : > { %s673_s17 = smov (!%p215_p4, %s555_s17), 3  ;;  %347 = vperm.xlu0 %536, %v339_v8   ;;  %357 = vperm.xlu1 %537, %v341_v9  }
  0x10   : > { %s487_s20 = sshll.u32 %s673_s17, 4  ;;  %s508_s16 = smul.u32 48, %s673_s17 }
  0x11   : > { %s222_s25 = scalar_lea.vmem %s664_s1, %s487_s20 }
  0x12   : > { %v238_v5 = vld [vmem:[%s222_s25] sm:$0xff]  ;;  %v239_v6 = vld [vmem:[%s222_s25 + $0x8] sm:$0xff]  ;;  %s230_s22 = scalar_lea.vmem %s667_s4, %s508_s16 }
  0x13   : > { %v240_v7 = vpack.c.bf16 %v239_v6, %v238_v5  ;;  %362 = vperm.xlu0 %536, %v342_v12   ;;  %367 = vperm.xlu1 %537, %v343_v13  }
  0x15   : > { %493 = vmatpush3.bf16.msra.mxu0 %v240_v7  ;;  %507 = vmatpush3.bf16.msra.mxu1 %v240_v7 }
  0x17   : > { %372 = vperm.xlu0 %536, %v344_v14  }
  0x18   : > { %495 = vmatmul.mubr.msk.bf16.vlgmr.msra.gmra.mrb[0].mxu0 %vm256_vm1, %v538_v10  ;;  %499 = vmatmul.mubr.msk.bf16.vlgmr.msra.gmra.mrb[0].mxu1 %vm256_vm1, %v539_v11 }
  0x19   : > { %502 = vmatprep.mubr.msk.bf16.mxu1 %vm566_vm0, %v565_v1 }
  0x20   : > { %503 = vmatmul.mubr.msk.bf16.gmra.mrb[4].mxu1 %vm256_vm1, %v540_v15 }
  0x8a   : > { %v331_v16 = vpop.permute.xlu0 %330  ;;  %v353_v17 = vpop.permute.xlu1 %352 }
  0x8e   : > { %v348_v18 = vpop.permute.xlu0 %347  ;;  %v358_v19 = vpop.permute.xlu1 %357 }
  0x92   : > { %v363_v34 = vpop.permute.xlu0 %362  ;;  %v368_v40 = vpop.permute.xlu1 %367 }
  0x96   : > { %v373_v45 = vpop.permute.xlu0 %372 }
  0xeb   : > { %v300_v20 = vpop.f32.mrb[0].mxu0  ;;  %v308_v21 = vpop.f32.mrb[0].mxu1 }
  0xec   : > { %v333_v22 = vmul.f32 %v331_v16, %v300_v20  ;;  %v335_v23 = vmul.f32 %v331_v16, %v308_v21  ;;  %v496_v24 = vpop.f32.mrb[1].mxu0  ;;  %v500_v25 = vpop.f32.mrb[1].mxu1 }
  0xed   : > { %v303_v26 = vpop.f32.mrb[2].mxu0  ;;  %v311_v27 = vpop.f32.mrb[2].mxu1 }
  0xee   : > { %v375_v28 = vadd.f32 %v348_v18, %v333_v22  ;;  %v377_v29 = vadd.f32 %v358_v19, %v335_v23  ;;  %v334_v30 = vmul.f32 %v331_v16, %v303_v26  ;;  %v336_v31 = vmul.f32 %v331_v16, %v311_v27  ;;  %v501_v32 = vpop.f32.mrb[3].mxu1  ;;  %v497_v33 = vpop.f32.mrb[3].mxu0 }
  0xf0   : > { %381 = vst [vmem:[%s230_s22] sm:$0xff] %v375_v28  ;;  %383 = vst [vmem:[%s230_s22 + $0x10] sm:$0xff] %v377_v29  ;;  %v376_v35 = vadd.f32 %v353_v17, %v334_v30  ;;  %v378_v36 = vadd.f32 %v363_v34, %v336_v31 }
  0xf2   : > { %382 = vst [vmem:[%s230_s22 + $0x8] sm:$0xff] %v376_v35  ;;  %384 = vst [vmem:[%s230_s22 + $0x18] sm:$0xff] %v378_v36 }
  0xf3   : > { %v316_v37 = vpop.f32.mrb[4].mxu1 }
  0xf4   : > { %v337_v38 = vmul.f32 %v331_v16, %v316_v37  ;;  %v504_v39 = vpop.f32.mrb[5].mxu1 }
  0xf5   : > { %v319_v41 = vpop.f32.mrb[6].mxu1 }
  0xf6   : > { %v379_v42 = vadd.f32 %v368_v40, %v337_v38  ;;  %v338_v43 = vmul.f32 %v331_v16, %v319_v41  ;;  %v505_v44 = vpop.f32.mrb[7].mxu1 }
  0xf8   : > { %385 = vst [vmem:[%s230_s22 + $0x20] sm:$0xff] %v379_v42  ;;  %v380_v46 = vadd.f32 %v373_v45, %v338_v43 }
  0xfa   : > { %386 = vst [vmem:[%s230_s22 + $0x28] sm:$0xff] %v380_v46 }
  0xfb PF: > { %s16_s19 = sadd.s32 1, %s563_s19   ;;  %s668_s17 = smov %s559_s18 }
  0xfc   : > { %p13_p5 = scmp.ge.s32.totalorder %s16_s19, 6   ;;  %s669_s18 = smov %s671_s2 }
  0xfe   :  { %15 = sbr.rel (!%p13_p5) target bundleno = 3 (0x3), region = 66 }

// kernel: cpednet_forward.46
= control target key start
LH: loop header
LB: loop body
LE: loop exit
PB: predicated region body
PF: predicated region fallthrough
CT: control target
= control target key end

     0   :  { %s509_s17 = smov 0   ;;  %s511_s18 = smov 0   ;;  %s554_s0 = inlined_call_operand.vmem [shape: bf16[16,16], index: 0, kind: input, shape index: {}]   ;;  %s555_s1 = inlined_call_operand.vmem [shape: f32[4,16,128], index: 1, kind: input, shape index: {}]   ;;  %s556_s2 = inlined_call_operand.<no memory space> [shape: f32[1,1,1], index: 2, kind: input, shape index: {}]   ;;  %s557_s3 = inlined_call_operand.vmem [shape: f32[1,16,1], index: 3, kind: input, shape index: {}]   ;;  %s558_s4 = inlined_call_operand.vmem [shape: f32[4,16,128], index: 4, kind: output, shape index: {}]  }
   0x1   :  { %v9_v0 = vstv %s556_s2  ;;  %s513_s19 = smov 0  }
   0x2   :  { %10 = vst [vmem:[#allocation2] sm:$0x1] %v9_v0 }
   0x3 LB: > { %s28_s2 = sadd.s32 1, %s472_s18  ;;  %p404_p0 = scmp.ge.s32.totalorder %s476_s19, 1  ;;  %s476_s19 = sphi %s513_s19, %s16_s19   ;;  %s472_s18 = sphi %s511_s18, %s560_s18   ;;  %s468_s17 = sphi %s509_s17, %s559_s17  }
   0x4   : > { %p30_p1 = scmp.ge.s32.totalorder %s28_s2, 4  ;;  %p183_p2 = scmp.lt.s32.totalorder %s476_s19, 5 }
   0x6   : > { %s562_s2 = smov (%p30_p1, %s28_s2), 0  ;;  %p184_p3 = pnand %p404_p0, %p183_p2 }
   0x7   : > { %p215_p4 = scmp.lt.s32.totalorder (!%p184_p3), %s468_s17, 3  ;;  %v478_v1 = vmov (!%p184_p3), 0.0   ;;  %vm479_vm0 = vmmov (!%p184_p3), 0   ;;  %v480_v3 = vmov (!%p184_p3), 0   ;;  %v300_v4 = vld [vmem:[%s557_s3 + $0x8] sm:$0xff] (!%p184_p3)  ;;  %v299_v5 = vld [vmem:[%s557_s3] sm:$0xff] (!%p184_p3) }
   0x8   : > { %187 = sbr.rel (%p184_p3) target bundleno = 245 (0xf5), region = 36  ;;  %418 = vmatprep.subr.bf16.mxu0 (!%p184_p3), %v478_v1  ;;  %420 = vmatprep.mubr.msk.bf16.mxu0 (!%p184_p3), %vm479_vm0, %v478_v1  ;;  %v453_v9 = vld [vmem:[%s554_s0] sm:$0xff] (!%p184_p3)   ;;  %vm242_vm1 = vcmask (!%p184_p3), 130048  }
   0x9   : > { %v411_v2 = vld [vmem:[#allocation2] ss:$0 sm:$0xff] (!%p184_p3)  ;;  %451 = vset.pattern.permute.xlu0 (!%p184_p3), %v480_v3  ;;  %452 = vset.pattern.permute.xlu1 (!%p184_p3), %v480_v3 }
   0xa   : > { %294 = vperm.xlu0 (!%p184_p3), %451, %v411_v2   ;;  %308 = vperm.xlu1 (!%p184_p3), %452, %v300_v4  }
   0xe   : > { %303 = vperm.xlu0 (!%p184_p3), %451, %v299_v5  }
   0xf   : > { %s564_s17 = smov (!%p215_p4, %s468_s17), 3 }
  0x10   : > { %s414_s22 = sshll.u32 %s564_s17, 4 }
  0x11   : > { %s222_s27 = scalar_lea.vmem %s555_s1, %s414_s22  ;;  %s230_s6 = scalar_lea.vmem %s558_s4, %s414_s22 }
  0x12   : > { %v234_v6 = vld [vmem:[%s222_s27] sm:$0xff]  ;;  %v235_v7 = vld [vmem:[%s222_s27 + $0x8] sm:$0xff] }
  0x13   : > { %v236_v8 = vpack.c.bf16 %v235_v7, %v234_v6 }
  0x15   : > { %419 = vmatpush3.bf16.msra.mxu0 %v236_v8 }
  0x18   : > { %421 = vmatmul.mubr.msk.bf16.vlgmr.msra.gmra.mrb[0].mxu0 %vm242_vm1, %v453_v9 }
  0x89   : > { %v295_v10 = vpop.permute.xlu0 %294  ;;  %v309_v14 = vpop.permute.xlu1 %308 }
  0x8d   : > { %v304_v15 = vpop.permute.xlu0 %303 }
  0xeb   : > { %v280_v11 = vpop.f32.mrb[0].mxu0 }
  0xec   : > { %v297_v12 = vmul.f32 %v295_v10, %v280_v11  ;;  %v422_v13 = vpop.f32.mrb[1].mxu0 }
  0xed   : > { %v283_v16 = vpop.f32.mrb[2].mxu0 }
  0xee   : > { %v311_v17 = vadd.f32 %v304_v15, %v297_v12  ;;  %v298_v18 = vmul.f32 %v295_v10, %v283_v16  ;;  %v423_v19 = vpop.f32.mrb[3].mxu0 }
  0xf0   : > { %v313_v20 = vmax.f32 %v311_v17, 0.0  ;;  %v312_v21 = vadd.f32 %v309_v14, %v298_v18 }
  0xf2   : > { %v314_v22 = vmax.f32 %v312_v21, 0.0  ;;  %315 = vst [vmem:[%s230_s6] sm:$0xff] %v313_v20 }
  0xf4   : > { %316 = vst [vmem:[%s230_s6 + $0x8] sm:$0xff] %v314_v22 }
  0xf5 PF: > { %s16_s19 = sadd.s32 1, %s476_s19   ;;  %s559_s17 = smov %s472_s18 }
  0xf6   : > { %p13_p5 = scmp.ge.s32.totalorder %s16_s19, 6   ;;  %s560_s18 = smov %s562_s2 }
  0xf8   :  { %15 = sbr.rel (!%p13_p5) target bundleno = 3 (0x3), region = 66 }

// kernel: cpednet_forward.44
= control target key start
LH: loop header
LB: loop body
LE: loop exit
PB: predicated region body
PF: predicated region fallthrough
CT: control target
= control target key end

     0   :  { %v40_v0 = vlaneseq  ;;  %vm61_vm0 = vcmask 1041409   ;;  %vm64_vm1 = vcmask 1042434   ;;  %vm67_vm2 = vcmask 1043459   ;;  %s1450_s0 = inlined_call_operand.vmem [shape: f32[4,48,128], index: 0, kind: input, shape index: {}]   ;;  %s1451_s1 = inlined_call_operand.vmem [shape: f32[4,16,128], index: 1, kind: output, shape index: {}]  }
   0x1   :  { %v8_v1 = vld [vmem:[%s1450_s0] sm:$0xff]  ;;  %v9_v2 = vld [vmem:[%s1450_s0 + $0x8] sm:$0xff]  ;;  %v963_v3 = vld [vmem:[%s1450_s0 + $0x10] sm:$0xff]  ;;  %vm299_vm3 = vcmask 1043456  }
   0x2   :  { %v965_v4 = vmul.f32 0.35355338, %v8_v1  ;;  %v967_v5 = vshrl.u32 %v40_v0, 7  ;;  %v14_v6 = vld [vmem:[%s1450_s0 + $0x30] sm:$0xff]  ;;  %v15_v7 = vld [vmem:[%s1450_s0 + $0x38] sm:$0xff]  ;;  %v978_v8 = vld [vmem:[%s1450_s0 + $0x40] sm:$0xff] }
   0x3   :  { %v980_v9 = vmul.f32 0.35355338, %v9_v2  ;;  %v94_v10 = vrot.slane %v963_v3, 1  ;;  %v983_v11 = vmul.f32 0.35355338, %v14_v6  ;;  %v20_v13 = vld [vmem:[%s1450_s0 + $0x60] sm:$0xff] }
   0x4   :  { %v986_v12 = vsub.s32 0, %v967_v5  ;;  %v21_v14 = vld [vmem:[%s1450_s0 + $0x68] sm:$0xff]  ;;  %v997_v15 = vld [vmem:[%s1450_s0 + $0x70] sm:$0xff]  ;;  %v999_v16 = vmul.f32 0.35355338, %v15_v7  ;;  %v60_v17 = vrot.slane %v978_v8, 7 }
   0x5   :  { %v95_v18 = vsel %vm61_vm0, %v978_v8, %v94_v10  ;;  %v1004_v19 = vmul.f32 0.35355338, %v20_v13  ;;  %v63_v22 = vrot.slane %v997_v15, 6  ;;  %v26_v23 = vld [vmem:[%s1450_s0 + $0x90] sm:$0xff]  ;;  %v27_v24 = vld [vmem:[%s1450_s0 + $0x98] sm:$0xff]  ;;  %v1020_v25 = vld [vmem:[%s1450_s0 + $0xa0] sm:$0xff] }
   0x6   :  { %v43_v20 = vrot.slane %v965_v4, %v986_v12  ;;  %v47_v21 = vrot.slane %v983_v11, %v986_v12  ;;  %v1022_v26 = vmul.f32 0.35355338, %v21_v14  ;;  %v62_v27 = vsel %vm61_vm0, %v60_v17, %v963_v3 }
   0x7   :  { %v1027_v28 = vsub.s32 1, %v967_v5  ;;  %v479_v29 = vrot.slane %v980_v9, %v986_v12  ;;  %v1031_v30 = vmul.f32 0.35355338, %v26_v23  ;;  %v51_v31 = vrot.slane %v1004_v19, %v986_v12 }
   0x8   :  { %v65_v32 = vsel %vm64_vm1, %v63_v22, %v62_v27  ;;  %v66_v33 = vrot.slane %v1020_v25, 5  ;;  %v1037_v34 = vmul.f32 0.35355338, %v27_v24  ;;  %v96_v41 = vrot.slane %v997_v15, 7 }
   0x9   :  { %v81_v35 = vrot.slane %v965_v4, %v1027_v28  ;;  %v85_v36 = vrot.slane %v983_v11, %v1027_v28  ;;  %v89_v37 = vrot.slane %v1004_v19, %v1027_v28  ;;  %v55_v38 = vrot.slane %v1031_v30, %v986_v12 }
   0xa   :  { %v68_v39 = vsel %vm67_vm2, %v66_v33, %v65_v32  ;;  %v93_v40 = vrot.slane %v1031_v30, %v1027_v28  ;;  %v98_v45 = vrot.slane %v1020_v25, 6  ;;  %v97_v47 = vsel %vm64_vm1, %v96_v41, %v95_v18 }
   0xb   :  { %v70_v42 = vmul.f32 %v68_v39, %v43_v20  ;;  %v71_v43 = vmul.f32 %v68_v39, %v47_v21  ;;  %v72_v44 = vmul.f32 %v68_v39, %v51_v31  ;;  %v73_v46 = vmul.f32 %v68_v39, %v55_v38 }
   0xc   :  { %v1054_v48 = vsub.s32 2, %v967_v5  ;;  %v125_v49 = vrot.slane %v963_v3, 2  ;;  %v99_v50 = vsel %vm67_vm2, %v98_v45, %v97_v47  ;;  %v126_v51 = vrot.slane %v978_v8, 1 }
   0xd   :  { %v129_v52 = vrot.slane %v1020_v25, 7  ;;  %v1061_v53 = vsub.s32 3, %v967_v5  ;;  %v101_v54 = vmul.f32 %v99_v50, %v81_v35  ;;  %v102_v55 = vmul.f32 %v99_v50, %v85_v36 }
   0xe   :  { %1454 = vst [vmem:[#allocation2_spill] sm:$0xff] %v1054_v48  ;;  %v103_v56 = vmul.f32 %v99_v50, %v89_v37  ;;  %v104_v57 = vmul.f32 %v99_v50, %v93_v40  ;;  %v112_v58 = vrot.slane %v965_v4, %v1054_v48  ;;  %v116_v59 = vrot.slane %v983_v11, %v1054_v48 }
   0xf   :  { %v120_v60 = vrot.slane %v1004_v19, %v1054_v48  ;;  %v124_v61 = vrot.slane %v1031_v30, %v1054_v48  ;;  %v105_v62 = vadd.f32 %v101_v54, %v70_v42  ;;  %v106_v63 = vadd.f32 %v102_v55, %v71_v43 }
  0x10   :  { %v107_v0 = vadd.f32 %v103_v56, %v72_v44  ;;  %v108_v1 = vadd.f32 %v104_v57, %v73_v46  ;;  %v127_v2 = vsel %vm61_vm0, %v126_v51, %v125_v49  ;;  %v143_v6 = vrot.slane %v965_v4, %v1061_v53 }
  0x11   :  { %v147_v7 = vrot.slane %v983_v11, %v1061_v53  ;;  %v151_v10 = vrot.slane %v1004_v19, %v1061_v53  ;;  %v128_v13 = vsel %vm64_vm1, %v997_v15, %v127_v2  ;;  %v155_v14 = vrot.slane %v1031_v30, %v1061_v53 }
  0x12   :  { %v156_v17 = vrot.slane %v963_v3, 3  ;;  %v157_v18 = vrot.slane %v978_v8, 2  ;;  %v130_v20 = vsel %vm67_vm2, %v129_v52, %v128_v13  ;;  %v159_v21 = vrot.slane %v997_v15, 1 }
  0x13   :  { %v1087_v22 = vsub.s32 4, %v967_v5  ;;  %v187_v23 = vrot.slane %v963_v3, 4  ;;  %v132_v24 = vmul.f32 %v130_v20, %v112_v58  ;;  %v133_v27 = vmul.f32 %v130_v20, %v116_v59 }
  0x14   :  { %v134_v31 = vmul.f32 %v130_v20, %v120_v60  ;;  %v135_v32 = vmul.f32 %v130_v20, %v124_v61  ;;  %v158_v33 = vsel %vm61_vm0, %v157_v18, %v156_v17  ;;  %v188_v44 = vrot.slane %v978_v8, 3 }
  0x15   :  { %v174_v35 = vrot.slane %v965_v4, %v1087_v22  ;;  %v178_v36 = vrot.slane %v983_v11, %v1087_v22  ;;  %v182_v37 = vrot.slane %v1004_v19, %v1087_v22  ;;  %v136_v38 = vadd.f32 %v132_v24, %v105_v62 }
  0x16   :  { %v137_v39 = vadd.f32 %v133_v27, %v106_v63  ;;  %v138_v40 = vadd.f32 %v134_v31, %v107_v0  ;;  %v139_v41 = vadd.f32 %v135_v32, %v108_v1  ;;  %v160_v42 = vsel %vm64_vm1, %v159_v21, %v158_v33 }
  0x17   :  { %v186_v43 = vrot.slane %v1031_v30, %v1087_v22  ;;  %v190_v45 = vrot.slane %v997_v15, 2  ;;  %v161_v46 = vsel %vm67_vm2, %v1020_v25, %v160_v42  ;;  %v192_v47 = vrot.slane %v1020_v25, 1 }
  0x18   :  { %v1106_v49 = vsub.s32 5, %v967_v5  ;;  %v219_v50 = vrot.slane %v963_v3, 5  ;;  %v163_v51 = vmul.f32 %v161_v46, %v143_v6  ;;  %v164_v52 = vmul.f32 %v161_v46, %v147_v7 }
  0x19   :  { %v165_v54 = vmul.f32 %v161_v46, %v151_v10  ;;  %v166_v55 = vmul.f32 %v161_v46, %v155_v14  ;;  %v189_v56 = vsel %vm61_vm0, %v188_v44, %v187_v23  ;;  %v220_v2 = vrot.slane %v978_v8, 4 }
  0x1a   :  { %v206_v57 = vrot.slane %v965_v4, %v1106_v49  ;;  %v210_v58 = vrot.slane %v983_v11, %v1106_v49  ;;  %v214_v59 = vrot.slane %v1004_v19, %v1106_v49  ;;  %v167_v60 = vadd.f32 %v163_v51, %v136_v38 }
  0x1b   :  { %v168_v61 = vadd.f32 %v164_v52, %v137_v39  ;;  %v169_v62 = vadd.f32 %v165_v54, %v138_v40  ;;  %v170_v63 = vadd.f32 %v166_v55, %v139_v41  ;;  %v191_v0 = vsel %vm64_vm1, %v190_v45, %v189_v56 }
  0x1c   :  { %v218_v1 = vrot.slane %v1031_v30, %v1106_v49  ;;  %v222_v6 = vrot.slane %v997_v15, 3  ;;  %v193_v7 = vsel %vm67_vm2, %v192_v47, %v191_v0  ;;  %v224_v10 = vrot.slane %v1020_v25, 2 }
  0x1d   :  { %v1124_v13 = vsub.s32 6, %v967_v5  ;;  %v251_v14 = vrot.slane %v963_v3, 6  ;;  %v195_v17 = vmul.f32 %v193_v7, %v174_v35  ;;  %v196_v18 = vmul.f32 %v193_v7, %v178_v36 }
  0x1e   :  { %v197_v20 = vmul.f32 %v193_v7, %v182_v37  ;;  %v198_v21 = vmul.f32 %v193_v7, %v186_v43  ;;  %v221_v23 = vsel %vm61_vm0, %v220_v2, %v219_v50  ;;  %v252_v37 = vrot.slane %v978_v8, 5 }
  0x1f   :  { %v238_v24 = vrot.slane %v965_v4, %v1124_v13  ;;  %v242_v27 = vrot.slane %v983_v11, %v1124_v13  ;;  %v246_v31 = vrot.slane %v1004_v19, %v1124_v13  ;;  %v199_v32 = vadd.f32 %v195_v17, %v167_v60 }
  0x20   :  { %v200_v33 = vadd.f32 %v196_v18, %v168_v61  ;;  %v201_v38 = vadd.f32 %v197_v20, %v169_v62  ;;  %v202_v39 = vadd.f32 %v198_v21, %v170_v63  ;;  %v223_v35 = vsel %vm64_vm1, %v222_v6, %v221_v23 }
  0x21   :  { %v250_v36 = vrot.slane %v1031_v30, %v1124_v13  ;;  %v254_v40 = vrot.slane %v997_v15, 4  ;;  %v225_v41 = vsel %vm67_vm2, %v224_v10, %v223_v35  ;;  %v256_v42 = vrot.slane %v1020_v25, 3 }
  0x22   :  { %v1142_v43 = vsub.s32 7, %v967_v5  ;;  %v283_v44 = vrot.slane %v963_v3, 7  ;;  %v227_v45 = vmul.f32 %v225_v41, %v206_v57  ;;  %v228_v46 = vmul.f32 %v225_v41, %v210_v58  ;;  %v1155_v3 = vld [vmem:[%s1450_s0 + $0x48] sm:$0xff]  ;;  %v1160_v57 = vld [vmem:[%s1450_s0 + $0x78] sm:$0xff] }
  0x23   :  { %v229_v47 = vmul.f32 %v225_v41, %v214_v59  ;;  %v230_v50 = vmul.f32 %v225_v41, %v218_v1  ;;  %v253_v51 = vsel %vm61_vm0, %v252_v37, %v251_v14  ;;  %v286_v58 = vrot.slane %v997_v15, 5  ;;  %v1176_v1 = vld [vmem:[%s1450_s0 + $0xa8] sm:$0xff]  ;;  %v1186_v14 = vld [vmem:[%s1450_s0 + $0x18] sm:$0xff] }
  0x24   :  { %v270_v52 = vrot.slane %v965_v4, %v1142_v43  ;;  %v274_v54 = vrot.slane %v983_v11, %v1142_v43  ;;  %v278_v55 = vrot.slane %v1004_v19, %v1142_v43  ;;  %v231_v56 = vadd.f32 %v227_v45, %v199_v32 }
  0x25   :  { %v232_v5 = vadd.f32 %v228_v46, %v200_v33  ;;  %v233_v60 = vadd.f32 %v229_v47, %v201_v38  ;;  %v234_v61 = vadd.f32 %v230_v50, %v202_v39  ;;  %v255_v4 = vsel %vm64_vm1, %v254_v40, %v253_v51 }
  0x26   :  { %v282_v11 = vrot.slane %v1031_v30, %v1142_v43  ;;  %v284_v19 = vrot.slane %v978_v8, 6  ;;  %v257_v59 = vsel %vm67_vm2, %v256_v42, %v255_v4  ;;  %v288_v62 = vrot.slane %v1020_v25, 4 }
  0x27   :  { %v483_v63 = vrot.slane %v999_v16, %v986_v12  ;;  %v487_v0 = vrot.slane %v1022_v26, %v986_v12  ;;  %v259_v30 = vmul.f32 %v257_v59, %v238_v24  ;;  %v260_v8 = vmul.f32 %v257_v59, %v242_v27 }
  0x28   :  { %v261_v2 = vmul.f32 %v257_v59, %v246_v31  ;;  %v262_v15 = vmul.f32 %v257_v59, %v250_v36  ;;  %v285_v6 = vsel %vm61_vm0, %v284_v19, %v283_v44  ;;  %v491_v25 = vrot.slane %v1037_v34, %v986_v12 }
  0x29   :  { %v496_v7 = vrot.slane %v1155_v3, 7  ;;  %v498_v10 = vrot.slane %v1160_v57, 6  ;;  %v263_v17 = vadd.f32 %v259_v30, %v231_v56  ;;  %v264_v18 = vadd.f32 %v260_v8, %v232_v5 }
  0x2a   :  { %v265_v20 = vadd.f32 %v261_v2, %v233_v60  ;;  %v266_v21 = vadd.f32 %v262_v15, %v234_v61  ;;  %v287_v23 = vsel %vm64_vm1, %v286_v58, %v285_v6  ;;  %v500_v27 = vrot.slane %v1176_v1, 5 }
  0x2b   :  { %v497_v24 = vsel %vm61_vm0, %v496_v7, %v1186_v14  ;;  %v514_v31 = vrot.slane %v980_v9, %v1027_v28  ;;  %v289_v32 = vsel %vm67_vm2, %v288_v62, %v287_v23  ;;  %v518_v38 = vrot.slane %v999_v16, %v1027_v28 }
  0x2c   :  { %v499_v33 = vsel %vm64_vm1, %v498_v10, %v497_v24  ;;  %v522_v39 = vrot.slane %v1022_v26, %v1027_v28  ;;  %v291_v35 = vmul.f32 %v289_v32, %v270_v52  ;;  %v292_v36 = vmul.f32 %v289_v32, %v274_v54 }
  0x2d   :  { %v293_v37 = vmul.f32 %v289_v32, %v278_v55  ;;  %v294_v40 = vmul.f32 %v289_v32, %v282_v11  ;;  %v501_v41 = vsel %vm67_vm2, %v500_v27, %v499_v33  ;;  %v526_v42 = vrot.slane %v1037_v34, %v1027_v28 }
  0x2e   :  { %v527_v44 = vrot.slane %v1186_v14, 1  ;;  %v529_v45 = vrot.slane %v1160_v57, 7  ;;  %v1205_v46 = vadd.f32 %v291_v35, %v263_v17  ;;  %v1207_v47 = vadd.f32 %v292_v36, %v264_v18 }
  0x2f   :  { %v1209_v50 = vadd.f32 %v293_v37, %v265_v20  ;;  %v1211_v51 = vadd.f32 %v294_v40, %v266_v21  ;;  %v503_v52 = vmul.f32 %v501_v41, %v479_v29  ;;  %v504_v54 = vmul.f32 %v501_v41, %v483_v63 }
  0x30   :  { %v505_v55 = vmul.f32 %v501_v41, %v487_v0  ;;  %v506_v56 = vmul.f32 %v501_v41, %v491_v25  ;;  %v300_v5 = vsel %vm299_vm3, %v1205_v46, -inf  ;;  %v307_v60 = vsel %vm299_vm3, %v1207_v47, -inf }
  0x31   :  { %v314_v61 = vsel %vm299_vm3, %v1209_v50, -inf  ;;  %v321_v4 = vsel %vm299_vm3, %v1211_v51, -inf  ;;  %v301_v11 = vrot.slane %v300_v5, 4  ;;  %v308_v19 = vrot.slane %v307_v60, 4 }
  0x32   :  { %v315_v58 = vrot.slane %v314_v61, 4  ;;  %v322_v59 = vrot.slane %v321_v4, 4  ;;  %v528_v29 = vsel %vm61_vm0, %v1155_v3, %v527_v44  ;;  %v531_v62 = vrot.slane %v1176_v1, 6 }
  0x33   :  { %v545_v63 = vrot.slane %v980_v9, %v1054_v48  ;;  %v549_v0 = vrot.slane %v999_v16, %v1054_v48  ;;  %v302_v30 = vmax.f32 %v300_v5, %v301_v11  ;;  %v309_v8 = vmax.f32 %v307_v60, %v308_v19 }
  0x34   :  { %v316_v2 = vmax.f32 %v314_v61, %v315_v58  ;;  %v323_v15 = vmax.f32 %v321_v4, %v322_v59  ;;  %v530_v6 = vsel %vm64_vm1, %v529_v45, %v528_v29  ;;  %v553_v25 = vrot.slane %v1022_v26, %v1054_v48 }
  0x35   :  { %v557_v7 = vrot.slane %v1037_v34, %v1054_v48  ;;  %v558_v10 = vrot.slane %v1186_v14, 2  ;;  %v303_v17 = vrot.slane %v302_v30, 2  ;;  %v310_v18 = vrot.slane %v309_v8, 2 }
  0x36   :  { %v317_v20 = vrot.slane %v316_v2, 2  ;;  %v324_v21 = vrot.slane %v323_v15, 2  ;;  %v532_v23 = vsel %vm67_vm2, %v531_v62, %v530_v6  ;;  %v559_v24 = vrot.slane %v1155_v3, 1 }
  0x37   :  { %v562_v27 = vrot.slane %v1176_v1, 7  ;;  %v576_v32 = vrot.slane %v980_v9, %v1061_v53  ;;  %v304_v33 = vmax.f32 %v302_v30, %v303_v17  ;;  %v311_v35 = vmax.f32 %v309_v8, %v310_v18 }
  0x38   :  { %v318_v36 = vmax.f32 %v316_v2, %v317_v20  ;;  %v325_v37 = vmax.f32 %v323_v15, %v324_v21  ;;  %v534_v40 = vmul.f32 %v532_v23, %v514_v31  ;;  %v535_v41 = vmul.f32 %v532_v23, %v518_v38 }
  0x39   :  { %v536_v44 = vmul.f32 %v532_v23, %v522_v39  ;;  %v537_v45 = vmul.f32 %v532_v23, %v526_v42  ;;  %v305_v5 = vrot.slane %v304_v33, 1  ;;  %v312_v60 = vrot.slane %v311_v35, 1 }
  0x3a   :  { %v319_v61 = vrot.slane %v318_v36, 1  ;;  %v326_v4 = vrot.slane %v325_v37, 1  ;;  %v538_v11 = vadd.f32 %v534_v40, %v503_v52  ;;  %v539_v19 = vadd.f32 %v535_v41, %v504_v54 }
  0x3b   :  { %v540_v58 = vadd.f32 %v536_v44, %v505_v55  ;;  %v541_v59 = vadd.f32 %v537_v45, %v506_v56  ;;  %v306_v29 = vmax.f32 %v304_v33, %v305_v5  ;;  %v313_v62 = vmax.f32 %v311_v35, %v312_v60 }
  0x3c   :  { %v320_v6 = vmax.f32 %v318_v36, %v319_v61  ;;  %v327_v48 = vmax.f32 %v325_v37, %v326_v4  ;;  %v560_v30 = vsel %vm61_vm0, %v559_v24, %v558_v10  ;;  %v580_v31 = vrot.slane %v999_v16, %v1061_v53 }
  0x3d   :  { %v584_v38 = vrot.slane %v1022_v26, %v1061_v53  ;;  %v588_v39 = vrot.slane %v1037_v34, %v1061_v53  ;;  %v328_v42 = vsub.f32 %v1205_v46, %v306_v29  ;;  %v329_v52 = vsub.f32 %v1207_v47, %v313_v62 }
  0x3e   :  { %v330_v54 = vsub.f32 %v1209_v50, %v320_v6  ;;  %v331_v55 = vsub.f32 %v1211_v51, %v327_v48  ;;  %v561_v56 = vsel %vm64_vm1, %v1160_v57, %v560_v30  ;;  %v589_v8 = vrot.slane %v1186_v14, 3 }
  0x3f   :  { %v590_v2 = vrot.slane %v1155_v3, 2  ;;  %v592_v15 = vrot.slane %v1160_v57, 1  ;;  %v332_v10 = vmul.f32 1.442695, %v328_v42  ;;  %v334_v17 = vmul.f32 1.442695, %v329_v52 }
  0x40   :  { %v336_v18 = vmul.f32 1.442695, %v330_v54  ;;  %v563_v46 = vsel %vm67_vm2, %v562_v27, %v561_v56  ;;  %v338_v20 = vmul.f32 1.442695, %v331_v55  ;;  %v607_v23 = vrot.slane %v980_v9, %v1087_v22 }
  0x41   :  { %v565_v47 = vmul.f32 %v563_v46, %v545_v63  ;;  %v566_v21 = vmul.f32 %v563_v46, %v549_v0  ;;  %v567_v50 = vmul.f32 %v563_v46, %v553_v25  ;;  %912 = vpow2.f32 %v332_v10 }
  0x42   :  { %v568_v48 = vmul.f32 %v563_v46, %v557_v7  ;;  %v591_v51 = vsel %vm61_vm0, %v590_v2, %v589_v8  ;;  %914 = vpow2.f32 %v334_v17  ;;  %v611_v63 = vrot.slane %v999_v16, %v1087_v22 }
  0x43   :  { %v569_v24 = vadd.f32 %v565_v47, %v538_v11  ;;  %v570_v33 = vadd.f32 %v566_v21, %v539_v19  ;;  %v571_v35 = vadd.f32 %v567_v50, %v540_v58  ;;  %916 = vpow2.f32 %v336_v18 }
  0x44   :  { %v572_v36 = vadd.f32 %v568_v48, %v541_v59  ;;  %v593_v37 = vsel %vm64_vm1, %v592_v15, %v591_v51  ;;  %918 = vpow2.f32 %v338_v20  ;;  %v615_v25 = vrot.slane %v1022_v26, %v1087_v22 }
  0x45   :  { %v594_v0 = vsel %vm67_vm2, %v1176_v1, %v593_v37  ;;  %v619_v7 = vrot.slane %v1037_v34, %v1087_v22  ;;  %v620_v45 = vrot.slane %v1186_v14, 4  ;;  %v621_v5 = vrot.slane %v1155_v3, 3 }
  0x46   :  { %v596_v27 = vmul.f32 %v594_v0, %v576_v32  ;;  %v597_v40 = vmul.f32 %v594_v0, %v580_v31  ;;  %v598_v41 = vmul.f32 %v594_v0, %v584_v38  ;;  %v599_v44 = vmul.f32 %v594_v0, %v588_v39 }
  0x47   :  { %v623_v60 = vrot.slane %v1160_v57, 2  ;;  %v625_v61 = vrot.slane %v1176_v1, 1  ;;  %v622_v59 = vsel %vm61_vm0, %v621_v5, %v620_v45  ;;  %v639_v22 = vrot.slane %v980_v9, %v1106_v49 }
  0x48   :  { %v600_v4 = vadd.f32 %v596_v27, %v569_v24  ;;  %v601_v11 = vadd.f32 %v597_v40, %v570_v33  ;;  %v602_v19 = vadd.f32 %v598_v41, %v571_v35  ;;  %v603_v58 = vadd.f32 %v599_v44, %v572_v36 }
  0x49   :  { %v643_v32 = vrot.slane %v999_v16, %v1106_v49  ;;  %v647_v29 = vrot.slane %v1022_v26, %v1106_v49  ;;  %v624_v62 = vsel %vm64_vm1, %v623_v60, %v622_v59  ;;  %v651_v6 = vrot.slane %v1037_v34, %v1106_v49 }
  0x4a   :  { %v652_v30 = vrot.slane %v1186_v14, 5  ;;  %v653_v31 = vrot.slane %v1155_v3, 4  ;;  %v626_v38 = vsel %vm67_vm2, %v625_v61, %v624_v62  ;;  %v655_v39 = vrot.slane %v1160_v57, 3 }
  0x4b   :  { %v657_v42 = vrot.slane %v1176_v1, 2  ;;  %v671_v52 = vrot.slane %v980_v9, %v1124_v13  ;;  %v1292_v54 = vpop.eup %912  ;;  %v628_v55 = vmul.f32 %v626_v38, %v607_v23  ;;  %v629_v56 = vmul.f32 %v626_v38, %v611_v63 }
  0x4c   :  { %v630_v8 = vmul.f32 %v626_v38, %v615_v25  ;;  %v631_v2 = vmul.f32 %v626_v38, %v619_v7  ;;  %v1294_v49 = vpop.eup %914  ;;  %v340_v15 = vsel %vm299_vm3, %v1292_v54, 0.0  ;;  %v654_v10 = vsel %vm61_vm0, %v653_v31, %v652_v30 }
  0x4d   :  { %v675_v17 = vrot.slane %v999_v16, %v1124_v13  ;;  %v679_v18 = vrot.slane %v1022_v26, %v1124_v13  ;;  %v1303_v46 = vpop.eup %916  ;;  %v341_v20 = vrot.slane %v340_v15, 4  ;;  %v347_v47 = vsel %vm299_vm3, %v1294_v49, 0.0 }
  0x4e   :  { %v632_v21 = vadd.f32 %v628_v55, %v600_v4  ;;  %v633_v50 = vadd.f32 %v629_v56, %v601_v11  ;;  %v1307_v48 = vpop.eup %918  ;;  %v348_v51 = vrot.slane %v347_v47, 4  ;;  %v354_v23 = vsel %vm299_vm3, %v1303_v46, 0.0 }
  0x4f   :  { %v634_v24 = vadd.f32 %v630_v8, %v602_v19  ;;  %v635_v33 = vadd.f32 %v631_v2, %v603_v58  ;;  %v342_v35 = vadd.f32 %v341_v20, %v340_v15  ;;  %v355_v36 = vrot.slane %v354_v23, 4 }
  0x50   :  { %v361_v37 = vsel %vm299_vm3, %v1307_v48, 0.0  ;;  %v656_v63 = vsel %vm64_vm1, %v655_v39, %v654_v10  ;;  %v349_v0 = vadd.f32 %v348_v51, %v347_v47  ;;  %v683_v27 = vrot.slane %v1037_v34, %v1124_v13 }
  0x51   :  { %v362_v25 = vrot.slane %v361_v37, 4  ;;  %v658_v7 = vsel %vm67_vm2, %v657_v42, %v656_v63  ;;  %v343_v40 = vrot.slane %v342_v35, 2  ;;  %v356_v41 = vadd.f32 %v355_v36, %v354_v23 }
  0x52   :  { %v660_v44 = vmul.f32 %v658_v7, %v639_v22  ;;  %v661_v45 = vmul.f32 %v658_v7, %v643_v32  ;;  %v350_v5 = vrot.slane %v349_v0, 2  ;;  %v662_v61 = vmul.f32 %v658_v7, %v647_v29 }
  0x53   :  { %v363_v60 = vadd.f32 %v362_v25, %v361_v37  ;;  %v663_v4 = vmul.f32 %v658_v7, %v651_v6  ;;  %v344_v11 = vadd.f32 %v343_v40, %v342_v35  ;;  %v357_v19 = vrot.slane %v356_v41, 2 }
  0x54   :  { %v664_v58 = vadd.f32 %v660_v44, %v632_v21  ;;  %v665_v59 = vadd.f32 %v661_v45, %v633_v50  ;;  %v351_v62 = vadd.f32 %v350_v5, %v349_v0  ;;  %v666_v31 = vadd.f32 %v662_v61, %v634_v24  ;;  %v12_v61 = vld [vmem:[%s1450_s0 + $0x20] sm:$0xff] }
  0x55   :  { %v364_v30 = vrot.slane %v363_v60, 2  ;;  %v667_v38 = vadd.f32 %v663_v4, %v635_v33  ;;  %v345_v39 = vrot.slane %v344_v11, 1  ;;  %v358_v42 = vadd.f32 %v357_v19, %v356_v41  ;;  %v18_v4 = vld [vmem:[%s1450_s0 + $0x50] sm:$0xff] }
  0x56   :  { %v684_v55 = vrot.slane %v1186_v14, 6  ;;  %v685_v56 = vrot.slane %v1155_v3, 5  ;;  %v352_v22 = vrot.slane %v351_v62, 1  ;;  %v687_v8 = vrot.slane %v1160_v57, 4 }
  0x57   :  { %v365_v32 = vadd.f32 %v364_v30, %v363_v60  ;;  %v689_v29 = vrot.slane %v1176_v1, 3  ;;  %v346_v6 = vadd.f32 %v345_v39, %v344_v11  ;;  %v359_v2 = vrot.slane %v358_v42, 1  ;;  %v1455_v30 = vld [vmem:[#allocation2_spill] sm:$0xff] }
  0x58   :  { %v686_v15 = vsel %vm61_vm0, %v685_v56, %v684_v55  ;;  %v703_v10 = vrot.slane %v980_v9, %v1142_v43  ;;  %v353_v20 = vadd.f32 %v352_v22, %v351_v62  ;;  %v707_v50 = vrot.slane %v999_v16, %v1142_v43 }
  0x59   :  { %v366_v47 = vrot.slane %v365_v32, 1  ;;  %v688_v21 = vsel %vm64_vm1, %v687_v8, %v686_v15  ;;  %v360_v51 = vadd.f32 %v359_v2, %v358_v42  ;;  %920 = vrcp.f32 %v346_v6 }
  0x5a   :  { %v690_v23 = vsel %vm67_vm2, %v689_v29, %v688_v21  ;;  %v711_v24 = vrot.slane %v1022_v26, %v1142_v43  ;;  %922 = vrcp.f32 %v353_v20  ;;  %v715_v16 = vrot.slane %v1037_v34, %v1142_v43 }
  0x5b   :  { %v367_v33 = vadd.f32 %v366_v47, %v365_v32  ;;  %v692_v35 = vmul.f32 %v690_v23, %v671_v52  ;;  %v693_v36 = vmul.f32 %v690_v23, %v675_v17  ;;  %924 = vrcp.f32 %v360_v51  ;;  %v24_v32 = vld [vmem:[%s1450_s0 + $0x80] sm:$0xff] }
  0x5c   :  { %v694_v37 = vmul.f32 %v690_v23, %v679_v18  ;;  %v695_v63 = vmul.f32 %v690_v23, %v683_v27  ;;  %v716_v7 = vrot.slane %v1186_v14, 7  ;;  %v717_v41 = vrot.slane %v1155_v3, 6  ;;  %v30_v23 = vld [vmem:[%s1450_s0 + $0xb0] sm:$0xff] }
  0x5d   :  { %926 = vrcp.f32 %v367_v33  ;;  %v696_v0 = vadd.f32 %v692_v35, %v664_v58  ;;  %v697_v25 = vadd.f32 %v693_v36, %v665_v59  ;;  %v719_v44 = vrot.slane %v1160_v57, 5 }
  0x5e   :  { %v698_v40 = vadd.f32 %v694_v37, %v666_v31  ;;  %v699_v26 = vadd.f32 %v695_v63, %v667_v38  ;;  %v721_v9 = vrot.slane %v1176_v1, 4  ;;  %v718_v13 = vsel %vm61_vm0, %v717_v41, %v716_v7 }
  0x5f   :  { %v720_v52 = vsel %vm64_vm1, %v719_v44, %v718_v13 }
  0x60   :  { %v722_v17 = vsel %vm67_vm2, %v721_v9, %v720_v52 }
  0x61   :  { %v724_v34 = vmul.f32 %v722_v17, %v703_v10  ;;  %v725_v43 = vmul.f32 %v722_v17, %v707_v50  ;;  %v726_v18 = vmul.f32 %v722_v17, %v711_v24  ;;  %v727_v27 = vmul.f32 %v722_v17, %v715_v16 }
  0x63   :  { %v921_v45 = vpop.eup %920  ;;  %v1343_v60 = vadd.f32 %v724_v34, %v696_v0  ;;  %v1345_v3 = vadd.f32 %v725_v43, %v697_v25  ;;  %v1347_v57 = vadd.f32 %v726_v18, %v698_v40  ;;  %v1356_v19 = vadd.f32 %v727_v27, %v699_v26 }
  0x64   :  { %v923_v14 = vpop.eup %922  ;;  %v372_v5 = vmul.f32 %v921_v45, %v1292_v54 }
  0x65   :  { %v925_v1 = vpop.eup %924  ;;  %v373_v11 = vmul.f32 %v923_v14, %v1294_v49  ;;  %v732_v17 = vsel %vm299_vm3, %v1343_v60, -inf  ;;  %v739_v34 = vsel %vm299_vm3, %v1345_v3, -inf  ;;  %v746_v43 = vsel %vm299_vm3, %v1347_v57, -inf }
  0x66   :  { %v374_v58 = vmul.f32 %v925_v1, %v1303_v46  ;;  %v379_v59 = vrot.slane %v372_v5, %v986_v12  ;;  %v403_v62 = vrot.slane %v372_v5, %v1027_v28  ;;  %v427_v31 = vrot.slane %v372_v5, %v1455_v30 }
  0x67   :  { %v927_v54 = vpop.eup %926  ;;  %v383_v39 = vrot.slane %v373_v11, %v986_v12  ;;  %v407_v42 = vrot.slane %v373_v11, %v1027_v28  ;;  %v431_v55 = vrot.slane %v373_v11, %v1455_v30  ;;  %v451_v16 = vrot.slane %v372_v5, %v1061_v53 }
  0x68   :  { %v375_v38 = vmul.f32 %v927_v54, %v1307_v48  ;;  %v387_v49 = vrot.slane %v374_v58, %v986_v12  ;;  %v392_v56 = vmul.f32 %v379_v59, %v12_v61  ;;  %v411_v22 = vrot.slane %v374_v58, %v1027_v28 }
  0x69   :  { %v416_v46 = vmul.f32 %v403_v62, %v18_v4  ;;  %v393_v29 = vmul.f32 %v383_v39, %v12_v61  ;;  %v417_v6 = vmul.f32 %v407_v42, %v18_v4  ;;  %v435_v20 = vrot.slane %v374_v58, %v1455_v30 }
  0x6a   :  { %v391_v8 = vrot.slane %v375_v38, %v986_v12  ;;  %v415_v48 = vrot.slane %v375_v38, %v1027_v28  ;;  %v394_v2 = vmul.f32 %v387_v49, %v12_v61  ;;  %v418_v15 = vmul.f32 %v411_v22, %v18_v4 }
  0x6b   :  { %v420_v10 = vadd.f32 %v416_v46, %v392_v56  ;;  %v421_v50 = vadd.f32 %v417_v6, %v393_v29  ;;  %v439_v51 = vrot.slane %v375_v38, %v1455_v30  ;;  %v440_v33 = vmul.f32 %v427_v31, %v24_v32 }
  0x6c   :  { %v395_v47 = vmul.f32 %v391_v8, %v12_v61  ;;  %v419_v21 = vmul.f32 %v415_v48, %v18_v4  ;;  %v422_v24 = vadd.f32 %v418_v15, %v394_v2  ;;  %v441_v35 = vmul.f32 %v431_v55, %v24_v32 }
  0x6d   :  { %v442_v36 = vmul.f32 %v435_v20, %v24_v32  ;;  %v443_v63 = vmul.f32 %v439_v51, %v24_v32  ;;  %v455_v0 = vrot.slane %v373_v11, %v1061_v53  ;;  %v444_v25 = vadd.f32 %v440_v33, %v420_v10 }
  0x6e   :  { %v423_v37 = vadd.f32 %v419_v21, %v395_v47  ;;  %v445_v7 = vadd.f32 %v441_v35, %v421_v50  ;;  %v459_v26 = vrot.slane %v374_v58, %v1061_v53  ;;  %v463_v44 = vrot.slane %v375_v38, %v1061_v53 }
  0x6f   :  { %v446_v40 = vadd.f32 %v442_v36, %v422_v24  ;;  %v464_v9 = vmul.f32 %v451_v16, %v30_v23  ;;  %v465_v13 = vmul.f32 %v455_v0, %v30_v23  ;;  %v733_v14 = vrot.slane %v732_v17, 4 }
  0x70   :  { %v447_v41 = vadd.f32 %v443_v63, %v423_v37  ;;  %v466_v52 = vmul.f32 %v459_v26, %v30_v23  ;;  %v467_v18 = vmul.f32 %v463_v44, %v30_v23  ;;  %v740_v1 = vrot.slane %v739_v34, 4 }
  0x71   :  { %v468_v27 = vadd.f32 %v464_v9, %v444_v25  ;;  %v469_v45 = vadd.f32 %v465_v13, %v445_v7  ;;  %v747_v61 = vrot.slane %v746_v43, 4  ;;  %v753_v4 = vsel %vm299_vm3, %v1356_v19, -inf }
  0x72   :  { %v470_v5 = vadd.f32 %v466_v52, %v446_v40  ;;  %v471_v11 = vadd.f32 %v467_v18, %v447_v41  ;;  %v734_v54 = vmax.f32 %v732_v17, %v733_v14  ;;  %v754_v58 = vrot.slane %v753_v4, 4 }
  0x73   :  { %472 = vst [vmem:[%s1451_s1] sm:$0xff] %v468_v27  ;;  %473 = vst [vmem:[%s1451_s1 + $0x10] sm:$0xff] %v469_v45  ;;  %v741_v59 = vmax.f32 %v739_v34, %v740_v1  ;;  %v748_v62 = vmax.f32 %v746_v43, %v747_v61 }
  0x74   :  { %474 = vst [vmem:[%s1451_s1 + $0x20] sm:$0xff] %v470_v5  ;;  %475 = vst [vmem:[%s1451_s1 + $0x30] sm:$0xff] %v471_v11  ;;  %v735_v31 = vrot.slane %v734_v54, 2  ;;  %v755_v38 = vmax.f32 %v753_v4, %v754_v58 }
  0x75   :  { %v742_v39 = vrot.slane %v741_v59, 2  ;;  %v749_v42 = vrot.slane %v748_v62, 2 }
  0x76   :  { %v736_v55 = vmax.f32 %v734_v54, %v735_v31  ;;  %v756_v49 = vrot.slane %v755_v38, 2 }
  0x77   :  { %v743_v56 = vmax.f32 %v741_v59, %v742_v39  ;;  %v750_v22 = vmax.f32 %v748_v62, %v749_v42  ;;  %v19_v39 = vld [vmem:[%s1450_s0 + $0x58] sm:$0xff] }
  0x78   :  { %v737_v46 = vrot.slane %v736_v55, 1  ;;  %v757_v32 = vmax.f32 %v755_v38, %v756_v49  ;;  %v13_v38 = vld [vmem:[%s1450_s0 + $0x28] sm:$0xff] }
  0x79   :  { %v744_v8 = vrot.slane %v743_v56, 1  ;;  %v751_v29 = vrot.slane %v750_v22, 1 }
  0x7a   :  { %v738_v48 = vmax.f32 %v736_v55, %v737_v46  ;;  %v758_v6 = vrot.slane %v757_v32, 1 }
  0x7b   :  { %v745_v2 = vmax.f32 %v743_v56, %v744_v8  ;;  %v752_v15 = vmax.f32 %v750_v22, %v751_v29 }
  0x7c   :  { %v759_v10 = vmax.f32 %v757_v32, %v758_v6  ;;  %v760_v20 = vsub.f32 %v1343_v60, %v738_v48 }
  0x7d   :  { %v761_v47 = vsub.f32 %v1345_v3, %v745_v2  ;;  %v762_v21 = vsub.f32 %v1347_v57, %v752_v15 }
  0x7e   :  { %v763_v50 = vsub.f32 %v1356_v19, %v759_v10  ;;  %v764_v51 = vmul.f32 1.442695, %v760_v20  ;;  %v25_v20 = vld [vmem:[%s1450_s0 + $0x88] sm:$0xff] }
  0x7f   :  { %v766_v23 = vmul.f32 1.442695, %v761_v47  ;;  %v768_v24 = vmul.f32 1.442695, %v762_v21 }
  0x80   :  { %928 = vpow2.f32 %v764_v51  ;;  %v770_v33 = vmul.f32 1.442695, %v763_v50 }
  0x81   :  { %930 = vpow2.f32 %v766_v23 }
  0x82   :  { %932 = vpow2.f32 %v768_v24 }
  0x83   :  { %934 = vpow2.f32 %v770_v33 }
  0x8a   :  { %v929_v35 = vpop.eup %928 }
  0x8b   :  { %v931_v36 = vpop.eup %930  ;;  %v772_v37 = vsel %vm299_vm3, %v929_v35, 0.0 }
  0x8c   :  { %v933_v63 = vpop.eup %932  ;;  %v773_v60 = vrot.slane %v772_v37, 4  ;;  %v779_v3 = vsel %vm299_vm3, %v931_v36, 0.0 }
  0x8d   :  { %v935_v16 = vpop.eup %934  ;;  %v780_v57 = vrot.slane %v779_v3, 4  ;;  %v786_v19 = vsel %vm299_vm3, %v933_v63, 0.0 }
  0x8e   :  { %v774_v0 = vadd.f32 %v773_v60, %v772_v37  ;;  %v787_v25 = vrot.slane %v786_v19, 4  ;;  %v793_v7 = vsel %vm299_vm3, %v935_v16, 0.0 }
  0x8f   :  { %v781_v40 = vadd.f32 %v780_v57, %v779_v3  ;;  %v794_v26 = vrot.slane %v793_v7, 4  ;;  %v31_v3 = vld [vmem:[%s1450_s0 + $0xb8] sm:$0xff] }
  0x90   :  { %v775_v41 = vrot.slane %v774_v0, 2  ;;  %v788_v44 = vadd.f32 %v787_v25, %v786_v19 }
  0x91   :  { %v782_v9 = vrot.slane %v781_v40, 2  ;;  %v795_v13 = vadd.f32 %v794_v26, %v793_v7 }
  0x92   :  { %v776_v52 = vadd.f32 %v775_v41, %v774_v0  ;;  %v789_v17 = vrot.slane %v788_v44, 2 }
  0x93   :  { %v783_v34 = vadd.f32 %v782_v9, %v781_v40  ;;  %v796_v43 = vrot.slane %v795_v13, 2 }
  0x94   :  { %v777_v18 = vrot.slane %v776_v52, 1  ;;  %v790_v27 = vadd.f32 %v789_v17, %v788_v44 }
  0x95   :  { %v784_v45 = vrot.slane %v783_v34, 1  ;;  %v797_v14 = vadd.f32 %v796_v43, %v795_v13 }
  0x96   :  { %v778_v5 = vadd.f32 %v777_v18, %v776_v52  ;;  %v791_v1 = vrot.slane %v790_v27, 1 }
  0x97   :  { %v785_v61 = vadd.f32 %v784_v45, %v783_v34  ;;  %v798_v4 = vrot.slane %v797_v14, 1 }
  0x98   :  { %v792_v11 = vadd.f32 %v791_v1, %v790_v27  ;;  %936 = vrcp.f32 %v778_v5 }
  0x99   :  { %v799_v54 = vadd.f32 %v798_v4, %v797_v14  ;;  %938 = vrcp.f32 %v785_v61 }
  0x9a   :  { %940 = vrcp.f32 %v792_v11 }
  0x9b   :  { %942 = vrcp.f32 %v799_v54 }
  0xa2   :  { %v937_v58 = vpop.eup %936 }
  0xa3   :  { %v939_v59 = vpop.eup %938  ;;  %v804_v62 = vmul.f32 %v937_v58, %v929_v35 }
  0xa4   :  { %v941_v31 = vpop.eup %940  ;;  %v805_v42 = vmul.f32 %v939_v59, %v931_v36 }
  0xa5   :  { %v943_v55 = vpop.eup %942  ;;  %v806_v49 = vmul.f32 %v941_v31, %v933_v63  ;;  %v811_v56 = vrot.slane %v804_v62, %v986_v12  ;;  %v835_v22 = vrot.slane %v804_v62, %v1027_v28  ;;  %v859_v46 = vrot.slane %v804_v62, %v1455_v30 }
  0xa6   :  { %v807_v32 = vmul.f32 %v943_v55, %v935_v16  ;;  %v815_v8 = vrot.slane %v805_v42, %v986_v12  ;;  %v839_v29 = vrot.slane %v805_v42, %v1027_v28  ;;  %v863_v48 = vrot.slane %v805_v42, %v1455_v30 }
  0xa7   :  { %v819_v6 = vrot.slane %v806_v49, %v986_v12  ;;  %v824_v2 = vmul.f32 %v811_v56, %v13_v38  ;;  %v843_v15 = vrot.slane %v806_v49, %v1027_v28  ;;  %v848_v10 = vmul.f32 %v835_v22, %v19_v39 }
  0xa8   :  { %v823_v47 = vrot.slane %v807_v32, %v986_v12  ;;  %v825_v21 = vmul.f32 %v815_v8, %v13_v38  ;;  %v847_v50 = vrot.slane %v807_v32, %v1027_v28  ;;  %v849_v51 = vmul.f32 %v839_v29, %v19_v39 }
  0xa9   :  { %v826_v23 = vmul.f32 %v819_v6, %v13_v38  ;;  %v850_v24 = vmul.f32 %v843_v15, %v19_v39  ;;  %v852_v33 = vadd.f32 %v848_v10, %v824_v2  ;;  %v867_v35 = vrot.slane %v806_v49, %v1455_v30 }
  0xaa   :  { %v827_v36 = vmul.f32 %v823_v47, %v13_v38  ;;  %v851_v37 = vmul.f32 %v847_v50, %v19_v39  ;;  %v853_v63 = vadd.f32 %v849_v51, %v825_v21  ;;  %v871_v60 = vrot.slane %v807_v32, %v1455_v30 }
  0xab   :  { %v854_v16 = vadd.f32 %v850_v24, %v826_v23  ;;  %v872_v12 = vmul.f32 %v859_v46, %v25_v20  ;;  %v873_v57 = vmul.f32 %v863_v48, %v25_v20  ;;  %v874_v19 = vmul.f32 %v867_v35, %v25_v20 }
  0xac   :  { %v855_v28 = vadd.f32 %v851_v37, %v827_v36  ;;  %v875_v0 = vmul.f32 %v871_v60, %v25_v20  ;;  %v883_v25 = vrot.slane %v804_v62, %v1061_v53  ;;  %v887_v7 = vrot.slane %v805_v42, %v1061_v53 }
  0xad   :  { %v876_v40 = vadd.f32 %v872_v12, %v852_v33  ;;  %v877_v26 = vadd.f32 %v873_v57, %v853_v63  ;;  %v878_v41 = vadd.f32 %v874_v19, %v854_v16  ;;  %v891_v44 = vrot.slane %v806_v49, %v1061_v53 }
  0xae   :  { %v879_v30 = vadd.f32 %v875_v0, %v855_v28  ;;  %v895_v9 = vrot.slane %v807_v32, %v1061_v53  ;;  %v896_v13 = vmul.f32 %v883_v25, %v31_v3  ;;  %v897_v52 = vmul.f32 %v887_v7, %v31_v3 }
  0xaf   :  { %v898_v17 = vmul.f32 %v891_v44, %v31_v3 }
  0xb0   :  { %v899_v34 = vmul.f32 %v895_v9, %v31_v3  ;;  %v900_v43 = vadd.f32 %v896_v13, %v876_v40  ;;  %v901_v18 = vadd.f32 %v897_v52, %v877_v26 }
  0xb1   :  { %v902_v27 = vadd.f32 %v898_v17, %v878_v41 }
  0xb2   :  { %v903_v45 = vadd.f32 %v899_v34, %v879_v30  ;;  %904 = vst [vmem:[%s1451_s1 + $0x8] sm:$0xff] %v900_v43  ;;  %905 = vst [vmem:[%s1451_s1 + $0x18] sm:$0xff] %v901_v18 }
  0xb3   :  { %906 = vst [vmem:[%s1451_s1 + $0x28] sm:$0xff] %v902_v27 }
  0xb4   :  { %907 = vst [vmem:[%s1451_s1 + $0x38] sm:$0xff] %v903_v45 }

// kernel: cpednet_forward.52
= control target key start
LH: loop header
LB: loop body
LE: loop exit
PB: predicated region body
PF: predicated region fallthrough
CT: control target
= control target key end

     0   :  { %s543_s17 = smov 0   ;;  %s545_s18 = smov 0   ;;  %s600_s0 = inlined_call_operand.vmem [shape: bf16[32,16], index: 0, kind: input, shape index: {}]   ;;  %s601_s1 = inlined_call_operand.vmem [shape: f32[4,16,128], index: 1, kind: input, shape index: {}]   ;;  %s602_s2 = inlined_call_operand.<no memory space> [shape: f32[1,1,1], index: 2, kind: input, shape index: {}]   ;;  %s603_s3 = inlined_call_operand.vmem [shape: f32[1,32,1], index: 3, kind: input, shape index: {}]   ;;  %s604_s4 = inlined_call_operand.vmem [shape: f32[4,32,128], index: 4, kind: output, shape index: {}]  }
   0x1   :  { %v9_v0 = vstv %s602_s2  ;;  %s547_s19 = smov 0  }
   0x2   :  { %10 = vst [vmem:[#allocation2] sm:$0x1] %v9_v0 }
   0x3 LB: > { %s28_s2 = sadd.s32 1, %s508_s18  ;;  %p438_p0 = scmp.ge.s32.totalorder %s512_s19, 1  ;;  %s512_s19 = sphi %s547_s19, %s16_s19   ;;  %s508_s18 = sphi %s545_s18, %s606_s18   ;;  %s504_s17 = sphi %s543_s17, %s605_s17  }
   0x4   : > { %p30_p1 = scmp.ge.s32.totalorder %s28_s2, 4  ;;  %p183_p2 = scmp.lt.s32.totalorder %s512_s19, 5 }
   0x6   : > { %s608_s2 = smov (%p30_p1, %s28_s2), 0  ;;  %p184_p3 = pnand %p438_p0, %p183_p2 }
   0x7   : > { %p215_p4 = scmp.lt.s32.totalorder (!%p184_p3), %s504_s17, 3  ;;  %v488_v1 = vld [vmem:[%s600_s0] sm:$0xff] (!%p184_p3)   ;;  %vm249_vm0 = vcmask (!%p184_p3), 130048   ;;  %v320_v3 = vld [vmem:[%s603_s3 + $0x8] sm:$0xff] (!%p184_p3)  ;;  %v514_v4 = vmov (!%p184_p3), 0   ;;  %v321_v6 = vld [vmem:[%s603_s3 + $0x10] sm:$0xff] (!%p184_p3) }
   0x8   : > { %187 = sbr.rel (%p184_p3) target bundleno = 245 (0xf5), region = 36  ;;  %457 = vmatprep.mubr.msk.bf16.mxu0 (!%p184_p3), %vm249_vm0, %v488_v1  ;;  %486 = vset.pattern.permute.xlu0 (!%p184_p3), %v514_v4  ;;  %v319_v5 = vld [vmem:[%s603_s3] sm:$0xff] (!%p184_p3)  ;;  %v489_v10 = vld [vmem:[%s600_s0 + $0x8] sm:$0xff] (!%p184_p3)   ;;  %v322_v11 = vld [vmem:[%s603_s3 + $0x18] sm:$0xff] (!%p184_p3) }
   0x9   : > { %v447_v2 = vld [vmem:[#allocation2] ss:$0 sm:$0xff] (!%p184_p3)  ;;  %487 = vset.pattern.permute.xlu1 (!%p184_p3), %v514_v4 }
   0xa   : > { %312 = vperm.xlu0 (!%p184_p3), %486, %v447_v2   ;;  %330 = vperm.xlu1 (!%p184_p3), %487, %v320_v3  }
   0xe   : > { %325 = vperm.xlu0 (!%p184_p3), %486, %v319_v5   ;;  %335 = vperm.xlu1 (!%p184_p3), %487, %v321_v6  }
   0xf   : > { %s610_s17 = smov (!%p215_p4, %s504_s17), 3 }
  0x10   : > { %s450_s24 = sshll.u32 %s610_s17, 4  ;;  %s451_s10 = sshll.u32 %s610_s17, 5 }
  0x11   : > { %s222_s27 = scalar_lea.vmem %s601_s1, %s450_s24  ;;  %s230_s13 = scalar_lea.vmem %s604_s4, %s451_s10 }
  0x12   : > { %v236_v7 = vld [vmem:[%s222_s27] sm:$0xff]  ;;  %v237_v8 = vld [vmem:[%s222_s27 + $0x8] sm:$0xff]  ;;  %340 = vperm.xlu0 %486, %v322_v11  }
  0x13   : > { %v238_v9 = vpack.c.bf16 %v237_v8, %v236_v7 }
  0x15   : > { %455 = vmatprep.subr.bf16.mxu0 %v238_v9 }
  0x16   : > { %456 = vmatpush3.bf16.msra.mxu0 %v238_v9 }
  0x19   : > { %458 = vmatmul.mubr.msk.bf16.vlgmr.msra.gmra.mrb[0].mxu0 %vm249_vm0, %v489_v10 }
  0x89   : > { %v313_v12 = vpop.permute.xlu0 %312  ;;  %v331_v13 = vpop.permute.xlu1 %330 }
  0x8d   : > { %v326_v14 = vpop.permute.xlu0 %325  ;;  %v336_v16 = vpop.permute.xlu1 %335 }
  0x91   : > { %v341_v24 = vpop.permute.xlu0 %340 }
  0xec   : > { %v459_v15 = vpop.f32.mrb[0].mxu0 }
  0xed   : > { %v317_v17 = vmul.f32 %v459_v15, %v313_v12  ;;  %v290_v18 = vpop.f32.mrb[1].mxu0 }
  0xee   : > { %v315_v19 = vmul.f32 %v313_v12, %v290_v18  ;;  %v460_v20 = vpop.f32.mrb[2].mxu0 }
  0xef   : > { %v345_v21 = vadd.f32 %v336_v16, %v317_v17  ;;  %v318_v22 = vmul.f32 %v460_v20, %v313_v12  ;;  %v293_v23 = vpop.f32.mrb[3].mxu0 }
  0xf0   : > { %v343_v25 = vadd.f32 %v326_v14, %v315_v19  ;;  %v316_v26 = vmul.f32 %v313_v12, %v293_v23 }
  0xf1   : > { %349 = vst [vmem:[%s230_s13 + $0x10] sm:$0xff] %v345_v21  ;;  %v346_v27 = vadd.f32 %v341_v24, %v318_v22 }
  0xf2   : > { %347 = vst [vmem:[%s230_s13] sm:$0xff] %v343_v25  ;;  %v344_v28 = vadd.f32 %v331_v13, %v316_v26 }
  0xf3   : > { %350 = vst [vmem:[%s230_s13 + $0x18] sm:$0xff] %v346_v27 }
  0xf4   : > { %348 = vst [vmem:[%s230_s13 + $0x8] sm:$0xff] %v344_v28 }
  0xf5 PF: > { %s16_s19 = sadd.s32 1, %s512_s19   ;;  %s605_s17 = smov %s508_s18 }
  0xf6   : > { %p13_p5 = scmp.ge.s32.totalorder %s16_s19, 6   ;;  %s606_s18 = smov %s608_s2 }
  0xf8   :  { %15 = sbr.rel (!%p13_p5) target bundleno = 3 (0x3), region = 66 }

// kernel: cpednet_forward.48
= control target key start
LH: loop header
LB: loop body
LE: loop exit
PB: predicated region body
PF: predicated region fallthrough
CT: control target
= control target key end

     0   :  { %v214_v0 = vmov 0.0   ;;  %vm215_vm0 = vmmov 0   ;;  %v216_v7 = vmov 0   ;;  %vm44_vm1 = vcmask 130048   ;;  %s302_s1 = inlined_call_operand.vmem [shape: f32[1,16,128], index: 1, kind: input, shape index: {}]   ;;  %s303_s0 = inlined_call_operand.vmem [shape: bf16[48,16], index: 0, kind: input, shape index: {}]   ;;  %s304_s2 = inlined_call_operand.<no memory space> [shape: f32[1,1,1], index: 2, kind: input, shape index: {}]   ;;  %s305_s3 = inlined_call_operand.vmem [shape: f32[1,48,1], index: 3, kind: input, shape index: {}]   ;;  %s306_s4 = inlined_call_operand.vmem [shape: f32[1,48,128], index: 4, kind: output, shape index: {}]  }
   0x1   :  { %190 = vmatprep.subr.bf16.mxu0 %v214_v0  ;;  %204 = vmatprep.subr.bf16.mxu1 %v214_v0  ;;  %v26_v1 = vld [vmem:[%s302_s1] sm:$0xff]  ;;  %v27_v2 = vld [vmem:[%s302_s1 + $0x8] sm:$0xff]  ;;  %v9_v3 = vstv %s304_s2  ;;  %v130_v10 = vld [vmem:[%s305_s3 + $0x18] sm:$0xff] }
   0x2   :  { %v28_v4 = vpack.c.bf16 %v27_v2, %v26_v1  ;;  %192 = vmatprep.mubr.msk.bf16.mxu0 %vm215_vm0, %v214_v0  ;;  %196 = vmatprep.mubr.msk.bf16.mxu1 %vm215_vm0, %v214_v0  ;;  %v211_v5 = vld [vmem:[%s303_s0] sm:$0xff]   ;;  %10 = vst [vmem:[#allocation2] sm:$0x1] %v9_v3  ;;  %v212_v6 = vld [vmem:[%s303_s0 + $0x8] sm:$0xff]   ;;  %v129_v11 = vld [vmem:[%s305_s3 + $0x10] sm:$0xff] }
   0x3   :  { %209 = vset.pattern.permute.xlu0 %v216_v7  ;;  %210 = vset.pattern.permute.xlu1 %v216_v7  ;;  %v127_v8 = vld [vmem:[%s305_s3] sm:$0xff]  ;;  %v128_v9 = vld [vmem:[%s305_s3 + $0x8] sm:$0xff]  ;;  %v213_v13 = vld [vmem:[%s303_s0 + $0x10] sm:$0xff]  }
   0x4   :  { %191 = vmatpush3.bf16.msra.mxu0 %v28_v4  ;;  %205 = vmatpush3.bf16.msra.mxu1 %v28_v4  ;;  %v131_v14 = vld [vmem:[%s305_s3 + $0x20] sm:$0xff]  ;;  %v132_v15 = vld [vmem:[%s305_s3 + $0x28] sm:$0xff] }
   0x5   :  { %135 = vperm.xlu0 %209, %v127_v8   ;;  %140 = vperm.xlu1 %210, %v128_v9  }
   0x7   :  { %193 = vmatmul.mubr.msk.bf16.vlgmr.msra.gmra.mrb[0].mxu0 %vm44_vm1, %v211_v5  ;;  %197 = vmatmul.mubr.msk.bf16.vlgmr.msra.gmra.mrb[0].mxu1 %vm44_vm1, %v212_v6 }
   0x8   :  { %200 = vmatprep.mubr.msk.bf16.mxu1 %vm215_vm0, %v214_v0 }
   0x9   :  { %150 = vperm.xlu0 %209, %v130_v10   ;;  %v185_v12 = vld [vmem:[#allocation2] ss:$0 sm:$0xff]  ;;  %145 = vperm.xlu1 %210, %v129_v11  }
   0xd   :  { %118 = vperm.xlu0 %209, %v185_v12   ;;  %155 = vperm.xlu1 %210, %v131_v14  }
   0xf   :  { %201 = vmatmul.mubr.msk.bf16.gmra.mrb[4].mxu1 %vm44_vm1, %v213_v13 }
  0x11   :  { %160 = vperm.xlu0 %209, %v132_v15  }
  0x84   :  { %v136_v16 = vpop.permute.xlu0 %135  ;;  %v141_v18 = vpop.permute.xlu1 %140 }
  0x88   :  { %v151_v17 = vpop.permute.xlu0 %150  ;;  %v146_v20 = vpop.permute.xlu1 %145 }
  0x8c   :  { %v119_v19 = vpop.permute.xlu0 %118  ;;  %v156_v40 = vpop.permute.xlu1 %155 }
  0x90   :  { %v161_v45 = vpop.permute.xlu0 %160 }
  0xda   :  { %v88_v21 = vpop.f32.mrb[0].mxu0  ;;  %v96_v22 = vpop.f32.mrb[0].mxu1 }
  0xdb   :  { %v121_v23 = vmul.f32 %v119_v19, %v88_v21  ;;  %v123_v24 = vmul.f32 %v119_v19, %v96_v22  ;;  %v194_v25 = vpop.f32.mrb[1].mxu0  ;;  %v198_v26 = vpop.f32.mrb[1].mxu1 }
  0xdc   :  { %v91_v27 = vpop.f32.mrb[2].mxu0  ;;  %v99_v28 = vpop.f32.mrb[2].mxu1 }
  0xdd   :  { %v163_v29 = vadd.f32 %v136_v16, %v121_v23  ;;  %v165_v30 = vadd.f32 %v146_v20, %v123_v24  ;;  %v122_v31 = vmul.f32 %v119_v19, %v91_v27  ;;  %v124_v32 = vmul.f32 %v119_v19, %v99_v28  ;;  %v199_v33 = vpop.f32.mrb[3].mxu1  ;;  %v195_v34 = vpop.f32.mrb[3].mxu0 }
  0xdf   :  { %169 = vst [vmem:[%s306_s4] sm:$0xff] %v163_v29  ;;  %171 = vst [vmem:[%s306_s4 + $0x10] sm:$0xff] %v165_v30  ;;  %v164_v35 = vadd.f32 %v141_v18, %v122_v31  ;;  %v166_v36 = vadd.f32 %v151_v17, %v124_v32 }
  0xe1   :  { %170 = vst [vmem:[%s306_s4 + $0x8] sm:$0xff] %v164_v35  ;;  %172 = vst [vmem:[%s306_s4 + $0x18] sm:$0xff] %v166_v36 }
  0xe2   :  { %v104_v37 = vpop.f32.mrb[4].mxu1 }
  0xe3   :  { %v125_v38 = vmul.f32 %v119_v19, %v104_v37  ;;  %v202_v39 = vpop.f32.mrb[5].mxu1 }
  0xe4   :  { %v107_v41 = vpop.f32.mrb[6].mxu1 }
  0xe5   :  { %v167_v42 = vadd.f32 %v156_v40, %v125_v38  ;;  %v126_v43 = vmul.f32 %v119_v19, %v107_v41  ;;  %v203_v44 = vpop.f32.mrb[7].mxu1 }
  0xe7   :  { %173 = vst [vmem:[%s306_s4 + $0x20] sm:$0xff] %v167_v42  ;;  %v168_v46 = vadd.f32 %v161_v45, %v126_v43 }
  0xe9   :  { %174 = vst [vmem:[%s306_s4 + $0x28] sm:$0xff] %v168_v46 }

// kernel: cpednet_forward.49
= control target key start
LH: loop header
LB: loop body
LE: loop exit
PB: predicated region body
PF: predicated region fallthrough
CT: control target
= control target key end

     0   :  { %v46_v42 = vlaneseq  ;;  %s136_s0 = inlined_call_operand.vmem [shape: f32[1,48,128], index: 0, kind: input, shape index: {}]   ;;  %s137_s1 = inlined_call_operand.vmem [shape: f32[1,16,128], index: 1, kind: output, shape index: {}]  }
   0x1   :  { %v8_v0 = vld [vmem:[%s136_s0] sm:$0xff]  ;;  %v9_v1 = vld [vmem:[%s136_s0 + $0x8] sm:$0xff]  ;;  %v10_v2 = vld [vmem:[%s136_s0 + $0x10] sm:$0xff] }
   0x2   :  { %v11_v3 = vld [vmem:[%s136_s0 + $0x18] sm:$0xff]  ;;  %v14_v4 = vmul.f32 0.35355338, %v8_v0  ;;  %v15_v5 = vmul.f32 0.35355338, %v9_v1  ;;  %v47_v43 = vshrl.u32 %v46_v42, 7 }
   0x3   :  { %v12_v48 = vld [vmem:[%s136_s0 + $0x20] sm:$0xff]  ;;  %v13_v51 = vld [vmem:[%s136_s0 + $0x28] sm:$0xff] }
   0x4   :  { %v16_v6 = vmul.f32 %v14_v4, %v10_v2  ;;  %v53_v7 = vmul.f32 %v15_v5, %v11_v3  ;;  %v48_v44 = vsub.s32 0, %v47_v43 }
   0x6   :  { %v19_v8 = vrot.slane %v16_v6, 1  ;;  %v22_v9 = vrot.slane %v16_v6, 2  ;;  %v56_v10 = vrot.slane %v53_v7, 1  ;;  %v25_v12 = vrot.slane %v16_v6, 3 }
   0x7   :  { %v59_v13 = vrot.slane %v53_v7, 2  ;;  %v62_v15 = vrot.slane %v53_v7, 3  ;;  %v28_v17 = vrot.slane %v16_v6, 4  ;;  %v65_v19 = vrot.slane %v53_v7, 4 }
   0x8   :  { %v21_v11 = vadd.f32 %v19_v8, %v16_v6  ;;  %v58_v14 = vadd.f32 %v56_v10, %v53_v7  ;;  %v31_v21 = vrot.slane %v16_v6, 5  ;;  %v68_v23 = vrot.slane %v53_v7, 5 }
   0x9   :  { %v34_v25 = vrot.slane %v16_v6, 6  ;;  %v71_v27 = vrot.slane %v53_v7, 6  ;;  %v37_v29 = vrot.slane %v16_v6, 7  ;;  %v74_v31 = vrot.slane %v53_v7, 7 }
   0xa   :  { %v24_v16 = vadd.f32 %v22_v9, %v21_v11  ;;  %v61_v18 = vadd.f32 %v59_v13, %v58_v14 }
   0xc   :  { %v27_v20 = vadd.f32 %v25_v12, %v24_v16  ;;  %v64_v22 = vadd.f32 %v62_v15, %v61_v18 }
   0xe   :  { %v30_v24 = vadd.f32 %v28_v17, %v27_v20  ;;  %v67_v26 = vadd.f32 %v65_v19, %v64_v22 }
  0x10   :  { %v33_v28 = vadd.f32 %v31_v21, %v30_v24  ;;  %v70_v30 = vadd.f32 %v68_v23, %v67_v26 }
  0x12   :  { %v36_v32 = vadd.f32 %v34_v25, %v33_v28  ;;  %v73_v33 = vadd.f32 %v71_v27, %v70_v30 }
  0x14   :  { %v39_v34 = vadd.f32 %v37_v29, %v36_v32  ;;  %v76_v35 = vadd.f32 %v74_v31, %v73_v33 }
  0x16   :  { %v40_v36 = vsub.f32 %v39_v34, %v39_v34  ;;  %v77_v37 = vsub.f32 %v76_v35, %v76_v35 }
  0x18   :  { %v41_v38 = vmul.f32 1.442695, %v40_v36  ;;  %v78_v39 = vmul.f32 1.442695, %v77_v37 }
  0x1a   :  { %94 = vpow2.f32 %v41_v38 }
  0x1b   :  { %96 = vpow2.f32 %v78_v39 }
  0x24   :  { %v95_v40 = vpop.eup %94 }
  0x25   :  { %v97_v41 = vpop.eup %96  ;;  %98 = vrcp.f32 %v95_v40 }
  0x26   :  { %100 = vrcp.f32 %v97_v41 }
  0x2f   :  { %v99_v45 = vpop.eup %98 }
  0x30   :  { %v101_v46 = vpop.eup %100  ;;  %v45_v47 = vmul.f32 %v99_v45, %v95_v40 }
  0x31   :  { %v82_v49 = vmul.f32 %v101_v46, %v97_v41 }
  0x32   :  { %v49_v50 = vrot.slane %v45_v47, %v48_v44 }
  0x33   :  { %v86_v52 = vrot.slane %v82_v49, %v48_v44 }
  0x34   :  { %v50_v53 = vmul.f32 %v49_v50, %v12_v48 }
  0x35   :  { %v87_v54 = vmul.f32 %v86_v52, %v13_v51 }
  0x36   :  { %52 = vst [vmem:[%s137_s1] sm:$0xff] %v50_v53 }
  0x37   :  { %89 = vst [vmem:[%s137_s1 + $0x8] sm:$0xff] %v87_v54 }

// kernel: cpednet_forward.50
= control target key start
LH: loop header
LB: loop body
LE: loop exit
PB: predicated region body
PF: predicated region fallthrough
CT: control target
= control target key end

     0   :  { %v124_v0 = vmov 0.0   ;;  %vm125_vm0 = vmmov 0   ;;  %v126_v5 = vmov 0   ;;  %vm30_vm1 = vcmask 130048   ;;  %s176_s1 = inlined_call_operand.vmem [shape: f32[1,16,128], index: 1, kind: input, shape index: {}]   ;;  %s177_s0 = inlined_call_operand.vmem [shape: bf16[16,16], index: 0, kind: input, shape index: {}]   ;;  %s178_s2 = inlined_call_operand.<no memory space> [shape: f32[1,1,1], index: 2, kind: input, shape index: {}]   ;;  %s179_s3 = inlined_call_operand.vmem [shape: f32[1,16,1], index: 3, kind: input, shape index: {}]   ;;  %s180_s4 = inlined_call_operand.vmem [shape: f32[1,16,128], index: 4, kind: output, shape index: {}]  }
   0x1   :  { %112 = vmatprep.subr.bf16.mxu0 %v124_v0  ;;  %v22_v1 = vld [vmem:[%s176_s1] sm:$0xff]  ;;  %v23_v2 = vld [vmem:[%s176_s1 + $0x8] sm:$0xff]  ;;  %114 = vmatprep.mubr.msk.bf16.mxu0 %vm125_vm0, %v124_v0  ;;  %v9_v3 = vstv %s178_s2 }
   0x2   :  { %v24_v4 = vpack.c.bf16 %v23_v2, %v22_v1  ;;  %121 = vset.pattern.permute.xlu0 %v126_v5  ;;  %10 = vst [vmem:[#allocation2] sm:$0x1] %v9_v3  ;;  %122 = vset.pattern.permute.xlu1 %v126_v5  ;;  %v123_v6 = vld [vmem:[%s177_s0] sm:$0xff]   ;;  %v88_v7 = vld [vmem:[%s179_s3 + $0x8] sm:$0xff] }
   0x3   :  { %96 = vperm.xlu1 %122, %v88_v7   ;;  %v87_v9 = vld [vmem:[%s179_s3] sm:$0xff] }
   0x4   :  { %113 = vmatpush3.bf16.msra.mxu0 %v24_v4 }
   0x7   :  { %115 = vmatmul.mubr.msk.bf16.vlgmr.msra.gmra.mrb[0].mxu0 %vm30_vm1, %v123_v6 }
   0x9   :  { %v109_v8 = vld [vmem:[#allocation2] ss:$0 sm:$0xff] }
   0xa   :  { %82 = vperm.xlu0 %121, %v109_v8  }
   0xe   :  { %91 = vperm.xlu0 %121, %v87_v9  }
  0x82   :  { %v97_v14 = vpop.permute.xlu1 %96 }
  0x89   :  { %v83_v10 = vpop.permute.xlu0 %82 }
  0x8d   :  { %v92_v15 = vpop.permute.xlu0 %91 }
  0xda   :  { %v68_v11 = vpop.f32.mrb[0].mxu0 }
  0xdb   :  { %v85_v12 = vmul.f32 %v83_v10, %v68_v11  ;;  %v116_v13 = vpop.f32.mrb[1].mxu0 }
  0xdc   :  { %v71_v16 = vpop.f32.mrb[2].mxu0 }
  0xdd   :  { %v99_v17 = vadd.f32 %v92_v15, %v85_v12  ;;  %v86_v18 = vmul.f32 %v83_v10, %v71_v16  ;;  %v117_v19 = vpop.f32.mrb[3].mxu0 }
  0xdf   :  { %v100_v20 = vadd.f32 %v97_v14, %v86_v18  ;;  %101 = vst [vmem:[%s180_s4] sm:$0xff] %v99_v17 }
  0xe1   :  { %102 = vst [vmem:[%s180_s4 + $0x8] sm:$0xff] %v100_v20 }

// kernel: cpednet_forward.55
= control target key start
LH: loop header
LB: loop body
LE: loop exit
PB: predicated region body
PF: predicated region fallthrough
CT: control target
= control target key end

     0   :  { %v126_v0 = vmov 0.0   ;;  %vm127_vm0 = vmmov 0   ;;  %v128_v5 = vmov 0   ;;  %vm30_vm1 = vcmask 130048   ;;  %s178_s1 = inlined_call_operand.vmem [shape: f32[1,16,128], index: 1, kind: input, shape index: {}]   ;;  %s179_s0 = inlined_call_operand.vmem [shape: bf16[16,16], index: 0, kind: input, shape index: {}]   ;;  %s180_s2 = inlined_call_operand.<no memory space> [shape: f32[1,1,1], index: 2, kind: input, shape index: {}]   ;;  %s181_s3 = inlined_call_operand.vmem [shape: f32[1,16,1], index: 3, kind: input, shape index: {}]   ;;  %s182_s4 = inlined_call_operand.vmem [shape: f32[1,16,128], index: 4, kind: output, shape index: {}]  }
   0x1   :  { %114 = vmatprep.subr.bf16.mxu0 %v126_v0  ;;  %v22_v1 = vld [vmem:[%s178_s1] sm:$0xff]  ;;  %v23_v2 = vld [vmem:[%s178_s1 + $0x8] sm:$0xff]  ;;  %116 = vmatprep.mubr.msk.bf16.mxu0 %vm127_vm0, %v126_v0  ;;  %v9_v3 = vstv %s180_s2 }
   0x2   :  { %v24_v4 = vpack.c.bf16 %v23_v2, %v22_v1  ;;  %123 = vset.pattern.permute.xlu0 %v128_v5  ;;  %10 = vst [vmem:[#allocation2] sm:$0x1] %v9_v3  ;;  %124 = vset.pattern.permute.xlu1 %v128_v5  ;;  %v125_v6 = vld [vmem:[%s179_s0] sm:$0xff]   ;;  %v88_v7 = vld [vmem:[%s181_s3 + $0x8] sm:$0xff] }
   0x3   :  { %96 = vperm.xlu1 %124, %v88_v7   ;;  %v87_v9 = vld [vmem:[%s181_s3] sm:$0xff] }
   0x4   :  { %115 = vmatpush3.bf16.msra.mxu0 %v24_v4 }
   0x7   :  { %117 = vmatmul.mubr.msk.bf16.vlgmr.msra.gmra.mrb[0].mxu0 %vm30_vm1, %v125_v6 }
   0x9   :  { %v111_v8 = vld [vmem:[#allocation2] ss:$0 sm:$0xff] }
   0xa   :  { %82 = vperm.xlu0 %123, %v111_v8  }
   0xe   :  { %91 = vperm.xlu0 %123, %v87_v9  }
  0x82   :  { %v97_v14 = vpop.permute.xlu1 %96 }
  0x89   :  { %v83_v10 = vpop.permute.xlu0 %82 }
  0x8d   :  { %v92_v15 = vpop.permute.xlu0 %91 }
  0xda   :  { %v68_v11 = vpop.f32.mrb[0].mxu0 }
  0xdb   :  { %v85_v12 = vmul.f32 %v83_v10, %v68_v11  ;;  %v118_v13 = vpop.f32.mrb[1].mxu0 }
  0xdc   :  { %v71_v16 = vpop.f32.mrb[2].mxu0 }
  0xdd   :  { %v99_v17 = vadd.f32 %v92_v15, %v85_v12  ;;  %v86_v18 = vmul.f32 %v83_v10, %v71_v16  ;;  %v119_v19 = vpop.f32.mrb[3].mxu0 }
  0xdf   :  { %v101_v20 = vmax.f32 %v99_v17, 0.0  ;;  %v100_v21 = vadd.f32 %v97_v14, %v86_v18 }
  0xe1   :  { %v102_v22 = vmax.f32 %v100_v21, 0.0  ;;  %103 = vst [vmem:[%s182_s4] sm:$0xff] %v101_v20 }
  0xe3   :  { %104 = vst [vmem:[%s182_s4 + $0x8] sm:$0xff] %v102_v22 }

// kernel: cpednet_forward.53
= control target key start
LH: loop header
LB: loop body
LE: loop exit
PB: predicated region body
PF: predicated region fallthrough
CT: control target
= control target key end

     0   :  { %v31_v0 = vlaneseq  ;;  %vm40_vm0 = vcmask 1041409   ;;  %vm43_vm1 = vcmask 1042434   ;;  %vm46_vm2 = vcmask 1043459   ;;  %s640_s0 = inlined_call_operand.vmem [shape: f32[1,16,128], index: 0, kind: input, shape index: {}]   ;;  %s641_s1 = inlined_call_operand.vmem [shape: f32[4,32,128], index: 1, kind: input, shape index: {}]   ;;  %s642_s2 = inlined_call_operand.vmem [shape: f32[1,16,128], index: 2, kind: output, shape index: {}]  }
   0x1   :  { %v11_v1 = vld [vmem:[%s640_s0] sm:$0xff]  ;;  %v12_v2 = vld [vmem:[%s640_s0 + $0x8] sm:$0xff]  ;;  %vm146_vm3 = vcmask 1043456  }
   0x2   :  { %v383_v3 = vld [vmem:[%s641_s1] sm:$0xff]  ;;  %v385_v4 = vmul.f32 0.35355338, %v11_v1  ;;  %v387_v5 = vshrl.u32 %v31_v0, 7  ;;  %v400_v9 = vmul.f32 0.35355338, %v12_v2 }
   0x3   :  { %v392_v6 = vld [vmem:[%s641_s1 + $0x20] sm:$0xff]  ;;  %v55_v7 = vrot.slane %v383_v3, 1  ;;  %v68_v27 = vrot.slane %v383_v3, 2  ;;  %v81_v33 = vrot.slane %v383_v3, 3  ;;  %v94_v41 = vrot.slane %v383_v3, 4 }
   0x4   :  { %v398_v8 = vld [vmem:[%s641_s1 + $0x40] sm:$0xff]  ;;  %v403_v10 = vsub.s32 0, %v387_v5  ;;  %v39_v11 = vrot.slane %v392_v6, 7  ;;  %v407_v12 = vsub.s32 1, %v387_v5  ;;  %v419_v17 = vsub.s32 2, %v387_v5 }
   0x5   :  { %v412_v13 = vld [vmem:[%s641_s1 + $0x60] sm:$0xff]  ;;  %v42_v14 = vrot.slane %v398_v8, 6  ;;  %v56_v15 = vsel %vm40_vm0, %v392_v6, %v55_v7  ;;  %v57_v16 = vrot.slane %v398_v8, 7  ;;  %v69_v28 = vrot.slane %v392_v6, 1 }
   0x6   :  { %v34_v18 = vrot.slane %v385_v4, %v403_v10  ;;  %v41_v19 = vsel %vm40_vm0, %v39_v11, %v383_v3  ;;  %v45_v20 = vrot.slane %v412_v13, 5  ;;  %v54_v21 = vrot.slane %v385_v4, %v407_v12 }
   0x7   :  { %v44_v22 = vsel %vm43_vm1, %v42_v14, %v41_v19  ;;  %v58_v23 = vsel %vm43_vm1, %v57_v16, %v56_v15  ;;  %v59_v24 = vrot.slane %v412_v13, 6  ;;  %v67_v25 = vrot.slane %v385_v4, %v419_v17 }
   0x8   :  { %v47_v26 = vsel %vm46_vm2, %v45_v20, %v44_v22  ;;  %v72_v29 = vrot.slane %v412_v13, 7  ;;  %v439_v32 = vsub.s32 3, %v387_v5  ;;  %v70_v35 = vsel %vm40_vm0, %v69_v28, %v68_v27  ;;  %v486_v20 = vld [vmem:[%s641_s1 + $0x28] sm:$0xff] }
   0x9   :  { %v49_v30 = vmul.f32 %v47_v26, %v34_v18  ;;  %v60_v31 = vsel %vm46_vm2, %v59_v24, %v58_v23  ;;  %v82_v36 = vrot.slane %v392_v6, 2  ;;  %v84_v37 = vrot.slane %v398_v8, 1  ;;  %v500_v26 = vld [vmem:[%s641_s1 + $0x68] sm:$0xff] }
   0xa   :  { %v62_v34 = vmul.f32 %v60_v31, %v54_v21  ;;  %v71_v38 = vsel %vm43_vm1, %v398_v8, %v70_v35  ;;  %v80_v39 = vrot.slane %v385_v4, %v439_v32  ;;  %v92_v40 = vsub.s32 4, %v387_v5 }
   0xb   :  { %v73_v43 = vsel %vm46_vm2, %v72_v29, %v71_v38  ;;  %v83_v44 = vsel %vm40_vm0, %v82_v36, %v81_v33  ;;  %v95_v45 = vrot.slane %v392_v6, 3  ;;  %v97_v49 = vrot.slane %v398_v8, 2 }
   0xc   :  { %v63_v42 = vadd.f32 %v62_v34, %v49_v30  ;;  %v75_v46 = vmul.f32 %v73_v43, %v67_v25  ;;  %v85_v47 = vsel %vm43_vm1, %v84_v37, %v83_v44  ;;  %v93_v48 = vrot.slane %v385_v4, %v92_v40  ;;  %v495_v25 = vld [vmem:[%s641_s1 + $0x48] sm:$0xff] }
   0xd   :  { %v86_v50 = vsel %vm46_vm2, %v412_v13, %v85_v47  ;;  %v96_v51 = vsel %vm40_vm0, %v95_v45, %v94_v41  ;;  %v99_v52 = vrot.slane %v412_v13, 1  ;;  %v106_v53 = vsub.s32 5, %v387_v5 }
   0xe   :  { %v76_v54 = vadd.f32 %v75_v46, %v63_v42  ;;  %v88_v55 = vmul.f32 %v86_v50, %v80_v39  ;;  %v98_v56 = vsel %vm43_vm1, %v97_v49, %v96_v51  ;;  %v108_v57 = vrot.slane %v383_v3, 5 }
   0xf   :  { %v100_v58 = vsel %vm46_vm2, %v99_v52, %v98_v56  ;;  %v107_v59 = vrot.slane %v385_v4, %v106_v53  ;;  %v109_v60 = vrot.slane %v392_v6, 4  ;;  %v111_v61 = vrot.slane %v398_v8, 3 }
  0x10   :  { %v89_v62 = vadd.f32 %v88_v55, %v76_v54  ;;  %v102_v63 = vmul.f32 %v100_v58, %v93_v48  ;;  %v113_v0 = vrot.slane %v412_v13, 2  ;;  %v120_v1 = vsub.s32 6, %v387_v5 }
  0x11   :  { %v110_v2 = vsel %vm40_vm0, %v109_v60, %v108_v57  ;;  %v122_v7 = vrot.slane %v383_v3, 6  ;;  %v123_v11 = vrot.slane %v392_v6, 5  ;;  %v125_v14 = vrot.slane %v398_v8, 4 }
  0x12   :  { %v103_v15 = vadd.f32 %v102_v63, %v89_v62  ;;  %v112_v16 = vsel %vm43_vm1, %v111_v61, %v110_v2  ;;  %v121_v18 = vrot.slane %v385_v4, %v120_v1  ;;  %v127_v19 = vrot.slane %v412_v13, 3 }
  0x13   :  { %v114_v21 = vsel %vm46_vm2, %v113_v0, %v112_v16  ;;  %v124_v22 = vsel %vm40_vm0, %v123_v11, %v122_v7  ;;  %v134_v23 = vsub.s32 7, %v387_v5  ;;  %v136_v24 = vrot.slane %v383_v3, 7  ;;  %v508_v3 = vld [vmem:[%s641_s1 + $0x8] sm:$0xff] }
  0x14   :  { %v116_v27 = vmul.f32 %v114_v21, %v107_v59  ;;  %v126_v28 = vsel %vm43_vm1, %v125_v14, %v124_v22  ;;  %v137_v29 = vrot.slane %v392_v6, 6  ;;  %v139_v30 = vrot.slane %v398_v8, 5 }
  0x15   :  { %v128_v31 = vsel %vm46_vm2, %v127_v19, %v126_v28  ;;  %v135_v33 = vrot.slane %v385_v4, %v134_v23  ;;  %v141_v34 = vrot.slane %v412_v13, 4  ;;  %v194_v35 = vrot.slane %v400_v9, %v403_v10 }
  0x16   :  { %v117_v36 = vadd.f32 %v116_v27, %v103_v15  ;;  %v130_v6 = vmul.f32 %v128_v31, %v121_v18  ;;  %v138_v8 = vsel %vm40_vm0, %v137_v29, %v136_v24  ;;  %v199_v37 = vrot.slane %v486_v20, 7 }
  0x17   :  { %v140_v38 = vsel %vm43_vm1, %v139_v30, %v138_v8  ;;  %v201_v39 = vrot.slane %v495_v25, 6  ;;  %v203_v41 = vrot.slane %v500_v26, 5  ;;  %v211_v4 = vrot.slane %v400_v9, %v407_v12 }
  0x18   :  { %v131_v42 = vadd.f32 %v130_v6, %v117_v36  ;;  %v142_v13 = vsel %vm46_vm2, %v141_v34, %v140_v38  ;;  %v200_v43 = vsel %vm40_vm0, %v199_v37, %v508_v3  ;;  %v212_v44 = vrot.slane %v508_v3, 1 }
  0x19   :  { %v144_v45 = vmul.f32 %v142_v13, %v135_v33  ;;  %v202_v46 = vsel %vm43_vm1, %v201_v39, %v200_v43  ;;  %v214_v47 = vrot.slane %v495_v25, 7  ;;  %v216_v48 = vrot.slane %v500_v26, 6 }
  0x1a   :  { %v204_v49 = vsel %vm46_vm2, %v203_v41, %v202_v46  ;;  %v213_v50 = vsel %vm40_vm0, %v486_v20, %v212_v44  ;;  %v224_v51 = vrot.slane %v400_v9, %v419_v17  ;;  %v225_v52 = vrot.slane %v508_v3, 2 }
  0x1b   :  { %v537_v54 = vadd.f32 %v144_v45, %v131_v42  ;;  %v206_v55 = vmul.f32 %v204_v49, %v194_v35  ;;  %v215_v56 = vsel %vm43_vm1, %v214_v47, %v213_v50  ;;  %v226_v57 = vrot.slane %v486_v20, 1 }
  0x1c   :  { %v217_v58 = vsel %vm46_vm2, %v216_v48, %v215_v56  ;;  %v229_v59 = vrot.slane %v500_v26, 7  ;;  %v237_v60 = vrot.slane %v400_v9, %v439_v32  ;;  %v238_v61 = vrot.slane %v508_v3, 3 }
  0x1d   :  { %v147_v62 = vsel %vm146_vm3, %v537_v54, -inf  ;;  %v219_v63 = vmul.f32 %v217_v58, %v211_v4  ;;  %v227_v0 = vsel %vm40_vm0, %v226_v57, %v225_v52  ;;  %v239_v2 = vrot.slane %v486_v20, 2 }
  0x1e   :  { %v148_v7 = vrot.slane %v147_v62, 4  ;;  %v228_v11 = vsel %vm43_vm1, %v495_v25, %v227_v0  ;;  %v241_v14 = vrot.slane %v495_v25, 1  ;;  %v250_v15 = vrot.slane %v400_v9, %v92_v40 }
  0x1f   :  { %v220_v16 = vadd.f32 %v219_v63, %v206_v55  ;;  %v230_v18 = vsel %vm46_vm2, %v229_v59, %v228_v11  ;;  %v240_v19 = vsel %vm40_vm0, %v239_v2, %v238_v61  ;;  %v251_v21 = vrot.slane %v508_v3, 4 }
  0x20   :  { %v149_v22 = vmax.f32 %v147_v62, %v148_v7  ;;  %v232_v24 = vmul.f32 %v230_v18, %v224_v51  ;;  %v242_v27 = vsel %vm43_vm1, %v241_v14, %v240_v19  ;;  %v252_v28 = vrot.slane %v486_v20, 3 }
  0x21   :  { %v243_v29 = vsel %vm46_vm2, %v500_v26, %v242_v27  ;;  %v254_v30 = vrot.slane %v495_v25, 2  ;;  %v256_v40 = vrot.slane %v500_v26, 1  ;;  %v264_v31 = vrot.slane %v400_v9, %v106_v53 }
  0x22   :  { %v150_v33 = vrot.slane %v149_v22, 2  ;;  %v233_v34 = vadd.f32 %v232_v24, %v220_v16  ;;  %v245_v35 = vmul.f32 %v243_v29, %v237_v60  ;;  %v253_v36 = vsel %vm40_vm0, %v252_v28, %v251_v21 }
  0x23   :  { %v255_v6 = vsel %vm43_vm1, %v254_v30, %v253_v36  ;;  %v265_v8 = vrot.slane %v508_v3, 5  ;;  %v266_v37 = vrot.slane %v486_v20, 4  ;;  %v268_v38 = vrot.slane %v495_v25, 3 }
  0x24   :  { %v151_v39 = vmax.f32 %v149_v22, %v150_v33  ;;  %v246_v41 = vadd.f32 %v245_v35, %v233_v34  ;;  %v257_v4 = vsel %vm46_vm2, %v256_v40, %v255_v6  ;;  %v270_v42 = vrot.slane %v500_v26, 2 }
  0x25   :  { %v259_v53 = vmul.f32 %v257_v4, %v250_v15  ;;  %v267_v13 = vsel %vm40_vm0, %v266_v37, %v265_v8  ;;  %v279_v43 = vrot.slane %v508_v3, 6  ;;  %v280_v46 = vrot.slane %v486_v20, 5  ;;  %v15_v37 = vld [vmem:[%s641_s1 + $0x10] sm:$0xff] }
  0x26   :  { %v152_v44 = vrot.slane %v151_v39, 1  ;;  %v269_v45 = vsel %vm43_vm1, %v268_v38, %v267_v13  ;;  %v282_v47 = vrot.slane %v495_v25, 4  ;;  %v278_v50 = vrot.slane %v400_v9, %v120_v1  ;;  %v19_v38 = vld [vmem:[%s641_s1 + $0x30] sm:$0xff] }
  0x27   :  { %v260_v48 = vadd.f32 %v259_v53, %v246_v41  ;;  %v271_v49 = vsel %vm46_vm2, %v270_v42, %v269_v45  ;;  %v284_v51 = vrot.slane %v500_v26, 3  ;;  %v281_v56 = vsel %vm40_vm0, %v280_v46, %v279_v43  ;;  %v27_v13 = vld [vmem:[%s641_s1 + $0x70] sm:$0xff] }
  0x28   :  { %v153_v52 = vmax.f32 %v151_v39, %v152_v44  ;;  %v273_v55 = vmul.f32 %v271_v49, %v264_v31  ;;  %v293_v57 = vrot.slane %v508_v3, 7  ;;  %v283_v58 = vsel %vm43_vm1, %v282_v47, %v281_v56  ;;  %v23_v39 = vld [vmem:[%s641_s1 + $0x50] sm:$0xff] }
  0x29   :  { %v294_v59 = vrot.slane %v486_v20, 6  ;;  %v296_v60 = vrot.slane %v495_v25, 5  ;;  %v298_v61 = vrot.slane %v500_v26, 4  ;;  %v285_v1 = vsel %vm46_vm2, %v284_v51, %v283_v58  ;;  %v16_v58 = vld [vmem:[%s641_s1 + $0x18] sm:$0xff] }
  0x2a   :  { %v154_v62 = vsub.f32 %v537_v54, %v153_v52  ;;  %v274_v63 = vadd.f32 %v273_v55, %v260_v48  ;;  %v292_v0 = vrot.slane %v400_v9, %v134_v23  ;;  %v287_v2 = vmul.f32 %v285_v1, %v278_v50 }
  0x2b   :  { %v295_v3 = vsel %vm40_vm0, %v294_v59, %v293_v57  ;;  %v20_v59 = vld [vmem:[%s641_s1 + $0x38] sm:$0xff] }
  0x2c   :  { %v155_v7 = vmul.f32 1.442695, %v154_v62  ;;  %v297_v11 = vsel %vm43_vm1, %v296_v60, %v295_v3  ;;  %v288_v20 = vadd.f32 %v287_v2, %v274_v63  ;;  %v24_v60 = vld [vmem:[%s641_s1 + $0x58] sm:$0xff] }
  0x2d   :  { %v299_v25 = vsel %vm46_vm2, %v298_v61, %v297_v11 }
  0x2e   :  { %351 = vpow2.f32 %v155_v7  ;;  %v301_v26 = vmul.f32 %v299_v25, %v292_v0  ;;  %v28_v0 = vld [vmem:[%s641_s1 + $0x78] sm:$0xff] }
  0x30   :  { %v302_v14 = vadd.f32 %v301_v26, %v288_v20 }
  0x32   :  { %v303_v54 = vsel %vm146_vm3, %v302_v14, -inf }
  0x33   :  { %v304_v15 = vrot.slane %v303_v54, 4 }
  0x35   :  { %v305_v16 = vmax.f32 %v303_v54, %v304_v15 }
  0x37   :  { %v306_v18 = vrot.slane %v305_v16, 2 }
  0x38   :  { %v352_v5 = vpop.eup %351 }
  0x39   :  { %v157_v9 = vsel %vm146_vm3, %v352_v5, 0.0  ;;  %v307_v23 = vmax.f32 %v305_v16, %v306_v18 }
  0x3a   :  { %v158_v19 = vrot.slane %v157_v9, 4 }
  0x3b   :  { %v308_v21 = vrot.slane %v307_v23, 1 }
  0x3c   :  { %v159_v22 = vadd.f32 %v158_v19, %v157_v9 }
  0x3d   :  { %v309_v24 = vmax.f32 %v307_v23, %v308_v21 }
  0x3e   :  { %v160_v27 = vrot.slane %v159_v22, 2 }
  0x3f   :  { %v310_v28 = vsub.f32 %v302_v14, %v309_v24 }
  0x40   :  { %v161_v29 = vadd.f32 %v160_v27, %v159_v22 }
  0x41   :  { %v311_v30 = vmul.f32 1.442695, %v310_v28 }
  0x42   :  { %v162_v40 = vrot.slane %v161_v29, 1 }
  0x43   :  { %353 = vpow2.f32 %v311_v30 }
  0x44   :  { %v163_v31 = vadd.f32 %v162_v40, %v161_v29 }
  0x46   :  { %355 = vrcp.f32 %v163_v31 }
  0x4d   :  { %v354_v33 = vpop.eup %353 }
  0x4e   :  { %v313_v34 = vsel %vm146_vm3, %v354_v33, 0.0 }
  0x4f   :  { %v314_v35 = vrot.slane %v313_v34, 4 }
  0x50   :  { %v356_v36 = vpop.eup %355 }
  0x51   :  { %v165_v6 = vmul.f32 %v356_v36, %v352_v5  ;;  %v315_v8 = vadd.f32 %v314_v35, %v313_v34 }
  0x53   :  { %v169_v41 = vrot.slane %v165_v6, %v403_v10  ;;  %v175_v4 = vrot.slane %v165_v6, %v407_v12  ;;  %v181_v42 = vrot.slane %v165_v6, %v419_v17  ;;  %v187_v53 = vrot.slane %v165_v6, %v439_v32 }
  0x54   :  { %v316_v43 = vrot.slane %v315_v8, 2 }
  0x55   :  { %v170_v44 = vmul.f32 %v169_v41, %v15_v37  ;;  %v176_v45 = vmul.f32 %v175_v4, %v19_v38  ;;  %v182_v46 = vmul.f32 %v181_v42, %v23_v39  ;;  %v188_v49 = vmul.f32 %v187_v53, %v27_v13 }
  0x56   :  { %v317_v47 = vadd.f32 %v316_v43, %v315_v8 }
  0x57   :  { %v177_v48 = vadd.f32 %v176_v45, %v170_v44 }
  0x58   :  { %v318_v50 = vrot.slane %v317_v47, 1 }
  0x59   :  { %v183_v51 = vadd.f32 %v182_v46, %v177_v48 }
  0x5a   :  { %v319_v52 = vadd.f32 %v318_v50, %v317_v47 }
  0x5b   :  { %v189_v55 = vadd.f32 %v188_v49, %v183_v51 }
  0x5c   :  { %357 = vrcp.f32 %v319_v52 }
  0x5d   :  { %190 = vst [vmem:[%s642_s2] sm:$0xff] %v189_v55 }
  0x66   :  { %v358_v56 = vpop.eup %357 }
  0x67   :  { %v321_v57 = vmul.f32 %v358_v56, %v354_v33 }
  0x69   :  { %v325_v61 = vrot.slane %v321_v57, %v403_v10  ;;  %v331_v62 = vrot.slane %v321_v57, %v407_v12  ;;  %v337_v63 = vrot.slane %v321_v57, %v419_v17  ;;  %v343_v1 = vrot.slane %v321_v57, %v439_v32 }
  0x6b   :  { %v326_v2 = vmul.f32 %v325_v61, %v16_v58  ;;  %v332_v3 = vmul.f32 %v331_v62, %v20_v59  ;;  %v338_v7 = vmul.f32 %v337_v63, %v24_v60  ;;  %v344_v20 = vmul.f32 %v343_v1, %v28_v0 }
  0x6d   :  { %v333_v11 = vadd.f32 %v332_v3, %v326_v2 }
  0x6f   :  { %v339_v25 = vadd.f32 %v338_v7, %v333_v11 }
  0x71   :  { %v345_v26 = vadd.f32 %v344_v20, %v339_v25 }
  0x73   :  { %346 = vst [vmem:[%s642_s2 + $0x8] sm:$0xff] %v345_v26 }

// kernel: cpednet_forward.57
= control target key start
LH: loop header
LB: loop body
LE: loop exit
PB: predicated region body
PF: predicated region fallthrough
CT: control target
= control target key end

     0   :  { %v115_v0 = vmov 0.0   ;;  %vm116_vm0 = vmmov 0   ;;  %v117_v5 = vmov 0   ;;  %vm24_vm1 = vcmask 130048   ;;  %s161_s1 = inlined_call_operand.vmem [shape: f32[1,16,128], index: 1, kind: input, shape index: {}]   ;;  %s162_s2 = inlined_call_operand.<no memory space> [shape: f32[1,1,1], index: 2, kind: input, shape index: {}]   ;;  %s163_s0 = inlined_call_operand.vmem [shape: bf16[8,16], index: 0, kind: input, shape index: {}]   ;;  %s164_s3 = inlined_call_operand.vmem [shape: f32[1,8,1], index: 3, kind: input, shape index: {}]   ;;  %s165_s4 = inlined_call_operand.vmem [shape: f32[1,8,128], index: 4, kind: output, shape index: {}]  }
   0x1   :  { %101 = vmatprep.subr.bf16.mxu0 %v115_v0  ;;  %v21_v1 = vld [vmem:[%s161_s1] sm:$0xff]  ;;  %v22_v2 = vld [vmem:[%s161_s1 + $0x8] sm:$0xff]  ;;  %103 = vmatprep.mubr.msk.bf16.mxu0 %vm116_vm0, %v115_v0  ;;  %v9_v3 = vstv %s162_s2 }
   0x2   :  { %v23_v4 = vpack.c.bf16 %v22_v2, %v21_v1  ;;  %110 = vset.pattern.permute.xlu0 %v117_v5  ;;  %10 = vst [vmem:[#allocation2] sm:$0x1] %v9_v3  ;;  %v20_v6 = vld [vmem:[%s163_s0] sm:$0xf] }
   0x3   :  { %v79_v8 = vld [vmem:[%s164_s3] sm:$0xff] }
   0x4   :  { %102 = vmatpush3.bf16.msra.mxu0 %v23_v4 }
   0x7   :  { %104 = vmatmul.mubr.msk.bf16.vlgmr.msra.gmra.mrb[0].mxu0 %vm24_vm1, %v20_v6 }
   0x9   :  { %v98_v7 = vld [vmem:[#allocation2] ss:$0 sm:$0xff] }
   0xa   :  { %75 = vperm.xlu0 %110, %v98_v7  }
   0xe   :  { %82 = vperm.xlu0 %110, %v79_v8  }
  0x89   :  { %v76_v9 = vpop.permute.xlu0 %75 }
  0x8d   :  { %v83_v13 = vpop.permute.xlu0 %82 }
  0xda   :  { %v62_v10 = vpop.f32.mrb[0].mxu0 }
  0xdb   :  { %v78_v11 = vmul.f32 %v76_v9, %v62_v10  ;;  %v105_v12 = vpop.f32.mrb[1].mxu0 }
  0xdc   :  { %v65_v14 = vpop.f32.mrb[2].mxu0 }
  0xdd   :  { %v85_v15 = vadd.f32 %v83_v13, %v78_v11  ;;  %v106_v16 = vpop.f32.mrb[3].mxu0 }
  0xdf   :  { %v86_v17 = vsub.f32 0.0, %v85_v15 }
  0xe1   :  { %v87_v18 = vmul.f32 1.442695, %v86_v17 }
  0xe3   :  { %111 = vpow2.f32 %v87_v18 }
  0xed   :  { %v112_v19 = vpop.eup %111 }
  0xee   :  { %v89_v20 = vadd.f32 1.0, %v112_v19 }
  0xf0   :  { %113 = vrcp.f32 %v89_v20 }
  0xfa   :  { %v114_v21 = vpop.eup %113 }
  0xfb   :  { %92 = vst [vmem:[%s165_s4] sm:$0xff] %v114_v21 }

// kernel: squeeze.11
= control target key start
LH: loop header
LB: loop body
LE: loop exit
PB: predicated region body
PF: predicated region fallthrough
CT: control target
= control target key end

     0   :  { %vm3_vm0 = vcmask 130048   ;;  %s419_s8 = smov 80   ;;  %s420_s9 = smov 96   ;;  %s598_s0 = inlined_call_operand.vmem [shape: f32[1,8,128], index: 0, kind: input, shape index: {}]   ;;  %s599_s1 = inlined_call_operand.vmem [shape: f32[8,4,2,16], index: 1, kind: output, shape index: {}]  }
   0x1   :  { %v19_v0 = vld [vmem:[%s598_s0] sm:$0xff]   ;;  %s418_s0 = smov 112   ;;  %s421_s10 = smov 64  }
   0x2   :  { %20 = vrot.lane.b32.xlu0 %v19_v0, %s418_s0  ;;  %60 = vrot.lane.b32.xlu1 %v19_v0, %s419_s8  ;;  %4 = vst.msk [vmem:[#allocation0] sm:$0x1] %vm3_vm0, %v19_v0   ;;  %6 = vst.msk [vmem:[#allocation0 + $0x1f] sm:$0x2] %vm3_vm0, %v19_v0   ;;  %s422_s11 = smov 48   ;;  %s423_s12 = smov 32  }
   0x3   :  { %8 = vst.msk [vmem:[#allocation0 + $0x3e] sm:$0x4] %vm3_vm0, %v19_v0   ;;  %10 = vst.msk [vmem:[#allocation0 + $0x5d] sm:$0x8] %vm3_vm0, %v19_v0   ;;  %s424_s13 = smov 16  }
   0x4   :  { %12 = vst.msk [vmem:[#allocation0 + $0x7c] sm:$0x10] %vm3_vm0, %v19_v0   ;;  %14 = vst.msk [vmem:[#allocation0 + $0x9b] sm:$0x20] %vm3_vm0, %v19_v0  }
   0x5   :  { %16 = vst.msk [vmem:[#allocation0 + $0xba] sm:$0x40] %vm3_vm0, %v19_v0   ;;  %18 = vst.msk [vmem:[#allocation0 + $0xd9] sm:$0x80] %vm3_vm0, %v19_v0  }
   0x6   :  { %40 = vrot.lane.b32.xlu0 %v19_v0, %s420_s9  ;;  %80 = vrot.lane.b32.xlu1 %v19_v0, %s421_s10 }
   0xa   :  { %100 = vrot.lane.b32.xlu0 %v19_v0, %s422_s11  ;;  %120 = vrot.lane.b32.xlu1 %v19_v0, %s423_s12 }
   0xe   :  { %140 = vrot.lane.b32.xlu0 %v19_v0, %s424_s13 }
  0x74   :  { %v21_v1 = vpop.permute.xlu0 %20   ;;  %v61_v2 = vpop.permute.xlu1 %60  }
  0x75   :  { %24 = vst.msk [vmem:[#allocation0 + $0x1] sm:$0x1] %vm3_vm0, %v21_v1   ;;  %26 = vst.msk [vmem:[#allocation0 + $0x20] sm:$0x2] %vm3_vm0, %v21_v1  }
  0x76   :  { %28 = vst.msk [vmem:[#allocation0 + $0x3f] sm:$0x4] %vm3_vm0, %v21_v1   ;;  %30 = vst.msk [vmem:[#allocation0 + $0x5e] sm:$0x8] %vm3_vm0, %v21_v1  }
  0x77   :  { %32 = vst.msk [vmem:[#allocation0 + $0x7d] sm:$0x10] %vm3_vm0, %v21_v1   ;;  %34 = vst.msk [vmem:[#allocation0 + $0x9c] sm:$0x20] %vm3_vm0, %v21_v1  }
  0x78   :  { %36 = vst.msk [vmem:[#allocation0 + $0xbb] sm:$0x40] %vm3_vm0, %v21_v1   ;;  %38 = vst.msk [vmem:[#allocation0 + $0xda] sm:$0x80] %vm3_vm0, %v21_v1   ;;  %v41_v3 = vpop.permute.xlu0 %40   ;;  %v81_v4 = vpop.permute.xlu1 %80  }
  0x79   :  { %64 = vst.msk [vmem:[#allocation0 + $0x9] sm:$0x1] %vm3_vm0, %v61_v2   ;;  %66 = vst.msk [vmem:[#allocation0 + $0x28] sm:$0x2] %vm3_vm0, %v61_v2  }
  0x7a   :  { %68 = vst.msk [vmem:[#allocation0 + $0x47] sm:$0x4] %vm3_vm0, %v61_v2   ;;  %70 = vst.msk [vmem:[#allocation0 + $0x66] sm:$0x8] %vm3_vm0, %v61_v2  }
  0x7b   :  { %72 = vst.msk [vmem:[#allocation0 + $0x85] sm:$0x10] %vm3_vm0, %v61_v2   ;;  %74 = vst.msk [vmem:[#allocation0 + $0xa4] sm:$0x20] %vm3_vm0, %v61_v2  }
  0x7c   :  { %76 = vst.msk [vmem:[#allocation0 + $0xc3] sm:$0x40] %vm3_vm0, %v61_v2   ;;  %78 = vst.msk [vmem:[#allocation0 + $0xe2] sm:$0x80] %vm3_vm0, %v61_v2   ;;  %v162_v5 = vld [vmem:[#allocation0] sm:$0x3]  ;;  %v101_v8 = vpop.permute.xlu0 %100   ;;  %v121_v9 = vpop.permute.xlu1 %120  }
  0x7d   :  { %44 = vst.msk [vmem:[#allocation0 + $0x8] sm:$0x1] %vm3_vm0, %v41_v3   ;;  %46 = vst.msk [vmem:[#allocation0 + $0x27] sm:$0x2] %vm3_vm0, %v41_v3   ;;  %v183_v6 = vld [vmem:[#allocation0 + $0x20] sm:$0x3] }
  0x7e   :  { %48 = vst.msk [vmem:[#allocation0 + $0x46] sm:$0x4] %vm3_vm0, %v41_v3   ;;  %50 = vst.msk [vmem:[#allocation0 + $0x65] sm:$0x8] %vm3_vm0, %v41_v3   ;;  %v207_v7 = vld [vmem:[#allocation0 + $0x40] sm:$0x3] }
  0x7f   :  { %52 = vst.msk [vmem:[#allocation0 + $0x84] sm:$0x10] %vm3_vm0, %v41_v3   ;;  %54 = vst.msk [vmem:[#allocation0 + $0xa3] sm:$0x20] %vm3_vm0, %v41_v3   ;;  %v231_v10 = vld [vmem:[#allocation0 + $0x60] sm:$0x3] }
  0x80   :  { %56 = vst.msk [vmem:[#allocation0 + $0xc2] sm:$0x40] %vm3_vm0, %v41_v3   ;;  %58 = vst.msk [vmem:[#allocation0 + $0xe1] sm:$0x80] %vm3_vm0, %v41_v3   ;;  %v255_v11 = vld [vmem:[#allocation0 + $0x80] sm:$0x3]  ;;  %v141_v18 = vpop.permute.xlu0 %140  }
  0x81   :  { %84 = vst.msk [vmem:[#allocation0 + $0x10] sm:$0x1] %vm3_vm0, %v81_v4   ;;  %86 = vst.msk [vmem:[#allocation0 + $0x2f] sm:$0x2] %vm3_vm0, %v81_v4   ;;  %v279_v12 = vld [vmem:[#allocation0 + $0xa0] sm:$0x3] }
  0x82   :  { %88 = vst.msk [vmem:[#allocation0 + $0x4e] sm:$0x4] %vm3_vm0, %v81_v4   ;;  %90 = vst.msk [vmem:[#allocation0 + $0x6d] sm:$0x8] %vm3_vm0, %v81_v4   ;;  %v303_v13 = vld [vmem:[#allocation0 + $0xc0] sm:$0x3] }
  0x83   :  { %92 = vst.msk [vmem:[#allocation0 + $0x8c] sm:$0x10] %vm3_vm0, %v81_v4   ;;  %94 = vst.msk [vmem:[#allocation0 + $0xab] sm:$0x20] %vm3_vm0, %v81_v4   ;;  %v327_v14 = vld [vmem:[#allocation0 + $0xe0] sm:$0x3] }
  0x84   :  { %96 = vst.msk [vmem:[#allocation0 + $0xca] sm:$0x40] %vm3_vm0, %v81_v4   ;;  %98 = vst.msk [vmem:[#allocation0 + $0xe9] sm:$0x80] %vm3_vm0, %v81_v4   ;;  %v166_v15 = vld [vmem:[#allocation0 + $0x8] sm:$0x3] }
  0x85   :  { %164 = vst [vmem:[%s599_s1] sm:$0x3] %v162_v5  ;;  %383 = vst [vmem:[%s599_s1 + $0x8] sm:$0x3] %v183_v6  ;;  %v189_v16 = vld [vmem:[#allocation0 + $0x28] sm:$0x3] }
  0x86   :  { %387 = vst [vmem:[%s599_s1 + $0x10] sm:$0x3] %v207_v7  ;;  %104 = vst.msk [vmem:[#allocation0 + $0x11] sm:$0x1] %vm3_vm0, %v101_v8   ;;  %v213_v17 = vld [vmem:[#allocation0 + $0x48] sm:$0x3] }
  0x87   :  { %106 = vst.msk [vmem:[#allocation0 + $0x30] sm:$0x2] %vm3_vm0, %v101_v8   ;;  %108 = vst.msk [vmem:[#allocation0 + $0x4f] sm:$0x4] %vm3_vm0, %v101_v8   ;;  %v237_v19 = vld [vmem:[#allocation0 + $0x68] sm:$0x3] }
  0x88   :  { %110 = vst.msk [vmem:[#allocation0 + $0x6e] sm:$0x8] %vm3_vm0, %v101_v8   ;;  %112 = vst.msk [vmem:[#allocation0 + $0x8d] sm:$0x10] %vm3_vm0, %v101_v8   ;;  %v285_v20 = vld [vmem:[#allocation0 + $0xa8] sm:$0x3] }
  0x89   :  { %114 = vst.msk [vmem:[#allocation0 + $0xac] sm:$0x20] %vm3_vm0, %v101_v8   ;;  %116 = vst.msk [vmem:[#allocation0 + $0xcb] sm:$0x40] %vm3_vm0, %v101_v8   ;;  %v309_v21 = vld [vmem:[#allocation0 + $0xc8] sm:$0x3] }
  0x8a   :  { %118 = vst.msk [vmem:[#allocation0 + $0xea] sm:$0x80] %vm3_vm0, %v101_v8   ;;  %124 = vst.msk [vmem:[#allocation0 + $0x18] sm:$0x1] %vm3_vm0, %v121_v9   ;;  %v333_v22 = vld [vmem:[#allocation0 + $0xe8] sm:$0x3] }
  0x8b   :  { %126 = vst.msk [vmem:[#allocation0 + $0x37] sm:$0x2] %vm3_vm0, %v121_v9   ;;  %128 = vst.msk [vmem:[#allocation0 + $0x56] sm:$0x4] %vm3_vm0, %v121_v9   ;;  %v261_v23 = vld [vmem:[#allocation0 + $0x88] sm:$0x3] }
  0x8c   :  { %130 = vst.msk [vmem:[#allocation0 + $0x75] sm:$0x8] %vm3_vm0, %v121_v9   ;;  %132 = vst.msk [vmem:[#allocation0 + $0x94] sm:$0x10] %vm3_vm0, %v121_v9  }
  0x8d   :  { %134 = vst.msk [vmem:[#allocation0 + $0xb3] sm:$0x20] %vm3_vm0, %v121_v9   ;;  %136 = vst.msk [vmem:[#allocation0 + $0xd2] sm:$0x40] %vm3_vm0, %v121_v9   ;;  %v171_v24 = vld [vmem:[#allocation0 + $0x10] sm:$0x3] }
  0x8e   :  { %138 = vst.msk [vmem:[#allocation0 + $0xf1] sm:$0x80] %vm3_vm0, %v121_v9   ;;  %391 = vst [vmem:[%s599_s1 + $0x18] sm:$0x3] %v231_v10  ;;  %v219_v25 = vld [vmem:[#allocation0 + $0x50] sm:$0x3] }
  0x8f   :  { %395 = vst [vmem:[%s599_s1 + $0x20] sm:$0x3] %v255_v11  ;;  %399 = vst [vmem:[%s599_s1 + $0x28] sm:$0x3] %v279_v12  ;;  %v243_v26 = vld [vmem:[#allocation0 + $0x70] sm:$0x3] }
  0x90   :  { %403 = vst [vmem:[%s599_s1 + $0x30] sm:$0x3] %v303_v13  ;;  %407 = vst [vmem:[%s599_s1 + $0x38] sm:$0x3] %v327_v14  ;;  %v195_v28 = vld [vmem:[#allocation0 + $0x30] sm:$0x3] }
  0x91   :  { %380 = vst [vmem:[%s599_s1 + $0x2] sm:$0x3] %v166_v15  ;;  %384 = vst [vmem:[%s599_s1 + $0xa] sm:$0x3] %v189_v16  ;;  %v339_v27 = vld [vmem:[#allocation0 + $0xf0] sm:$0x3] }
  0x92   :  { %388 = vst [vmem:[%s599_s1 + $0x12] sm:$0x3] %v213_v17  ;;  %144 = vst.msk [vmem:[#allocation0 + $0x19] sm:$0x1] %vm3_vm0, %v141_v18   ;;  %v267_v29 = vld [vmem:[#allocation0 + $0x90] sm:$0x3] }
  0x93   :  { %146 = vst.msk [vmem:[#allocation0 + $0x38] sm:$0x2] %vm3_vm0, %v141_v18   ;;  %148 = vst.msk [vmem:[#allocation0 + $0x57] sm:$0x4] %vm3_vm0, %v141_v18   ;;  %v291_v30 = vld [vmem:[#allocation0 + $0xb0] sm:$0x3] }
  0x94   :  { %150 = vst.msk [vmem:[#allocation0 + $0x76] sm:$0x8] %vm3_vm0, %v141_v18   ;;  %152 = vst.msk [vmem:[#allocation0 + $0x95] sm:$0x10] %vm3_vm0, %v141_v18   ;;  %v315_v31 = vld [vmem:[#allocation0 + $0xd0] sm:$0x3] }
  0x95   :  { %154 = vst.msk [vmem:[#allocation0 + $0xb4] sm:$0x20] %vm3_vm0, %v141_v18   ;;  %156 = vst.msk [vmem:[#allocation0 + $0xd3] sm:$0x40] %vm3_vm0, %v141_v18  }
  0x96   :  { %158 = vst.msk [vmem:[#allocation0 + $0xf2] sm:$0x80] %vm3_vm0, %v141_v18   ;;  %392 = vst [vmem:[%s599_s1 + $0x1a] sm:$0x3] %v237_v19 }
  0x97   :  { %400 = vst [vmem:[%s599_s1 + $0x2a] sm:$0x3] %v285_v20  ;;  %404 = vst [vmem:[%s599_s1 + $0x32] sm:$0x3] %v309_v21 }
  0x98   :  { %408 = vst [vmem:[%s599_s1 + $0x3a] sm:$0x3] %v333_v22  ;;  %396 = vst [vmem:[%s599_s1 + $0x22] sm:$0x3] %v261_v23 }
  0x99   :  { %381 = vst [vmem:[%s599_s1 + $0x4] sm:$0x3] %v171_v24  ;;  %389 = vst [vmem:[%s599_s1 + $0x14] sm:$0x3] %v219_v25  ;;  %v177_v32 = vld [vmem:[#allocation0 + $0x18] sm:$0x3] }
  0x9a   :  { %393 = vst [vmem:[%s599_s1 + $0x1c] sm:$0x3] %v243_v26  ;;  %409 = vst [vmem:[%s599_s1 + $0x3c] sm:$0x3] %v339_v27  ;;  %v201_v33 = vld [vmem:[#allocation0 + $0x38] sm:$0x3] }
  0x9b   :  { %385 = vst [vmem:[%s599_s1 + $0xc] sm:$0x3] %v195_v28  ;;  %397 = vst [vmem:[%s599_s1 + $0x24] sm:$0x3] %v267_v29  ;;  %v225_v34 = vld [vmem:[#allocation0 + $0x58] sm:$0x3] }
  0x9c   :  { %401 = vst [vmem:[%s599_s1 + $0x2c] sm:$0x3] %v291_v30  ;;  %405 = vst [vmem:[%s599_s1 + $0x34] sm:$0x3] %v315_v31  ;;  %v249_v35 = vld [vmem:[#allocation0 + $0x78] sm:$0x3] }
  0x9d   :  { %382 = vst [vmem:[%s599_s1 + $0x6] sm:$0x3] %v177_v32  ;;  %386 = vst [vmem:[%s599_s1 + $0xe] sm:$0x3] %v201_v33  ;;  %v273_v36 = vld [vmem:[#allocation0 + $0x98] sm:$0x3] }
  0x9e   :  { %390 = vst [vmem:[%s599_s1 + $0x16] sm:$0x3] %v225_v34  ;;  %v297_v37 = vld [vmem:[#allocation0 + $0xb8] sm:$0x3]  ;;  %394 = vst [vmem:[%s599_s1 + $0x1e] sm:$0x3] %v249_v35 }
  0x9f   :  { %398 = vst [vmem:[%s599_s1 + $0x26] sm:$0x3] %v273_v36  ;;  %402 = vst [vmem:[%s599_s1 + $0x2e] sm:$0x3] %v297_v37  ;;  %v321_v38 = vld [vmem:[#allocation0 + $0xd8] sm:$0x3] }
  0xa0   :  { %v345_v39 = vld [vmem:[#allocation0 + $0xf8] sm:$0x3]  ;;  %406 = vst [vmem:[%s599_s1 + $0x36] sm:$0x3] %v321_v38 }
  0xa1   :  { %410 = vst [vmem:[%s599_s1 + $0x3e] sm:$0x3] %v345_v39 }

// kernel: cpednet_forward.73
= control target key start
LH: loop header
LB: loop body
LE: loop exit
PB: predicated region body
PF: predicated region fallthrough
CT: control target
= control target key end

     0   :  { %v212_v3 = vmov 0   ;;  %vm47_vm0 = vcmask 785408   ;;  %vm162_vm1 = vcmask 261120   ;;  %s309_s1 = inlined_call_operand.vmem [shape: f32[1,96,32], index: 1, kind: input, shape index: {}]   ;;  %s310_s0 = inlined_call_operand.vmem [shape: bf16[24,96], index: 0, kind: input, shape index: {}]   ;;  %s311_s2 = inlined_call_operand.vmem [shape: f32[1,24,1], index: 2, kind: input, shape index: {}]   ;;  %s312_s3 = inlined_call_operand.vmem [shape: f32[1,24,1], index: 3, kind: input, shape index: {}]   ;;  %s313_s4 = inlined_call_operand.vmem [shape: f32[1,24,32], index: 4, kind: output, shape index: {}]  }
   0x1   :  { %v21_v0 = vld [vmem:[%s309_s1] sm:$0xff]  ;;  %v22_v1 = vld [vmem:[%s309_s1 + $0x8] sm:$0xff]  ;;  %v23_v2 = vld [vmem:[%s309_s1 + $0x10] sm:$0xff]  ;;  %203 = vset.pattern.permute.xlu1 %v212_v3  ;;  %202 = vset.pattern.permute.xlu0 %v212_v3 }
   0x2   :  { %v33_v4 = vpack.c.bf16 %v22_v1, %v21_v0  ;;  %v24_v5 = vld [vmem:[%s309_s1 + $0x18] sm:$0xff]  ;;  %v25_v7 = vld [vmem:[%s309_s1 + $0x20] sm:$0xff]  ;;  %v26_v8 = vld [vmem:[%s309_s1 + $0x28] sm:$0xff] }
   0x3   :  { %v34_v6 = vpack.c.bf16 %v24_v5, %v23_v2  ;;  %v35_v9 = vpack.c.bf16 %v26_v8, %v25_v7  ;;  %v204_v10 = vld [vmem:[%s310_s0] sm:$0xff]   ;;  %v104_v11 = vld [vmem:[%s311_s2 + $0x10] sm:$0xff]  ;;  %v28_v13 = vld [vmem:[%s309_s1 + $0x38] sm:$0xff] }
   0x4   :  { %185 = vmatprep.subr.bf16.mxu0 %v33_v4  ;;  %v27_v12 = vld [vmem:[%s309_s1 + $0x30] sm:$0xff]  ;;  %117 = vperm.xlu1 %203, %v104_v11   ;;  %v102_v14 = vld [vmem:[%s311_s2] sm:$0xff]  ;;  %v103_v16 = vld [vmem:[%s311_s2 + $0x8] sm:$0xff] }
   0x5   :  { %186 = vmatpush3.bf16.msra.mxu0 %v33_v4  ;;  %197 = vmatprep.mubr.msk.bf16.mxu0 %vm47_vm0, %v204_v10  ;;  %v123_v15 = vld [vmem:[%s312_s3] sm:$0xff]  ;;  %v36_v17 = vpack.c.bf16 %v28_v13, %v27_v12  ;;  %v30_v19 = vld [vmem:[%s309_s1 + $0x48] sm:$0xff]  ;;  %v125_v20 = vld [vmem:[%s312_s3 + $0x10] sm:$0xff] }
   0x6   :  { %187 = vmatprep.subr.bf16.mxu0 %v34_v6  ;;  %107 = vperm.xlu0 %202, %v102_v14   ;;  %v29_v18 = vld [vmem:[%s309_s1 + $0x40] sm:$0xff]  ;;  %v124_v21 = vld [vmem:[%s312_s3 + $0x8] sm:$0xff]  ;;  %v31_v23 = vld [vmem:[%s309_s1 + $0x50] sm:$0xff] }
   0x7   :  { %v37_v22 = vpack.c.bf16 %v30_v19, %v29_v18  ;;  %v32_v24 = vld [vmem:[%s309_s1 + $0x58] sm:$0xff]  ;;  %v205_v26 = vld [vmem:[%s310_s0 + $0x8] ss:$0 sps:$4 sm:$0xff]  }
   0x8   :  { %128 = vperm.xlu1 %203, %v123_v15   ;;  %v38_v25 = vpack.c.bf16 %v32_v24, %v31_v23 }
   0x9   :  { %188 = vmatpush3.bf16.msra.mxu0 %v34_v6 }
   0xa   :  { %189 = vmatprep.subr.bf16.mxu0 %v35_v9  ;;  %112 = vperm.xlu0 %202, %v103_v16  }
   0xc   :  { %138 = vperm.xlu1 %203, %v125_v20  }
   0xd   :  { %190 = vmatpush3.bf16.msra.mxu0 %v35_v9 }
   0xe   :  { %191 = vmatprep.subr.bf16.mxu0 %v36_v17  ;;  %133 = vperm.xlu0 %202, %v124_v21  }
  0x11   :  { %192 = vmatpush3.bf16.msra.mxu0 %v36_v17 }
  0x12   :  { %193 = vmatprep.subr.bf16.mxu0 %v37_v22 }
  0x15   :  { %194 = vmatpush3.bf16.msra.mxu0 %v37_v22 }
  0x16   :  { %195 = vmatprep.subr.bf16.mxu0 %v38_v25 }
  0x19   :  { %196 = vmatpush3.bf16.msra.mxu0 %v38_v25 }
  0x1c   :  { %198 = vmatmul.mubr.msk.bf16.vlgmr.msra.gmra.mrb[0].mxu0 %vm47_vm0, %v205_v26 }
  0x83   :  { %v118_v27 = vpop.permute.xlu1 %117 }
  0x85   :  { %v108_v28 = vpop.permute.xlu0 %107 }
  0x87   :  { %v129_v29 = vpop.permute.xlu1 %128 }
  0x89   :  { %v113_v30 = vpop.permute.xlu0 %112 }
  0x8b   :  { %v139_v34 = vpop.permute.xlu1 %138 }
  0x8d   :  { %v134_v41 = vpop.permute.xlu0 %133 }
  0xef   :  { %v199_v31 = vpop.f32.mrb[0].mxu0 }
  0xf0   :  { %v122_v32 = vmul.f32 %v199_v31, %v118_v27  ;;  %v88_v33 = vpop.f32.mrb[1].mxu0 }
  0xf1   :  { %v120_v35 = vmul.f32 %v108_v28, %v88_v33  ;;  %v200_v36 = vpop.f32.mrb[2].mxu0 }
  0xf2   :  { %v143_v37 = vadd.f32 %v139_v34, %v122_v32  ;;  %v91_v38 = vpop.f32.mrb[3].mxu0 }
  0xf3   :  { %v141_v39 = vadd.f32 %v129_v29, %v120_v35  ;;  %v121_v40 = vmul.f32 %v113_v30, %v91_v38 }
  0xf4   :  { %v149_v42 = vmin.f32 %v143_v37, 0.0  ;;  %vm146_vm2 = vcmp.gt.f32.partialorder %v143_v37, 0.0 }
  0xf5   :  { %v147_v43 = vmin.f32 %v141_v39, 0.0  ;;  %v142_v44 = vadd.f32 %v134_v41, %v121_v40  ;;  %vm144_vm3 = vcmp.gt.f32.partialorder %v141_v39, 0.0 }
  0xf6   :  { %v154_v45 = vmul.f32 1.442695, %v149_v42 }
  0xf7   :  { %v150_v46 = vmul.f32 1.442695, %v147_v43  ;;  %v148_v47 = vmin.f32 %v142_v44, 0.0  ;;  %vm145_vm4 = vcmp.gt.f32.partialorder %v142_v44, 0.0 }
  0xf8   :  { %206 = vpow2.f32 %v154_v45 }
  0xf9   :  { %208 = vpow2.f32 %v150_v46  ;;  %v152_v48 = vmul.f32 1.442695, %v148_v47 }
  0xfb   :  { %210 = vpow2.f32 %v152_v48 }
 0x102   :  { %v207_v49 = vpop.eup %206 }
 0x103   :  { %v209_v50 = vpop.eup %208  ;;  %v176_v51 = vadd.f32 -1.0, %v207_v49 }
 0x104   :  { %v174_v52 = vadd.f32 -1.0, %v209_v50 }
 0x105   :  { %v211_v53 = vpop.eup %210  ;;  %v161_v54 = vsel %vm146_vm2, %v143_v37, %v176_v51 }
 0x106   :  { %165 = vst.msk [vmem:[%s313_s4 + $0x10] sm:$0xff] %vm162_vm1, %v161_v54  ;;  %v159_v55 = vsel %vm144_vm3, %v141_v39, %v174_v52  ;;  %v175_v56 = vadd.f32 -1.0, %v211_v53 }
 0x107   :  { %163 = vst.msk [vmem:[%s313_s4] sm:$0xff] %vm162_vm1, %v159_v55 }
 0x108   :  { %v160_v57 = vsel %vm145_vm4, %v142_v44, %v175_v56 }
 0x109   :  { %164 = vst.msk [vmem:[%s313_s4 + $0x8] sm:$0xff] %vm162_vm1, %v160_v57 }

// kernel: cpednet_forward.75
= control target key start
LH: loop header
LB: loop body
LE: loop exit
PB: predicated region body
PF: predicated region fallthrough
CT: control target
= control target key end

     0   :  { %v109_v0 = vmov 0.0   ;;  %vm27_vm0 = vcmask 1043456   ;;  %vm110_vm1 = vmmov 0   ;;  %v111_v4 = vmov 0   ;;  %s152_s1 = inlined_call_operand.vmem [shape: f32[1,8,2], index: 1, kind: input, shape index: {}]   ;;  %s153_s2 = inlined_call_operand.<no memory space> [shape: f32[1,1,1], index: 2, kind: input, shape index: {}]   ;;  %s154_s0 = inlined_call_operand.vmem [shape: bf16[2,8], index: 0, kind: input, shape index: {}]   ;;  %s155_s3 = inlined_call_operand.vmem [shape: f32[1,2,1], index: 3, kind: input, shape index: {}]   ;;  %s156_s4 = inlined_call_operand.vmem [shape: f32[1,2,2], index: 4, kind: output, shape index: {}]  }
   0x1   :  { %99 = vmatprep.subr.bf16.mxu0 %v109_v0  ;;  %v21_v1 = vld [vmem:[%s152_s1] sm:$0xff]  ;;  %101 = vmatprep.mubr.msk.bf16.mxu0 %vm110_vm1, %v109_v0  ;;  %v9_v2 = vstv %s153_s2  ;;  %vm23_vm2 = vcmask 64512   ;;  %vm89_vm3 = vcmask 9216  }
   0x2   :  { %v22_v3 = vpack.c.bf16 %v21_v1, %v21_v1  ;;  %108 = vset.pattern.permute.xlu0 %v111_v4  ;;  %10 = vst [vmem:[#allocation2] sm:$0x1] %v9_v2  ;;  %v20_v6 = vld [vmem:[%s154_s0] sm:$0x1] }
   0x3   :  { %v82_v8 = vld [vmem:[%s155_s3] sm:$0x3] }
   0x4   :  { %v29_v5 = vsel %vm27_vm0, %v22_v3, 0 }
   0x5   :  { %100 = vmatpush3.bf16.msra.mxu0 %v29_v5 }
   0x8   :  { %102 = vmatmul.mubr.msk.bf16.vlgmr.msra.gmra.mrb[0].mxu0 %vm23_vm2, %v20_v6 }
   0x9   :  { %v96_v7 = vld [vmem:[#allocation2] ss:$0 sm:$0xff] }
   0xa   :  { %78 = vperm.xlu0 %108, %v96_v7  }
   0xe   :  { %85 = vperm.xlu0 %108, %v82_v8  }
  0x89   :  { %v79_v9 = vpop.permute.xlu0 %78 }
  0x8d   :  { %v86_v13 = vpop.permute.xlu0 %85 }
  0xdb   :  { %v65_v10 = vpop.f32.mrb[0].mxu0 }
  0xdc   :  { %v81_v11 = vmul.f32 %v79_v9, %v65_v10  ;;  %v103_v12 = vpop.f32.mrb[1].mxu0 }
  0xdd   :  { %v68_v14 = vpop.f32.mrb[2].mxu0 }
  0xde   :  { %v88_v15 = vadd.f32 %v86_v13, %v81_v11  ;;  %v104_v16 = vpop.f32.mrb[3].mxu0 }
  0xe0   :  { %90 = vst.msk [vmem:[%s156_s4] sm:$0x3] %vm89_vm3, %v88_v15 }

// kernel: cpednet_forward.74
= control target key start
LH: loop header
LB: loop body
LE: loop exit
PB: predicated region body
PF: predicated region fallthrough
CT: control target
= control target key end

     0   :  { %v124_v0 = vmov 0.0   ;;  %vm125_vm0 = vmmov 0   ;;  %vm30_vm1 = vcmask 1043456   ;;  %v126_v7 = vmov 0   ;;  %s173_s1 = inlined_call_operand.vmem [shape: f32[1,24,2], index: 1, kind: input, shape index: {}]   ;;  %s174_s2 = inlined_call_operand.<no memory space> [shape: f32[1,1,1], index: 2, kind: input, shape index: {}]   ;;  %s175_s0 = inlined_call_operand.vmem [shape: bf16[8,24], index: 0, kind: input, shape index: {}]   ;;  %s176_s3 = inlined_call_operand.vmem [shape: f32[1,8,1], index: 3, kind: input, shape index: {}]   ;;  %s177_s4 = inlined_call_operand.vmem [shape: f32[1,8,2], index: 4, kind: output, shape index: {}]  }
   0x1   :  { %110 = vmatprep.subr.bf16.mxu0 %v124_v0  ;;  %v21_v1 = vld [vmem:[%s173_s1] sm:$0xff]  ;;  %v22_v2 = vld [vmem:[%s173_s1 + $0x8] sm:$0xff]  ;;  %v23_v3 = vld [vmem:[%s173_s1 + $0x10] sm:$0xff]  ;;  %114 = vmatprep.mubr.msk.bf16.mxu0 %vm125_vm0, %v124_v0  ;;  %v9_v4 = vstv %s174_s2  ;;  %vm26_vm2 = vcmask 195584   ;;  %vm98_vm3 = vcmask 15360  }
   0x2   :  { %v24_v5 = vpack.c.bf16 %v22_v2, %v21_v1  ;;  %v25_v6 = vpack.c.bf16 %v23_v3, %v23_v3  ;;  %121 = vset.pattern.permute.xlu0 %v126_v7  ;;  %10 = vst [vmem:[#allocation2] sm:$0x1] %v9_v4  ;;  %v20_v9 = vld [vmem:[%s175_s0] sm:$0xf] }
   0x3   :  { %v85_v11 = vld [vmem:[%s176_s3] sm:$0xff] }
   0x4   :  { %111 = vmatpush3.bf16.msra.mxu0 %v24_v5  ;;  %v32_v8 = vsel %vm30_vm1, %v25_v6, 0 }
   0x5   :  { %112 = vmatprep.subr.bf16.mxu0 %v124_v0 }
   0x8   :  { %113 = vmatpush3.bf16.msra.mxu0 %v32_v8 }
   0x9   :  { %v105_v10 = vld [vmem:[#allocation2] ss:$0 sm:$0xff] }
   0xa   :  { %81 = vperm.xlu0 %121, %v105_v10  }
   0xb   :  { %115 = vmatmul.mubr.msk.bf16.vlgmr.msra.gmra.mrb[0].mxu0 %vm26_vm2, %v20_v9 }
   0xe   :  { %88 = vperm.xlu0 %121, %v85_v11  }
  0x89   :  { %v82_v12 = vpop.permute.xlu0 %81 }
  0x8d   :  { %v89_v16 = vpop.permute.xlu0 %88 }
  0xde   :  { %v68_v13 = vpop.f32.mrb[0].mxu0 }
  0xdf   :  { %v84_v14 = vmul.f32 %v82_v12, %v68_v13  ;;  %v116_v15 = vpop.f32.mrb[1].mxu0 }
  0xe0   :  { %v71_v17 = vpop.f32.mrb[2].mxu0 }
  0xe1   :  { %v91_v18 = vadd.f32 %v89_v16, %v84_v14  ;;  %v117_v19 = vpop.f32.mrb[3].mxu0 }
  0xe3   :  { %v93_v20 = vmin.f32 %v91_v18, 0.0  ;;  %vm92_vm4 = vcmp.gt.f32.partialorder %v91_v18, 0.0 }
  0xe5   :  { %v94_v21 = vmul.f32 1.442695, %v93_v20 }
  0xe7   :  { %122 = vpow2.f32 %v94_v21 }
  0xf1   :  { %v123_v22 = vpop.eup %122 }
  0xf2   :  { %v106_v23 = vadd.f32 -1.0, %v123_v22 }
  0xf4   :  { %v97_v24 = vsel %vm92_vm4, %v91_v18, %v106_v23 }
  0xf5   :  { %99 = vst.msk [vmem:[%s177_s4] sm:$0xff] %vm98_vm3, %v97_v24 }

</bundles_post_ra>
